<compile_context>
chip_gen: v5e
topology: v5e:2x2
jax: 0.10.0
libtpu: 0.0.40
codegen_flags: <defaults>
</compile_context>

<pallas_src>
import math

import jax
import jax.numpy as jnp
import numpy as np
from jax.experimental import pallas as pl
from jax.experimental.pallas import tpu as pltpu

# ---- small, module-consistent sizes ----
B = 2          # batch
N = 8          # num_image_tokens
D = 128        # dim        (PyTorch default 768; scaled down, lane-aligned)
H = 16         # num_heads  (fixed by MultiHeadAttention default)
HD = D // H    # head_dim = 8
HIDDEN = 256   # MLP hidden_dim (Encoder default is 2*dim)
BN = B * N     # total tokens
EPS = 1e-12    # nn.LayerNorm(dim, eps=1e-12) in the Encoder


def _layernorm(x, gamma, beta):
    # PyTorch LayerNorm: biased variance over last dim.
    mean = jnp.mean(x, axis=-1, keepdims=True)
    var = jnp.mean((x - mean) ** 2, axis=-1, keepdims=True)
    return (x - mean) * jax.lax.rsqrt(var + EPS) * gamma + beta


def _gelu_exact(x):
    # nn.GELU() default = exact erf formulation.
    return 0.5 * x * (1.0 + jax.lax.erf(x / jnp.sqrt(2.0).astype(x.dtype)))


def encoder_kernel(x_ref,
                   wqkv_ref, bqkv_ref, wo_ref, bo_ref,
                   g1_ref, be1_ref,
                   w1_ref, b1_ref, w2_ref, b2_ref,
                   g2_ref, be2_ref,
                   out_ref):
    xf = x_ref[...].astype(jnp.float32)                      # (BN, D): all tokens

    # --- fused QKV projection: one full-depth MXU matmul (K = 128) ---
    qkv = jnp.dot(xf, wqkv_ref[...],
                  preferred_element_type=jnp.float32) + bqkv_ref[...]   # (BN, 3D)
    q = qkv[:, :D]
    k = qkv[:, D:2 * D]
    v = qkv[:, 2 * D:]

    # --- block-diagonal same-batch mask so every head uses one (BN, BN) score matmul ---
    rb = jax.lax.broadcasted_iota(jnp.int32, (BN, BN), 0)
    cb = jax.lax.broadcasted_iota(jnp.int32, (BN, BN), 1)
    same_batch = None
    for b in range(B):                                       # static, B=2
        r_in = (rb >= b * N) & (rb < (b + 1) * N)
        c_in = (cb >= b * N) & (cb < (b + 1) * N)
        blk = r_in & c_in
        same_batch = blk if same_batch is None else (same_batch | blk)

    scale = jnp.float32(1.0 / math.sqrt(HD))
    neg_big = jnp.float32(-1e30)

    # --- attention: per-head scores over both batches at once (masked), f32 softmax ---
    ctx_heads = []
    for h in range(H):                                       # static unrolled, tiny flops
        lo = h * HD
        qh = q[:, lo:lo + HD]                                # (BN, HD)
        kh = k[:, lo:lo + HD]
        vh = v[:, lo:lo + HD]
        s = jnp.dot(qh, kh.T, preferred_element_type=jnp.float32) * scale   # (BN, BN)
        s = jnp.where(same_batch, s, neg_big)                # kill cross-batch scores
        s = s - jnp.max(s, axis=-1, keepdims=True)
        p = jnp.exp(s)
        p = p * pl.reciprocal(jnp.sum(p, axis=-1, keepdims=True), approx=True)
        ctx_heads.append(jnp.dot(p, vh, preferred_element_type=jnp.float32))  # (BN, HD)

    ctx = jnp.concatenate(ctx_heads, axis=-1)                # (BN, D)

    # --- single full-width output projection ---
    attn_out = jnp.dot(ctx, wo_ref[...],
                       preferred_element_type=jnp.float32) + bo_ref[...]

    # dropout(p=0.1) is identity in eval mode
    x1 = _layernorm(xf + attn_out, g1_ref[...], be1_ref[...])

    # --- MLP: Linear -> GELU -> Linear (dropout = identity) ---
    h1 = jnp.dot(x1, w1_ref[...], preferred_element_type=jnp.float32) + b1_ref[...]
    h1 = _gelu_exact(h1)
    h2 = jnp.dot(h1, w2_ref[...], preferred_element_type=jnp.float32) + b2_ref[...]

    out_ref[...] = _layernorm(x1 + h2, g2_ref[...], be2_ref[...]).astype(out_ref.dtype)


def encoder_forward(x, params):
    (wq, bq, wk, bk, wv, bv, wo, bo, g1, be1, w1, b1, w2, b2, g2, be2) = params

    # wrapper-side (outside the kernel) fusion of the QKV weights / biases and the
    # token flattening -- both are free layout plumbing for XLA.
    wqkv = jnp.concatenate([wq, wk, wv], axis=1)             # (D, 3D)
    bqkv = jnp.concatenate([bq, bk, bv], axis=1)             # (1, 3D)
    x2d = x.reshape(BN, D)

    def full(shape):
        n = len(shape)
        return pl.BlockSpec(shape, lambda i, n=n: (0,) * n)

    in_specs = [
        full((BN, D)),                                 # x (all tokens)
        full((D, 3 * D)), full((1, 3 * D)),            # fused Wqkv, bqkv
        full((D, D)), full((1, D)),                    # Wo, bo
        full((1, D)), full((1, D)),                    # ln1 gamma, beta
        full((D, HIDDEN)), full((1, HIDDEN)),          # W1, b1
        full((HIDDEN, D)), full((1, D)),               # W2, b2
        full((1, D)), full((1, D)),                    # ln2 gamma, beta
    ]

    flops = (2 * BN * D * (3 * D)            # fused QKV
             + H * 2 * BN * BN * HD * 2      # scores + contexts
             + 2 * BN * D * D                # output projection
             + 2 * BN * D * HIDDEN * 2)      # MLP
    transcendentals = H * BN * BN + BN * HIDDEN + 2 * BN + H * BN
    bytes_accessed = 4 * (2 * BN * D                       # x in + out
                          + D * 3 * D + 3 * D              # Wqkv, bqkv
                          + D * D + D                      # Wo, bo
                          + 2 * D * HIDDEN + HIDDEN + D    # MLP weights/biases
                          + 4 * D)                         # LayerNorm params

    out2d = pl.pallas_call(
        encoder_kernel,
        out_shape=jax.ShapeDtypeStruct((BN, D), x.dtype),
        grid_spec=pltpu.PrefetchScalarGridSpec(
            num_scalar_prefetch=0,
            grid=(1,),                                     # single step: no grid overhead
            in_specs=in_specs,
            out_specs=full((BN, D)),
        ),
        compiler_params=pltpu.CompilerParams(
            dimension_semantics=("arbitrary",)),
        cost_estimate=pl.CostEstimate(
            flops=flops,
            transcendentals=transcendentals,
            bytes_accessed=bytes_accessed),
    )(x2d, wqkv, bqkv, wo, bo, g1, be1, w1, b1, w2, b2, g2, be2)

    return out2d.reshape(B, N, D)


# ---------------- pure-JAX reference (for correctness check) ----------------
def encoder_ref(x, params):
    (wq, bq, wk, bk, wv, bv, wo, bo, g1, be1, w1, b1, w2, b2, g2, be2) = params
    x = x.astype(jnp.float32)
    q = x @ wq + bq
    k = x @ wk + bk
    v = x @ wv + bv
    q = q.reshape(B, N, H, HD).transpose(0, 2, 1, 3)
    k = k.reshape(B, N, H, HD).transpose(0, 2, 1, 3)
    v = v.reshape(B, N, H, HD).transpose(0, 2, 1, 3)
    a = jnp.einsum('bhqd,bhkd->bhqk', q, k) / math.sqrt(HD)
    a = jax.nn.softmax(a, axis=-1)
    o = jnp.einsum('bhqk,bhkd->bhqd', a, v)
    o = o.transpose(0, 2, 1, 3).reshape(B, N, D)
    o = o @ wo + bo
    x1 = x + o
    x1 = _layernorm(x1, g1, be1)
    h1 = _gelu_exact(x1 @ w1 + b1)
    h2 = h1 @ w2 + b2
    x2 = _layernorm(x1 + h2, g2, be2)
    return x2


def init_params(key):
    ks = jax.random.split(key, 12)
    s = 0.02
    wq = jax.random.normal(ks[0], (D, D), jnp.float32) * s
    wk = jax.random.normal(ks[1], (D, D), jnp.float32) * s
    wv = jax.random.normal(ks[2], (D, D), jnp.float32) * s
    wo = jax.random.normal(ks[3], (D, D), jnp.float32) * s
    bq = jax.random.normal(ks[4], (1, D), jnp.float32) * s
    bk = jax.random.normal(ks[5], (1, D), jnp.float32) * s
    bv = jax.random.normal(ks[6], (1, D), jnp.float32) * s
    bo = jax.random.normal(ks[7], (1, D), jnp.float32) * s
    w1 = jax.random.normal(ks[8], (D, HIDDEN), jnp.float32) * s
    b1 = jax.random.normal(ks[9], (1, HIDDEN), jnp.float32) * s
    w2 = jax.random.normal(ks[10], (HIDDEN, D), jnp.float32) * s
    b2 = jax.random.normal(ks[11], (1, D), jnp.float32) * s
    g1 = jnp.ones((1, D), jnp.float32)
    be1 = jnp.zeros((1, D), jnp.float32)
    g2 = jnp.ones((1, D), jnp.float32)
    be2 = jnp.zeros((1, D), jnp.float32)
    return (wq, bq, wk, bk, wv, bv, wo, bo, g1, be1, w1, b1, w2, b2, g2, be2)


if __name__ == "__main__":
    key = jax.random.PRNGKey(0)
    kx, kp = jax.random.split(key)
    x = jax.random.normal(kx, (B, N, D), jnp.float32)
    params = init_params(kp)

    out = encoder_forward(x, params)
    out = jax.block_until_ready(out)

    ref = encoder_ref(x, params)
    np.testing.assert_allclose(np.asarray(out), np.asarray(ref), rtol=1e-3, atol=1e-3)

    print("KERNEL_OK")
</pallas_src>

<mosaic_0001>
module attributes {stable_mosaic.version = 11 : i64} {
  func.func @encoder_kernel(%arg0: i32, %arg1: memref<16x128xf32, #tpu.memory_space<vmem>>, %arg2: memref<128x384xf32, #tpu.memory_space<vmem>>, %arg3: memref<1x384xf32, #tpu.memory_space<vmem>>, %arg4: memref<128x128xf32, #tpu.memory_space<vmem>>, %arg5: memref<1x128xf32, #tpu.memory_space<vmem>>, %arg6: memref<1x128xf32, #tpu.memory_space<vmem>>, %arg7: memref<1x128xf32, #tpu.memory_space<vmem>>, %arg8: memref<128x256xf32, #tpu.memory_space<vmem>>, %arg9: memref<1x256xf32, #tpu.memory_space<vmem>>, %arg10: memref<256x128xf32, #tpu.memory_space<vmem>>, %arg11: memref<1x128xf32, #tpu.memory_space<vmem>>, %arg12: memref<1x128xf32, #tpu.memory_space<vmem>>, %arg13: memref<1x128xf32, #tpu.memory_space<vmem>>, %arg14: memref<16x128xf32, #tpu.memory_space<vmem>>) attributes {dimension_semantics = [#tpu.dimension_semantics<arbitrary>], iteration_bounds = array<i64: 1>, scalar_prefetch = 0 : i64, scratch_operands = 0 : i64, tpu.core_type = #tpu.core_type<tc>, window_params = [{pipeline_mode = #tpu.pipeline_mode<synchronous>, transform_indices = @transform_0, window_bounds = array<i64: 16, 128>}, {pipeline_mode = #tpu.pipeline_mode<synchronous>, transform_indices = @transform_1, window_bounds = array<i64: 128, 384>}, {pipeline_mode = #tpu.pipeline_mode<synchronous>, transform_indices = @transform_2, window_bounds = array<i64: 1, 384>}, {pipeline_mode = #tpu.pipeline_mode<synchronous>, transform_indices = @transform_3, window_bounds = array<i64: 128, 128>}, {pipeline_mode = #tpu.pipeline_mode<synchronous>, transform_indices = @transform_4, window_bounds = array<i64: 1, 128>}, {pipeline_mode = #tpu.pipeline_mode<synchronous>, transform_indices = @transform_5, window_bounds = array<i64: 1, 128>}, {pipeline_mode = #tpu.pipeline_mode<synchronous>, transform_indices = @transform_6, window_bounds = array<i64: 1, 128>}, {pipeline_mode = #tpu.pipeline_mode<synchronous>, transform_indices = @transform_7, window_bounds = array<i64: 128, 256>}, {pipeline_mode = #tpu.pipeline_mode<synchronous>, transform_indices = @transform_8, window_bounds = array<i64: 1, 256>}, {pipeline_mode = #tpu.pipeline_mode<synchronous>, transform_indices = @transform_9, window_bounds = array<i64: 256, 128>}, {pipeline_mode = #tpu.pipeline_mode<synchronous>, transform_indices = @transform_10, window_bounds = array<i64: 1, 128>}, {pipeline_mode = #tpu.pipeline_mode<synchronous>, transform_indices = @transform_11, window_bounds = array<i64: 1, 128>}, {pipeline_mode = #tpu.pipeline_mode<synchronous>, transform_indices = @transform_12, window_bounds = array<i64: 1, 128>}, {pipeline_mode = #tpu.pipeline_mode<synchronous>, transform_indices = @transform_13, window_bounds = array<i64: 16, 128>}]} {
    %c0 = arith.constant 0 : index
    %c0_0 = arith.constant 0 : index
    %0 = vector.load %arg1[%c0, %c0_0] : memref<16x128xf32, #tpu.memory_space<vmem>>, vector<16x128xf32>
    %c0_1 = arith.constant 0 : index
    %c0_2 = arith.constant 0 : index
    %1 = vector.load %arg2[%c0_1, %c0_2] : memref<128x384xf32, #tpu.memory_space<vmem>>, vector<128x384xf32>
    %cst = arith.constant dense<0.000000e+00> : vector<16x384xf32>
    %2 = tpu.matmul %0, %1, %cst {dimension_numbers = #tpu.dot_dimension_numbers<[1], [0], [0], [1], [0, 0, 1, 1], [], []>} : vector<16x128xf32>, vector<128x384xf32>, vector<16x384xf32> -> vector<16x384xf32>
    %c0_3 = arith.constant 0 : index
    %c0_4 = arith.constant 0 : index
    %3 = vector.load %arg3[%c0_3, %c0_4] : memref<1x384xf32, #tpu.memory_space<vmem>>, vector<1x384xf32>
    %4 = vector.broadcast %3 : vector<1x384xf32> to vector<16x384xf32>
    %5 = arith.addf %2, %4 : vector<16x384xf32>
    %6 = vector.extract_strided_slice %5 {offsets = [0, 0], sizes = [16, 128], strides = [1, 1]} : vector<16x384xf32> to vector<16x128xf32>
    %7 = vector.extract_strided_slice %5 {offsets = [0, 128], sizes = [16, 128], strides = [1, 1]} : vector<16x384xf32> to vector<16x128xf32>
    %8 = vector.extract_strided_slice %5 {offsets = [0, 256], sizes = [16, 128], strides = [1, 1]} : vector<16x384xf32> to vector<16x128xf32>
    %9 = tpu.iota {dimensions = array<i32: 0>} : vector<16x16xi32>
    %10 = tpu.iota {dimensions = array<i32: 1>} : vector<16x16xi32>
    %c0_i32 = arith.constant 0 : i32
    %11 = vector.broadcast %c0_i32 : i32 to vector<16x16xi32>
    %12 = arith.cmpi sge, %9, %11 : vector<16x16xi32>
    %c8_i32 = arith.constant 8 : i32
    %13 = vector.broadcast %c8_i32 : i32 to vector<16x16xi32>
    %14 = arith.cmpi slt, %9, %13 : vector<16x16xi32>
    %15 = arith.andi %12, %14 : vector<16x16xi1>
    %c0_i32_5 = arith.constant 0 : i32
    %16 = vector.broadcast %c0_i32_5 : i32 to vector<16x16xi32>
    %17 = arith.cmpi sge, %10, %16 : vector<16x16xi32>
    %c8_i32_6 = arith.constant 8 : i32
    %18 = vector.broadcast %c8_i32_6 : i32 to vector<16x16xi32>
    %19 = arith.cmpi slt, %10, %18 : vector<16x16xi32>
    %20 = arith.andi %17, %19 : vector<16x16xi1>
    %21 = arith.andi %15, %20 : vector<16x16xi1>
    %c8_i32_7 = arith.constant 8 : i32
    %22 = vector.broadcast %c8_i32_7 : i32 to vector<16x16xi32>
    %23 = arith.cmpi sge, %9, %22 : vector<16x16xi32>
    %c16_i32 = arith.constant 16 : i32
    %24 = vector.broadcast %c16_i32 : i32 to vector<16x16xi32>
    %25 = arith.cmpi slt, %9, %24 : vector<16x16xi32>
    %26 = arith.andi %23, %25 : vector<16x16xi1>
    %c8_i32_8 = arith.constant 8 : i32
    %27 = vector.broadcast %c8_i32_8 : i32 to vector<16x16xi32>
    %28 = arith.cmpi sge, %10, %27 : vector<16x16xi32>
    %c16_i32_9 = arith.constant 16 : i32
    %29 = vector.broadcast %c16_i32_9 : i32 to vector<16x16xi32>
    %30 = arith.cmpi slt, %10, %29 : vector<16x16xi32>
    %31 = arith.andi %28, %30 : vector<16x16xi1>
    %32 = arith.andi %26, %31 : vector<16x16xi1>
    %33 = arith.ori %21, %32 : vector<16x16xi1>
    %34 = vector.extract_strided_slice %6 {offsets = [0, 0], sizes = [16, 8], strides = [1, 1]} : vector<16x128xf32> to vector<16x8xf32>
    %35 = vector.extract_strided_slice %7 {offsets = [0, 0], sizes = [16, 8], strides = [1, 1]} : vector<16x128xf32> to vector<16x8xf32>
    %36 = vector.extract_strided_slice %8 {offsets = [0, 0], sizes = [16, 8], strides = [1, 1]} : vector<16x128xf32> to vector<16x8xf32>
    %37 = tpu.transpose %35, [1, 0] : vector<16x8xf32> -> vector<8x16xf32>
    %cst_10 = arith.constant dense<0.000000e+00> : vector<16x16xf32>
    %38 = tpu.matmul %34, %37, %cst_10 {dimension_numbers = #tpu.dot_dimension_numbers<[1], [0], [0], [1], [0, 0, 1, 1], [], []>} : vector<16x8xf32>, vector<8x16xf32>, vector<16x16xf32> -> vector<16x16xf32>
    %cst_11 = arith.constant 0.353553385 : f32
    %39 = vector.broadcast %cst_11 : f32 to vector<16x16xf32>
    %40 = arith.mulf %38, %39 : vector<16x16xf32>
    %cst_12 = arith.constant -1.000000e+30 : f32
    %41 = vector.broadcast %cst_12 : f32 to vector<16x16xf32>
    %42 = arith.select %33, %40, %41 : vector<16x16xi1>, vector<16x16xf32>
    %cst_13 = arith.constant dense<0xFF800000> : vector<16xf32>
    %43 = vector.multi_reduction <maximumf>, %42, %cst_13 [1] : vector<16x16xf32> to vector<16xf32>
    %44 = vector.shape_cast %43 : vector<16xf32> to vector<16x1xf32>
    %45 = vector.broadcast %44 : vector<16x1xf32> to vector<16x16xf32>
    %46 = arith.subf %42, %45 : vector<16x16xf32>
    %47 = math.exp %46 : vector<16x16xf32>
    %cst_14 = arith.constant dense<0.000000e+00> : vector<16xf32>
    %48 = vector.multi_reduction <add>, %47, %cst_14 [1] : vector<16x16xf32> to vector<16xf32>
    %49 = vector.shape_cast %48 : vector<16xf32> to vector<16x1xf32>
    %50 = tpu.reciprocal %49 {approx = true} : vector<16x1xf32> -> vector<16x1xf32>
    %51 = vector.broadcast %50 : vector<16x1xf32> to vector<16x16xf32>
    %52 = arith.mulf %47, %51 : vector<16x16xf32>
    %cst_15 = arith.constant dense<0.000000e+00> : vector<16x8xf32>
    %53 = tpu.matmul %52, %36, %cst_15 {dimension_numbers = #tpu.dot_dimension_numbers<[1], [0], [0], [1], [0, 0, 1, 1], [], []>} : vector<16x16xf32>, vector<16x8xf32>, vector<16x8xf32> -> vector<16x8xf32>
    %54 = vector.extract_strided_slice %6 {offsets = [0, 8], sizes = [16, 8], strides = [1, 1]} : vector<16x128xf32> to vector<16x8xf32>
    %55 = vector.extract_strided_slice %7 {offsets = [0, 8], sizes = [16, 8], strides = [1, 1]} : vector<16x128xf32> to vector<16x8xf32>
    %56 = vector.extract_strided_slice %8 {offsets = [0, 8], sizes = [16, 8], strides = [1, 1]} : vector<16x128xf32> to vector<16x8xf32>
    %57 = tpu.transpose %55, [1, 0] : vector<16x8xf32> -> vector<8x16xf32>
    %cst_16 = arith.constant dense<0.000000e+00> : vector<16x16xf32>
    %58 = tpu.matmul %54, %57, %cst_16 {dimension_numbers = #tpu.dot_dimension_numbers<[1], [0], [0], [1], [0, 0, 1, 1], [], []>} : vector<16x8xf32>, vector<8x16xf32>, vector<16x16xf32> -> vector<16x16xf32>
    %cst_17 = arith.constant 0.353553385 : f32
    %59 = vector.broadcast %cst_17 : f32 to vector<16x16xf32>
    %60 = arith.mulf %58, %59 : vector<16x16xf32>
    %cst_18 = arith.constant -1.000000e+30 : f32
    %61 = vector.broadcast %cst_18 : f32 to vector<16x16xf32>
    %62 = arith.select %33, %60, %61 : vector<16x16xi1>, vector<16x16xf32>
    %cst_19 = arith.constant dense<0xFF800000> : vector<16xf32>
    %63 = vector.multi_reduction <maximumf>, %62, %cst_19 [1] : vector<16x16xf32> to vector<16xf32>
    %64 = vector.shape_cast %63 : vector<16xf32> to vector<16x1xf32>
    %65 = vector.broadcast %64 : vector<16x1xf32> to vector<16x16xf32>
    %66 = arith.subf %62, %65 : vector<16x16xf32>
    %67 = math.exp %66 : vector<16x16xf32>
    %cst_20 = arith.constant dense<0.000000e+00> : vector<16xf32>
    %68 = vector.multi_reduction <add>, %67, %cst_20 [1] : vector<16x16xf32> to vector<16xf32>
    %69 = vector.shape_cast %68 : vector<16xf32> to vector<16x1xf32>
    %70 = tpu.reciprocal %69 {approx = true} : vector<16x1xf32> -> vector<16x1xf32>
    %71 = vector.broadcast %70 : vector<16x1xf32> to vector<16x16xf32>
    %72 = arith.mulf %67, %71 : vector<16x16xf32>
    %cst_21 = arith.constant dense<0.000000e+00> : vector<16x8xf32>
    %73 = tpu.matmul %72, %56, %cst_21 {dimension_numbers = #tpu.dot_dimension_numbers<[1], [0], [0], [1], [0, 0, 1, 1], [], []>} : vector<16x16xf32>, vector<16x8xf32>, vector<16x8xf32> -> vector<16x8xf32>
    %74 = vector.extract_strided_slice %6 {offsets = [0, 16], sizes = [16, 8], strides = [1, 1]} : vector<16x128xf32> to vector<16x8xf32>
    %75 = vector.extract_strided_slice %7 {offsets = [0, 16], sizes = [16, 8], strides = [1, 1]} : vector<16x128xf32> to vector<16x8xf32>
    %76 = vector.extract_strided_slice %8 {offsets = [0, 16], sizes = [16, 8], strides = [1, 1]} : vector<16x128xf32> to vector<16x8xf32>
    %77 = tpu.transpose %75, [1, 0] : vector<16x8xf32> -> vector<8x16xf32>
    %cst_22 = arith.constant dense<0.000000e+00> : vector<16x16xf32>
    %78 = tpu.matmul %74, %77, %cst_22 {dimension_numbers = #tpu.dot_dimension_numbers<[1], [0], [0], [1], [0, 0, 1, 1], [], []>} : vector<16x8xf32>, vector<8x16xf32>, vector<16x16xf32> -> vector<16x16xf32>
    %cst_23 = arith.constant 0.353553385 : f32
    %79 = vector.broadcast %cst_23 : f32 to vector<16x16xf32>
    %80 = arith.mulf %78, %79 : vector<16x16xf32>
    %cst_24 = arith.constant -1.000000e+30 : f32
    %81 = vector.broadcast %cst_24 : f32 to vector<16x16xf32>
    %82 = arith.select %33, %80, %81 : vector<16x16xi1>, vector<16x16xf32>
    %cst_25 = arith.constant dense<0xFF800000> : vector<16xf32>
    %83 = vector.multi_reduction <maximumf>, %82, %cst_25 [1] : vector<16x16xf32> to vector<16xf32>
    %84 = vector.shape_cast %83 : vector<16xf32> to vector<16x1xf32>
    %85 = vector.broadcast %84 : vector<16x1xf32> to vector<16x16xf32>
    %86 = arith.subf %82, %85 : vector<16x16xf32>
    %87 = math.exp %86 : vector<16x16xf32>
    %cst_26 = arith.constant dense<0.000000e+00> : vector<16xf32>
    %88 = vector.multi_reduction <add>, %87, %cst_26 [1] : vector<16x16xf32> to vector<16xf32>
    %89 = vector.shape_cast %88 : vector<16xf32> to vector<16x1xf32>
    %90 = tpu.reciprocal %89 {approx = true} : vector<16x1xf32> -> vector<16x1xf32>
    %91 = vector.broadcast %90 : vector<16x1xf32> to vector<16x16xf32>
    %92 = arith.mulf %87, %91 : vector<16x16xf32>
    %cst_27 = arith.constant dense<0.000000e+00> : vector<16x8xf32>
    %93 = tpu.matmul %92, %76, %cst_27 {dimension_numbers = #tpu.dot_dimension_numbers<[1], [0], [0], [1], [0, 0, 1, 1], [], []>} : vector<16x16xf32>, vector<16x8xf32>, vector<16x8xf32> -> vector<16x8xf32>
    %94 = vector.extract_strided_slice %6 {offsets = [0, 24], sizes = [16, 8], strides = [1, 1]} : vector<16x128xf32> to vector<16x8xf32>
    %95 = vector.extract_strided_slice %7 {offsets = [0, 24], sizes = [16, 8], strides = [1, 1]} : vector<16x128xf32> to vector<16x8xf32>
    %96 = vector.extract_strided_slice %8 {offsets = [0, 24], sizes = [16, 8], strides = [1, 1]} : vector<16x128xf32> to vector<16x8xf32>
    %97 = tpu.transpose %95, [1, 0] : vector<16x8xf32> -> vector<8x16xf32>
    %cst_28 = arith.constant dense<0.000000e+00> : vector<16x16xf32>
    %98 = tpu.matmul %94, %97, %cst_28 {dimension_numbers = #tpu.dot_dimension_numbers<[1], [0], [0], [1], [0, 0, 1, 1], [], []>} : vector<16x8xf32>, vector<8x16xf32>, vector<16x16xf32> -> vector<16x16xf32>
    %cst_29 = arith.constant 0.353553385 : f32
    %99 = vector.broadcast %cst_29 : f32 to vector<16x16xf32>
    %100 = arith.mulf %98, %99 : vector<16x16xf32>
    %cst_30 = arith.constant -1.000000e+30 : f32
    %101 = vector.broadcast %cst_30 : f32 to vector<16x16xf32>
    %102 = arith.select %33, %100, %101 : vector<16x16xi1>, vector<16x16xf32>
    %cst_31 = arith.constant dense<0xFF800000> : vector<16xf32>
    %103 = vector.multi_reduction <maximumf>, %102, %cst_31 [1] : vector<16x16xf32> to vector<16xf32>
    %104 = vector.shape_cast %103 : vector<16xf32> to vector<16x1xf32>
    %105 = vector.broadcast %104 : vector<16x1xf32> to vector<16x16xf32>
    %106 = arith.subf %102, %105 : vector<16x16xf32>
    %107 = math.exp %106 : vector<16x16xf32>
    %cst_32 = arith.constant dense<0.000000e+00> : vector<16xf32>
    %108 = vector.multi_reduction <add>, %107, %cst_32 [1] : vector<16x16xf32> to vector<16xf32>
    %109 = vector.shape_cast %108 : vector<16xf32> to vector<16x1xf32>
    %110 = tpu.reciprocal %109 {approx = true} : vector<16x1xf32> -> vector<16x1xf32>
    %111 = vector.broadcast %110 : vector<16x1xf32> to vector<16x16xf32>
    %112 = arith.mulf %107, %111 : vector<16x16xf32>
    %cst_33 = arith.constant dense<0.000000e+00> : vector<16x8xf32>
    %113 = tpu.matmul %112, %96, %cst_33 {dimension_numbers = #tpu.dot_dimension_numbers<[1], [0], [0], [1], [0, 0, 1, 1], [], []>} : vector<16x16xf32>, vector<16x8xf32>, vector<16x8xf32> -> vector<16x8xf32>
    %114 = vector.extract_strided_slice %6 {offsets = [0, 32], sizes = [16, 8], strides = [1, 1]} : vector<16x128xf32> to vector<16x8xf32>
    %115 = vector.extract_strided_slice %7 {offsets = [0, 32], sizes = [16, 8], strides = [1, 1]} : vector<16x128xf32> to vector<16x8xf32>
    %116 = vector.extract_strided_slice %8 {offsets = [0, 32], sizes = [16, 8], strides = [1, 1]} : vector<16x128xf32> to vector<16x8xf32>
    %117 = tpu.transpose %115, [1, 0] : vector<16x8xf32> -> vector<8x16xf32>
    %cst_34 = arith.constant dense<0.000000e+00> : vector<16x16xf32>
    %118 = tpu.matmul %114, %117, %cst_34 {dimension_numbers = #tpu.dot_dimension_numbers<[1], [0], [0], [1], [0, 0, 1, 1], [], []>} : vector<16x8xf32>, vector<8x16xf32>, vector<16x16xf32> -> vector<16x16xf32>
    %cst_35 = arith.constant 0.353553385 : f32
    %119 = vector.broadcast %cst_35 : f32 to vector<16x16xf32>
    %120 = arith.mulf %118, %119 : vector<16x16xf32>
    %cst_36 = arith.constant -1.000000e+30 : f32
    %121 = vector.broadcast %cst_36 : f32 to vector<16x16xf32>
    %122 = arith.select %33, %120, %121 : vector<16x16xi1>, vector<16x16xf32>
    %cst_37 = arith.constant dense<0xFF800000> : vector<16xf32>
    %123 = vector.multi_reduction <maximumf>, %122, %cst_37 [1] : vector<16x16xf32> to vector<16xf32>
    %124 = vector.shape_cast %123 : vector<16xf32> to vector<16x1xf32>
    %125 = vector.broadcast %124 : vector<16x1xf32> to vector<16x16xf32>
    %126 = arith.subf %122, %125 : vector<16x16xf32>
    %127 = math.exp %126 : vector<16x16xf32>
    %cst_38 = arith.constant dense<0.000000e+00> : vector<16xf32>
    %128 = vector.multi_reduction <add>, %127, %cst_38 [1] : vector<16x16xf32> to vector<16xf32>
    %129 = vector.shape_cast %128 : vector<16xf32> to vector<16x1xf32>
    %130 = tpu.reciprocal %129 {approx = true} : vector<16x1xf32> -> vector<16x1xf32>
    %131 = vector.broadcast %130 : vector<16x1xf32> to vector<16x16xf32>
    %132 = arith.mulf %127, %131 : vector<16x16xf32>
    %cst_39 = arith.constant dense<0.000000e+00> : vector<16x8xf32>
    %133 = tpu.matmul %132, %116, %cst_39 {dimension_numbers = #tpu.dot_dimension_numbers<[1], [0], [0], [1], [0, 0, 1, 1], [], []>} : vector<16x16xf32>, vector<16x8xf32>, vector<16x8xf32> -> vector<16x8xf32>
    %134 = vector.extract_strided_slice %6 {offsets = [0, 40], sizes = [16, 8], strides = [1, 1]} : vector<16x128xf32> to vector<16x8xf32>
    %135 = vector.extract_strided_slice %7 {offsets = [0, 40], sizes = [16, 8], strides = [1, 1]} : vector<16x128xf32> to vector<16x8xf32>
    %136 = vector.extract_strided_slice %8 {offsets = [0, 40], sizes = [16, 8], strides = [1, 1]} : vector<16x128xf32> to vector<16x8xf32>
    %137 = tpu.transpose %135, [1, 0] : vector<16x8xf32> -> vector<8x16xf32>
    %cst_40 = arith.constant dense<0.000000e+00> : vector<16x16xf32>
    %138 = tpu.matmul %134, %137, %cst_40 {dimension_numbers = #tpu.dot_dimension_numbers<[1], [0], [0], [1], [0, 0, 1, 1], [], []>} : vector<16x8xf32>, vector<8x16xf32>, vector<16x16xf32> -> vector<16x16xf32>
    %cst_41 = arith.constant 0.353553385 : f32
    %139 = vector.broadcast %cst_41 : f32 to vector<16x16xf32>
    %140 = arith.mulf %138, %139 : vector<16x16xf32>
    %cst_42 = arith.constant -1.000000e+30 : f32
    %141 = vector.broadcast %cst_42 : f32 to vector<16x16xf32>
    %142 = arith.select %33, %140, %141 : vector<16x16xi1>, vector<16x16xf32>
    %cst_43 = arith.constant dense<0xFF800000> : vector<16xf32>
    %143 = vector.multi_reduction <maximumf>, %142, %cst_43 [1] : vector<16x16xf32> to vector<16xf32>
    %144 = vector.shape_cast %143 : vector<16xf32> to vector<16x1xf32>
    %145 = vector.broadcast %144 : vector<16x1xf32> to vector<16x16xf32>
    %146 = arith.subf %142, %145 : vector<16x16xf32>
    %147 = math.exp %146 : vector<16x16xf32>
    %cst_44 = arith.constant dense<0.000000e+00> : vector<16xf32>
    %148 = vector.multi_reduction <add>, %147, %cst_44 [1] : vector<16x16xf32> to vector<16xf32>
    %149 = vector.shape_cast %148 : vector<16xf32> to vector<16x1xf32>
    %150 = tpu.reciprocal %149 {approx = true} : vector<16x1xf32> -> vector<16x1xf32>
    %151 = vector.broadcast %150 : vector<16x1xf32> to vector<16x16xf32>
    %152 = arith.mulf %147, %151 : vector<16x16xf32>
    %cst_45 = arith.constant dense<0.000000e+00> : vector<16x8xf32>
    %153 = tpu.matmul %152, %136, %cst_45 {dimension_numbers = #tpu.dot_dimension_numbers<[1], [0], [0], [1], [0, 0, 1, 1], [], []>} : vector<16x16xf32>, vector<16x8xf32>, vector<16x8xf32> -> vector<16x8xf32>
    %154 = vector.extract_strided_slice %6 {offsets = [0, 48], sizes = [16, 8], strides = [1, 1]} : vector<16x128xf32> to vector<16x8xf32>
    %155 = vector.extract_strided_slice %7 {offsets = [0, 48], sizes = [16, 8], strides = [1, 1]} : vector<16x128xf32> to vector<16x8xf32>
    %156 = vector.extract_strided_slice %8 {offsets = [0, 48], sizes = [16, 8], strides = [1, 1]} : vector<16x128xf32> to vector<16x8xf32>
    %157 = tpu.transpose %155, [1, 0] : vector<16x8xf32> -> vector<8x16xf32>
    %cst_46 = arith.constant dense<0.000000e+00> : vector<16x16xf32>
    %158 = tpu.matmul %154, %157, %cst_46 {dimension_numbers = #tpu.dot_dimension_numbers<[1], [0], [0], [1], [0, 0, 1, 1], [], []>} : vector<16x8xf32>, vector<8x16xf32>, vector<16x16xf32> -> vector<16x16xf32>
    %cst_47 = arith.constant 0.353553385 : f32
    %159 = vector.broadcast %cst_47 : f32 to vector<16x16xf32>
    %160 = arith.mulf %158, %159 : vector<16x16xf32>
    %cst_48 = arith.constant -1.000000e+30 : f32
    %161 = vector.broadcast %cst_48 : f32 to vector<16x16xf32>
    %162 = arith.select %33, %160, %161 : vector<16x16xi1>, vector<16x16xf32>
    %cst_49 = arith.constant dense<0xFF800000> : vector<16xf32>
    %163 = vector.multi_reduction <maximumf>, %162, %cst_49 [1] : vector<16x16xf32> to vector<16xf32>
    %164 = vector.shape_cast %163 : vector<16xf32> to vector<16x1xf32>
    %165 = vector.broadcast %164 : vector<16x1xf32> to vector<16x16xf32>
    %166 = arith.subf %162, %165 : vector<16x16xf32>
    %167 = math.exp %166 : vector<16x16xf32>
    %cst_50 = arith.constant dense<0.000000e+00> : vector<16xf32>
    %168 = vector.multi_reduction <add>, %167, %cst_50 [1] : vector<16x16xf32> to vector<16xf32>
    %169 = vector.shape_cast %168 : vector<16xf32> to vector<16x1xf32>
    %170 = tpu.reciprocal %169 {approx = true} : vector<16x1xf32> -> vector<16x1xf32>
    %171 = vector.broadcast %170 : vector<16x1xf32> to vector<16x16xf32>
    %172 = arith.mulf %167, %171 : vector<16x16xf32>
    %cst_51 = arith.constant dense<0.000000e+00> : vector<16x8xf32>
    %173 = tpu.matmul %172, %156, %cst_51 {dimension_numbers = #tpu.dot_dimension_numbers<[1], [0], [0], [1], [0, 0, 1, 1], [], []>} : vector<16x16xf32>, vector<16x8xf32>, vector<16x8xf32> -> vector<16x8xf32>
    %174 = vector.extract_strided_slice %6 {offsets = [0, 56], sizes = [16, 8], strides = [1, 1]} : vector<16x128xf32> to vector<16x8xf32>
    %175 = vector.extract_strided_slice %7 {offsets = [0, 56], sizes = [16, 8], strides = [1, 1]} : vector<16x128xf32> to vector<16x8xf32>
    %176 = vector.extract_strided_slice %8 {offsets = [0, 56], sizes = [16, 8], strides = [1, 1]} : vector<16x128xf32> to vector<16x8xf32>
    %177 = tpu.transpose %175, [1, 0] : vector<16x8xf32> -> vector<8x16xf32>
    %cst_52 = arith.constant dense<0.000000e+00> : vector<16x16xf32>
    %178 = tpu.matmul %174, %177, %cst_52 {dimension_numbers = #tpu.dot_dimension_numbers<[1], [0], [0], [1], [0, 0, 1, 1], [], []>} : vector<16x8xf32>, vector<8x16xf32>, vector<16x16xf32> -> vector<16x16xf32>
    %cst_53 = arith.constant 0.353553385 : f32
    %179 = vector.broadcast %cst_53 : f32 to vector<16x16xf32>
    %180 = arith.mulf %178, %179 : vector<16x16xf32>
    %cst_54 = arith.constant -1.000000e+30 : f32
    %181 = vector.broadcast %cst_54 : f32 to vector<16x16xf32>
    %182 = arith.select %33, %180, %181 : vector<16x16xi1>, vector<16x16xf32>
    %cst_55 = arith.constant dense<0xFF800000> : vector<16xf32>
    %183 = vector.multi_reduction <maximumf>, %182, %cst_55 [1] : vector<16x16xf32> to vector<16xf32>
    %184 = vector.shape_cast %183 : vector<16xf32> to vector<16x1xf32>
    %185 = vector.broadcast %184 : vector<16x1xf32> to vector<16x16xf32>
    %186 = arith.subf %182, %185 : vector<16x16xf32>
    %187 = math.exp %186 : vector<16x16xf32>
    %cst_56 = arith.constant dense<0.000000e+00> : vector<16xf32>
    %188 = vector.multi_reduction <add>, %187, %cst_56 [1] : vector<16x16xf32> to vector<16xf32>
    %189 = vector.shape_cast %188 : vector<16xf32> to vector<16x1xf32>
    %190 = tpu.reciprocal %189 {approx = true} : vector<16x1xf32> -> vector<16x1xf32>
    %191 = vector.broadcast %190 : vector<16x1xf32> to vector<16x16xf32>
    %192 = arith.mulf %187, %191 : vector<16x16xf32>
    %cst_57 = arith.constant dense<0.000000e+00> : vector<16x8xf32>
    %193 = tpu.matmul %192, %176, %cst_57 {dimension_numbers = #tpu.dot_dimension_numbers<[1], [0], [0], [1], [0, 0, 1, 1], [], []>} : vector<16x16xf32>, vector<16x8xf32>, vector<16x8xf32> -> vector<16x8xf32>
    %194 = vector.extract_strided_slice %6 {offsets = [0, 64], sizes = [16, 8], strides = [1, 1]} : vector<16x128xf32> to vector<16x8xf32>
    %195 = vector.extract_strided_slice %7 {offsets = [0, 64], sizes = [16, 8], strides = [1, 1]} : vector<16x128xf32> to vector<16x8xf32>
    %196 = vector.extract_strided_slice %8 {offsets = [0, 64], sizes = [16, 8], strides = [1, 1]} : vector<16x128xf32> to vector<16x8xf32>
    %197 = tpu.transpose %195, [1, 0] : vector<16x8xf32> -> vector<8x16xf32>
    %cst_58 = arith.constant dense<0.000000e+00> : vector<16x16xf32>
    %198 = tpu.matmul %194, %197, %cst_58 {dimension_numbers = #tpu.dot_dimension_numbers<[1], [0], [0], [1], [0, 0, 1, 1], [], []>} : vector<16x8xf32>, vector<8x16xf32>, vector<16x16xf32> -> vector<16x16xf32>
    %cst_59 = arith.constant 0.353553385 : f32
    %199 = vector.broadcast %cst_59 : f32 to vector<16x16xf32>
    %200 = arith.mulf %198, %199 : vector<16x16xf32>
    %cst_60 = arith.constant -1.000000e+30 : f32
    %201 = vector.broadcast %cst_60 : f32 to vector<16x16xf32>
    %202 = arith.select %33, %200, %201 : vector<16x16xi1>, vector<16x16xf32>
    %cst_61 = arith.constant dense<0xFF800000> : vector<16xf32>
    %203 = vector.multi_reduction <maximumf>, %202, %cst_61 [1] : vector<16x16xf32> to vector<16xf32>
    %204 = vector.shape_cast %203 : vector<16xf32> to vector<16x1xf32>
    %205 = vector.broadcast %204 : vector<16x1xf32> to vector<16x16xf32>
    %206 = arith.subf %202, %205 : vector<16x16xf32>
    %207 = math.exp %206 : vector<16x16xf32>
    %cst_62 = arith.constant dense<0.000000e+00> : vector<16xf32>
    %208 = vector.multi_reduction <add>, %207, %cst_62 [1] : vector<16x16xf32> to vector<16xf32>
    %209 = vector.shape_cast %208 : vector<16xf32> to vector<16x1xf32>
    %210 = tpu.reciprocal %209 {approx = true} : vector<16x1xf32> -> vector<16x1xf32>
    %211 = vector.broadcast %210 : vector<16x1xf32> to vector<16x16xf32>
    %212 = arith.mulf %207, %211 : vector<16x16xf32>
    %cst_63 = arith.constant dense<0.000000e+00> : vector<16x8xf32>
    %213 = tpu.matmul %212, %196, %cst_63 {dimension_numbers = #tpu.dot_dimension_numbers<[1], [0], [0], [1], [0, 0, 1, 1], [], []>} : vector<16x16xf32>, vector<16x8xf32>, vector<16x8xf32> -> vector<16x8xf32>
    %214 = vector.extract_strided_slice %6 {offsets = [0, 72], sizes = [16, 8], strides = [1, 1]} : vector<16x128xf32> to vector<16x8xf32>
    %215 = vector.extract_strided_slice %7 {offsets = [0, 72], sizes = [16, 8], strides = [1, 1]} : vector<16x128xf32> to vector<16x8xf32>
    %216 = vector.extract_strided_slice %8 {offsets = [0, 72], sizes = [16, 8], strides = [1, 1]} : vector<16x128xf32> to vector<16x8xf32>
    %217 = tpu.transpose %215, [1, 0] : vector<16x8xf32> -> vector<8x16xf32>
    %cst_64 = arith.constant dense<0.000000e+00> : vector<16x16xf32>
    %218 = tpu.matmul %214, %217, %cst_64 {dimension_numbers = #tpu.dot_dimension_numbers<[1], [0], [0], [1], [0, 0, 1, 1], [], []>} : vector<16x8xf32>, vector<8x16xf32>, vector<16x16xf32> -> vector<16x16xf32>
    %cst_65 = arith.constant 0.353553385 : f32
    %219 = vector.broadcast %cst_65 : f32 to vector<16x16xf32>
    %220 = arith.mulf %218, %219 : vector<16x16xf32>
    %cst_66 = arith.constant -1.000000e+30 : f32
    %221 = vector.broadcast %cst_66 : f32 to vector<16x16xf32>
    %222 = arith.select %33, %220, %221 : vector<16x16xi1>, vector<16x16xf32>
    %cst_67 = arith.constant dense<0xFF800000> : vector<16xf32>
    %223 = vector.multi_reduction <maximumf>, %222, %cst_67 [1] : vector<16x16xf32> to vector<16xf32>
    %224 = vector.shape_cast %223 : vector<16xf32> to vector<16x1xf32>
    %225 = vector.broadcast %224 : vector<16x1xf32> to vector<16x16xf32>
    %226 = arith.subf %222, %225 : vector<16x16xf32>
    %227 = math.exp %226 : vector<16x16xf32>
    %cst_68 = arith.constant dense<0.000000e+00> : vector<16xf32>
    %228 = vector.multi_reduction <add>, %227, %cst_68 [1] : vector<16x16xf32> to vector<16xf32>
    %229 = vector.shape_cast %228 : vector<16xf32> to vector<16x1xf32>
    %230 = tpu.reciprocal %229 {approx = true} : vector<16x1xf32> -> vector<16x1xf32>
    %231 = vector.broadcast %230 : vector<16x1xf32> to vector<16x16xf32>
    %232 = arith.mulf %227, %231 : vector<16x16xf32>
    %cst_69 = arith.constant dense<0.000000e+00> : vector<16x8xf32>
    %233 = tpu.matmul %232, %216, %cst_69 {dimension_numbers = #tpu.dot_dimension_numbers<[1], [0], [0], [1], [0, 0, 1, 1], [], []>} : vector<16x16xf32>, vector<16x8xf32>, vector<16x8xf32> -> vector<16x8xf32>
    %234 = vector.extract_strided_slice %6 {offsets = [0, 80], sizes = [16, 8], strides = [1, 1]} : vector<16x128xf32> to vector<16x8xf32>
    %235 = vector.extract_strided_slice %7 {offsets = [0, 80], sizes = [16, 8], strides = [1, 1]} : vector<16x128xf32> to vector<16x8xf32>
    %236 = vector.extract_strided_slice %8 {offsets = [0, 80], sizes = [16, 8], strides = [1, 1]} : vector<16x128xf32> to vector<16x8xf32>
    %237 = tpu.transpose %235, [1, 0] : vector<16x8xf32> -> vector<8x16xf32>
    %cst_70 = arith.constant dense<0.000000e+00> : vector<16x16xf32>
    %238 = tpu.matmul %234, %237, %cst_70 {dimension_numbers = #tpu.dot_dimension_numbers<[1], [0], [0], [1], [0, 0, 1, 1], [], []>} : vector<16x8xf32>, vector<8x16xf32>, vector<16x16xf32> -> vector<16x16xf32>
    %cst_71 = arith.constant 0.353553385 : f32
    %239 = vector.broadcast %cst_71 : f32 to vector<16x16xf32>
    %240 = arith.mulf %238, %239 : vector<16x16xf32>
    %cst_72 = arith.constant -1.000000e+30 : f32
    %241 = vector.broadcast %cst_72 : f32 to vector<16x16xf32>
    %242 = arith.select %33, %240, %241 : vector<16x16xi1>, vector<16x16xf32>
    %cst_73 = arith.constant dense<0xFF800000> : vector<16xf32>
    %243 = vector.multi_reduction <maximumf>, %242, %cst_73 [1] : vector<16x16xf32> to vector<16xf32>
    %244 = vector.shape_cast %243 : vector<16xf32> to vector<16x1xf32>
    %245 = vector.broadcast %244 : vector<16x1xf32> to vector<16x16xf32>
    %246 = arith.subf %242, %245 : vector<16x16xf32>
    %247 = math.exp %246 : vector<16x16xf32>
    %cst_74 = arith.constant dense<0.000000e+00> : vector<16xf32>
    %248 = vector.multi_reduction <add>, %247, %cst_74 [1] : vector<16x16xf32> to vector<16xf32>
    %249 = vector.shape_cast %248 : vector<16xf32> to vector<16x1xf32>
    %250 = tpu.reciprocal %249 {approx = true} : vector<16x1xf32> -> vector<16x1xf32>
    %251 = vector.broadcast %250 : vector<16x1xf32> to vector<16x16xf32>
    %252 = arith.mulf %247, %251 : vector<16x16xf32>
    %cst_75 = arith.constant dense<0.000000e+00> : vector<16x8xf32>
    %253 = tpu.matmul %252, %236, %cst_75 {dimension_numbers = #tpu.dot_dimension_numbers<[1], [0], [0], [1], [0, 0, 1, 1], [], []>} : vector<16x16xf32>, vector<16x8xf32>, vector<16x8xf32> -> vector<16x8xf32>
    %254 = vector.extract_strided_slice %6 {offsets = [0, 88], sizes = [16, 8], strides = [1, 1]} : vector<16x128xf32> to vector<16x8xf32>
    %255 = vector.extract_strided_slice %7 {offsets = [0, 88], sizes = [16, 8], strides = [1, 1]} : vector<16x128xf32> to vector<16x8xf32>
    %256 = vector.extract_strided_slice %8 {offsets = [0, 88], sizes = [16, 8], strides = [1, 1]} : vector<16x128xf32> to vector<16x8xf32>
    %257 = tpu.transpose %255, [1, 0] : vector<16x8xf32> -> vector<8x16xf32>
    %cst_76 = arith.constant dense<0.000000e+00> : vector<16x16xf32>
    %258 = tpu.matmul %254, %257, %cst_76 {dimension_numbers = #tpu.dot_dimension_numbers<[1], [0], [0], [1], [0, 0, 1, 1], [], []>} : vector<16x8xf32>, vector<8x16xf32>, vector<16x16xf32> -> vector<16x16xf32>
    %cst_77 = arith.constant 0.353553385 : f32
    %259 = vector.broadcast %cst_77 : f32 to vector<16x16xf32>
    %260 = arith.mulf %258, %259 : vector<16x16xf32>
    %cst_78 = arith.constant -1.000000e+30 : f32
    %261 = vector.broadcast %cst_78 : f32 to vector<16x16xf32>
    %262 = arith.select %33, %260, %261 : vector<16x16xi1>, vector<16x16xf32>
    %cst_79 = arith.constant dense<0xFF800000> : vector<16xf32>
    %263 = vector.multi_reduction <maximumf>, %262, %cst_79 [1] : vector<16x16xf32> to vector<16xf32>
    %264 = vector.shape_cast %263 : vector<16xf32> to vector<16x1xf32>
    %265 = vector.broadcast %264 : vector<16x1xf32> to vector<16x16xf32>
    %266 = arith.subf %262, %265 : vector<16x16xf32>
    %267 = math.exp %266 : vector<16x16xf32>
    %cst_80 = arith.constant dense<0.000000e+00> : vector<16xf32>
    %268 = vector.multi_reduction <add>, %267, %cst_80 [1] : vector<16x16xf32> to vector<16xf32>
    %269 = vector.shape_cast %268 : vector<16xf32> to vector<16x1xf32>
    %270 = tpu.reciprocal %269 {approx = true} : vector<16x1xf32> -> vector<16x1xf32>
    %271 = vector.broadcast %270 : vector<16x1xf32> to vector<16x16xf32>
    %272 = arith.mulf %267, %271 : vector<16x16xf32>
    %cst_81 = arith.constant dense<0.000000e+00> : vector<16x8xf32>
    %273 = tpu.matmul %272, %256, %cst_81 {dimension_numbers = #tpu.dot_dimension_numbers<[1], [0], [0], [1], [0, 0, 1, 1], [], []>} : vector<16x16xf32>, vector<16x8xf32>, vector<16x8xf32> -> vector<16x8xf32>
    %274 = vector.extract_strided_slice %6 {offsets = [0, 96], sizes = [16, 8], strides = [1, 1]} : vector<16x128xf32> to vector<16x8xf32>
    %275 = vector.extract_strided_slice %7 {offsets = [0, 96], sizes = [16, 8], strides = [1, 1]} : vector<16x128xf32> to vector<16x8xf32>
    %276 = vector.extract_strided_slice %8 {offsets = [0, 96], sizes = [16, 8], strides = [1, 1]} : vector<16x128xf32> to vector<16x8xf32>
    %277 = tpu.transpose %275, [1, 0] : vector<16x8xf32> -> vector<8x16xf32>
    %cst_82 = arith.constant dense<0.000000e+00> : vector<16x16xf32>
    %278 = tpu.matmul %274, %277, %cst_82 {dimension_numbers = #tpu.dot_dimension_numbers<[1], [0], [0], [1], [0, 0, 1, 1], [], []>} : vector<16x8xf32>, vector<8x16xf32>, vector<16x16xf32> -> vector<16x16xf32>
    %cst_83 = arith.constant 0.353553385 : f32
    %279 = vector.broadcast %cst_83 : f32 to vector<16x16xf32>
    %280 = arith.mulf %278, %279 : vector<16x16xf32>
    %cst_84 = arith.constant -1.000000e+30 : f32
    %281 = vector.broadcast %cst_84 : f32 to vector<16x16xf32>
    %282 = arith.select %33, %280, %281 : vector<16x16xi1>, vector<16x16xf32>
    %cst_85 = arith.constant dense<0xFF800000> : vector<16xf32>
    %283 = vector.multi_reduction <maximumf>, %282, %cst_85 [1] : vector<16x16xf32> to vector<16xf32>
    %284 = vector.shape_cast %283 : vector<16xf32> to vector<16x1xf32>
    %285 = vector.broadcast %284 : vector<16x1xf32> to vector<16x16xf32>
    %286 = arith.subf %282, %285 : vector<16x16xf32>
    %287 = math.exp %286 : vector<16x16xf32>
    %cst_86 = arith.constant dense<0.000000e+00> : vector<16xf32>
    %288 = vector.multi_reduction <add>, %287, %cst_86 [1] : vector<16x16xf32> to vector<16xf32>
    %289 = vector.shape_cast %288 : vector<16xf32> to vector<16x1xf32>
    %290 = tpu.reciprocal %289 {approx = true} : vector<16x1xf32> -> vector<16x1xf32>
    %291 = vector.broadcast %290 : vector<16x1xf32> to vector<16x16xf32>
    %292 = arith.mulf %287, %291 : vector<16x16xf32>
    %cst_87 = arith.constant dense<0.000000e+00> : vector<16x8xf32>
    %293 = tpu.matmul %292, %276, %cst_87 {dimension_numbers = #tpu.dot_dimension_numbers<[1], [0], [0], [1], [0, 0, 1, 1], [], []>} : vector<16x16xf32>, vector<16x8xf32>, vector<16x8xf32> -> vector<16x8xf32>
    %294 = vector.extract_strided_slice %6 {offsets = [0, 104], sizes = [16, 8], strides = [1, 1]} : vector<16x128xf32> to vector<16x8xf32>
    %295 = vector.extract_strided_slice %7 {offsets = [0, 104], sizes = [16, 8], strides = [1, 1]} : vector<16x128xf32> to vector<16x8xf32>
    %296 = vector.extract_strided_slice %8 {offsets = [0, 104], sizes = [16, 8], strides = [1, 1]} : vector<16x128xf32> to vector<16x8xf32>
    %297 = tpu.transpose %295, [1, 0] : vector<16x8xf32> -> vector<8x16xf32>
    %cst_88 = arith.constant dense<0.000000e+00> : vector<16x16xf32>
    %298 = tpu.matmul %294, %297, %cst_88 {dimension_numbers = #tpu.dot_dimension_numbers<[1], [0], [0], [1], [0, 0, 1, 1], [], []>} : vector<16x8xf32>, vector<8x16xf32>, vector<16x16xf32> -> vector<16x16xf32>
    %cst_89 = arith.constant 0.353553385 : f32
    %299 = vector.broadcast %cst_89 : f32 to vector<16x16xf32>
    %300 = arith.mulf %298, %299 : vector<16x16xf32>
    %cst_90 = arith.constant -1.000000e+30 : f32
    %301 = vector.broadcast %cst_90 : f32 to vector<16x16xf32>
    %302 = arith.select %33, %300, %301 : vector<16x16xi1>, vector<16x16xf32>
    %cst_91 = arith.constant dense<0xFF800000> : vector<16xf32>
    %303 = vector.multi_reduction <maximumf>, %302, %cst_91 [1] : vector<16x16xf32> to vector<16xf32>
    %304 = vector.shape_cast %303 : vector<16xf32> to vector<16x1xf32>
    %305 = vector.broadcast %304 : vector<16x1xf32> to vector<16x16xf32>
    %306 = arith.subf %302, %305 : vector<16x16xf32>
    %307 = math.exp %306 : vector<16x16xf32>
    %cst_92 = arith.constant dense<0.000000e+00> : vector<16xf32>
    %308 = vector.multi_reduction <add>, %307, %cst_92 [1] : vector<16x16xf32> to vector<16xf32>
    %309 = vector.shape_cast %308 : vector<16xf32> to vector<16x1xf32>
    %310 = tpu.reciprocal %309 {approx = true} : vector<16x1xf32> -> vector<16x1xf32>
    %311 = vector.broadcast %310 : vector<16x1xf32> to vector<16x16xf32>
    %312 = arith.mulf %307, %311 : vector<16x16xf32>
    %cst_93 = arith.constant dense<0.000000e+00> : vector<16x8xf32>
    %313 = tpu.matmul %312, %296, %cst_93 {dimension_numbers = #tpu.dot_dimension_numbers<[1], [0], [0], [1], [0, 0, 1, 1], [], []>} : vector<16x16xf32>, vector<16x8xf32>, vector<16x8xf32> -> vector<16x8xf32>
    %314 = vector.extract_strided_slice %6 {offsets = [0, 112], sizes = [16, 8], strides = [1, 1]} : vector<16x128xf32> to vector<16x8xf32>
    %315 = vector.extract_strided_slice %7 {offsets = [0, 112], sizes = [16, 8], strides = [1, 1]} : vector<16x128xf32> to vector<16x8xf32>
    %316 = vector.extract_strided_slice %8 {offsets = [0, 112], sizes = [16, 8], strides = [1, 1]} : vector<16x128xf32> to vector<16x8xf32>
    %317 = tpu.transpose %315, [1, 0] : vector<16x8xf32> -> vector<8x16xf32>
    %cst_94 = arith.constant dense<0.000000e+00> : vector<16x16xf32>
    %318 = tpu.matmul %314, %317, %cst_94 {dimension_numbers = #tpu.dot_dimension_numbers<[1], [0], [0], [1], [0, 0, 1, 1], [], []>} : vector<16x8xf32>, vector<8x16xf32>, vector<16x16xf32> -> vector<16x16xf32>
    %cst_95 = arith.constant 0.353553385 : f32
    %319 = vector.broadcast %cst_95 : f32 to vector<16x16xf32>
    %320 = arith.mulf %318, %319 : vector<16x16xf32>
    %cst_96 = arith.constant -1.000000e+30 : f32
    %321 = vector.broadcast %cst_96 : f32 to vector<16x16xf32>
    %322 = arith.select %33, %320, %321 : vector<16x16xi1>, vector<16x16xf32>
    %cst_97 = arith.constant dense<0xFF800000> : vector<16xf32>
    %323 = vector.multi_reduction <maximumf>, %322, %cst_97 [1] : vector<16x16xf32> to vector<16xf32>
    %324 = vector.shape_cast %323 : vector<16xf32> to vector<16x1xf32>
    %325 = vector.broadcast %324 : vector<16x1xf32> to vector<16x16xf32>
    %326 = arith.subf %322, %325 : vector<16x16xf32>
    %327 = math.exp %326 : vector<16x16xf32>
    %cst_98 = arith.constant dense<0.000000e+00> : vector<16xf32>
    %328 = vector.multi_reduction <add>, %327, %cst_98 [1] : vector<16x16xf32> to vector<16xf32>
    %329 = vector.shape_cast %328 : vector<16xf32> to vector<16x1xf32>
    %330 = tpu.reciprocal %329 {approx = true} : vector<16x1xf32> -> vector<16x1xf32>
    %331 = vector.broadcast %330 : vector<16x1xf32> to vector<16x16xf32>
    %332 = arith.mulf %327, %331 : vector<16x16xf32>
    %cst_99 = arith.constant dense<0.000000e+00> : vector<16x8xf32>
    %333 = tpu.matmul %332, %316, %cst_99 {dimension_numbers = #tpu.dot_dimension_numbers<[1], [0], [0], [1], [0, 0, 1, 1], [], []>} : vector<16x16xf32>, vector<16x8xf32>, vector<16x8xf32> -> vector<16x8xf32>
    %334 = vector.extract_strided_slice %6 {offsets = [0, 120], sizes = [16, 8], strides = [1, 1]} : vector<16x128xf32> to vector<16x8xf32>
    %335 = vector.extract_strided_slice %7 {offsets = [0, 120], sizes = [16, 8], strides = [1, 1]} : vector<16x128xf32> to vector<16x8xf32>
    %336 = vector.extract_strided_slice %8 {offsets = [0, 120], sizes = [16, 8], strides = [1, 1]} : vector<16x128xf32> to vector<16x8xf32>
    %337 = tpu.transpose %335, [1, 0] : vector<16x8xf32> -> vector<8x16xf32>
    %cst_100 = arith.constant dense<0.000000e+00> : vector<16x16xf32>
    %338 = tpu.matmul %334, %337, %cst_100 {dimension_numbers = #tpu.dot_dimension_numbers<[1], [0], [0], [1], [0, 0, 1, 1], [], []>} : vector<16x8xf32>, vector<8x16xf32>, vector<16x16xf32> -> vector<16x16xf32>
    %cst_101 = arith.constant 0.353553385 : f32
    %339 = vector.broadcast %cst_101 : f32 to vector<16x16xf32>
    %340 = arith.mulf %338, %339 : vector<16x16xf32>
    %cst_102 = arith.constant -1.000000e+30 : f32
    %341 = vector.broadcast %cst_102 : f32 to vector<16x16xf32>
    %342 = arith.select %33, %340, %341 : vector<16x16xi1>, vector<16x16xf32>
    %cst_103 = arith.constant dense<0xFF800000> : vector<16xf32>
    %343 = vector.multi_reduction <maximumf>, %342, %cst_103 [1] : vector<16x16xf32> to vector<16xf32>
    %344 = vector.shape_cast %343 : vector<16xf32> to vector<16x1xf32>
    %345 = vector.broadcast %344 : vector<16x1xf32> to vector<16x16xf32>
    %346 = arith.subf %342, %345 : vector<16x16xf32>
    %347 = math.exp %346 : vector<16x16xf32>
    %cst_104 = arith.constant dense<0.000000e+00> : vector<16xf32>
    %348 = vector.multi_reduction <add>, %347, %cst_104 [1] : vector<16x16xf32> to vector<16xf32>
    %349 = vector.shape_cast %348 : vector<16xf32> to vector<16x1xf32>
    %350 = tpu.reciprocal %349 {approx = true} : vector<16x1xf32> -> vector<16x1xf32>
    %351 = vector.broadcast %350 : vector<16x1xf32> to vector<16x16xf32>
    %352 = arith.mulf %347, %351 : vector<16x16xf32>
    %cst_105 = arith.constant dense<0.000000e+00> : vector<16x8xf32>
    %353 = tpu.matmul %352, %336, %cst_105 {dimension_numbers = #tpu.dot_dimension_numbers<[1], [0], [0], [1], [0, 0, 1, 1], [], []>} : vector<16x16xf32>, vector<16x8xf32>, vector<16x8xf32> -> vector<16x8xf32>
    %354 = tpu.concatenate %53, %73, %93, %113, %133, %153, %173, %193, %213, %233, %253, %273, %293, %313, %333, %353 in 1 : vector<16x8xf32>, vector<16x8xf32>, vector<16x8xf32>, vector<16x8xf32>, vector<16x8xf32>, vector<16x8xf32>, vector<16x8xf32>, vector<16x8xf32>, vector<16x8xf32>, vector<16x8xf32>, vector<16x8xf32>, vector<16x8xf32>, vector<16x8xf32>, vector<16x8xf32>, vector<16x8xf32>, vector<16x8xf32> -> vector<16x128xf32>
    %c0_106 = arith.constant 0 : index
    %c0_107 = arith.constant 0 : index
    %355 = vector.load %arg4[%c0_106, %c0_107] : memref<128x128xf32, #tpu.memory_space<vmem>>, vector<128x128xf32>
    %cst_108 = arith.constant dense<0.000000e+00> : vector<16x128xf32>
    %356 = tpu.matmul %354, %355, %cst_108 {dimension_numbers = #tpu.dot_dimension_numbers<[1], [0], [0], [1], [0, 0, 1, 1], [], []>} : vector<16x128xf32>, vector<128x128xf32>, vector<16x128xf32> -> vector<16x128xf32>
    %c0_109 = arith.constant 0 : index
    %c0_110 = arith.constant 0 : index
    %357 = vector.load %arg5[%c0_109, %c0_110] : memref<1x128xf32, #tpu.memory_space<vmem>>, vector<1x128xf32>
    %358 = vector.broadcast %357 : vector<1x128xf32> to vector<16x128xf32>
    %359 = arith.addf %356, %358 : vector<16x128xf32>
    %360 = arith.addf %0, %359 : vector<16x128xf32>
    %c0_111 = arith.constant 0 : index
    %c0_112 = arith.constant 0 : index
    %361 = vector.load %arg6[%c0_111, %c0_112] : memref<1x128xf32, #tpu.memory_space<vmem>>, vector<1x128xf32>
    %c0_113 = arith.constant 0 : index
    %c0_114 = arith.constant 0 : index
    %362 = vector.load %arg7[%c0_113, %c0_114] : memref<1x128xf32, #tpu.memory_space<vmem>>, vector<1x128xf32>
    %cst_115 = arith.constant dense<0.000000e+00> : vector<16xf32>
    %363 = vector.multi_reduction <add>, %360, %cst_115 [1] : vector<16x128xf32> to vector<16xf32>
    %364 = vector.shape_cast %363 : vector<16xf32> to vector<16x1xf32>
    %cst_116 = arith.constant 1.280000e+02 : f32
    %365 = vector.broadcast %cst_116 : f32 to vector<16x1xf32>
    %366 = arith.divf %364, %365 : vector<16x1xf32>
    %367 = vector.broadcast %366 : vector<16x1xf32> to vector<16x128xf32>
    %368 = arith.subf %360, %367 : vector<16x128xf32>
    %369 = arith.mulf %368, %368 : vector<16x128xf32>
    %cst_117 = arith.constant dense<0.000000e+00> : vector<16xf32>
    %370 = vector.multi_reduction <add>, %369, %cst_117 [1] : vector<16x128xf32> to vector<16xf32>
    %371 = vector.shape_cast %370 : vector<16xf32> to vector<16x1xf32>
    %cst_118 = arith.constant 1.280000e+02 : f32
    %372 = vector.broadcast %cst_118 : f32 to vector<16x1xf32>
    %373 = arith.divf %371, %372 : vector<16x1xf32>
    %374 = vector.broadcast %366 : vector<16x1xf32> to vector<16x128xf32>
    %375 = arith.subf %360, %374 : vector<16x128xf32>
    %cst_119 = arith.constant 9.99999996E-13 : f32
    %376 = vector.broadcast %cst_119 : f32 to vector<16x1xf32>
    %377 = arith.addf %373, %376 : vector<16x1xf32>
    %378 = math.rsqrt %377 : vector<16x1xf32>
    %379 = vector.broadcast %378 : vector<16x1xf32> to vector<16x128xf32>
    %380 = arith.mulf %375, %379 : vector<16x128xf32>
    %381 = vector.broadcast %361 : vector<1x128xf32> to vector<16x128xf32>
    %382 = arith.mulf %380, %381 : vector<16x128xf32>
    %383 = vector.broadcast %362 : vector<1x128xf32> to vector<16x128xf32>
    %384 = arith.addf %382, %383 : vector<16x128xf32>
    %c0_120 = arith.constant 0 : index
    %c0_121 = arith.constant 0 : index
    %385 = vector.load %arg8[%c0_120, %c0_121] : memref<128x256xf32, #tpu.memory_space<vmem>>, vector<128x256xf32>
    %cst_122 = arith.constant dense<0.000000e+00> : vector<16x256xf32>
    %386 = tpu.matmul %384, %385, %cst_122 {dimension_numbers = #tpu.dot_dimension_numbers<[1], [0], [0], [1], [0, 0, 1, 1], [], []>} : vector<16x128xf32>, vector<128x256xf32>, vector<16x256xf32> -> vector<16x256xf32>
    %c0_123 = arith.constant 0 : index
    %c0_124 = arith.constant 0 : index
    %387 = vector.load %arg9[%c0_123, %c0_124] : memref<1x256xf32, #tpu.memory_space<vmem>>, vector<1x256xf32>
    %388 = vector.broadcast %387 : vector<1x256xf32> to vector<16x256xf32>
    %389 = arith.addf %386, %388 : vector<16x256xf32>
    %cst_125 = arith.constant 5.000000e-01 : f32
    %390 = vector.broadcast %cst_125 : f32 to vector<16x256xf32>
    %391 = arith.mulf %390, %389 : vector<16x256xf32>
    %cst_126 = arith.constant 2.000000e+00 : f32
    %392 = math.sqrt %cst_126 : f32
    %393 = vector.broadcast %392 : f32 to vector<16x256xf32>
    %394 = arith.divf %389, %393 : vector<16x256xf32>
    %395 = math.erf %394 : vector<16x256xf32>
    %cst_127 = arith.constant 1.000000e+00 : f32
    %396 = vector.broadcast %cst_127 : f32 to vector<16x256xf32>
    %397 = arith.addf %396, %395 : vector<16x256xf32>
    %398 = arith.mulf %391, %397 : vector<16x256xf32>
    %c0_128 = arith.constant 0 : index
    %c0_129 = arith.constant 0 : index
    %399 = vector.load %arg10[%c0_128, %c0_129] : memref<256x128xf32, #tpu.memory_space<vmem>>, vector<256x128xf32>
    %cst_130 = arith.constant dense<0.000000e+00> : vector<16x128xf32>
    %400 = tpu.matmul %398, %399, %cst_130 {dimension_numbers = #tpu.dot_dimension_numbers<[1], [0], [0], [1], [0, 0, 1, 1], [], []>} : vector<16x256xf32>, vector<256x128xf32>, vector<16x128xf32> -> vector<16x128xf32>
    %c0_131 = arith.constant 0 : index
    %c0_132 = arith.constant 0 : index
    %401 = vector.load %arg11[%c0_131, %c0_132] : memref<1x128xf32, #tpu.memory_space<vmem>>, vector<1x128xf32>
    %402 = vector.broadcast %401 : vector<1x128xf32> to vector<16x128xf32>
    %403 = arith.addf %400, %402 : vector<16x128xf32>
    %404 = arith.addf %384, %403 : vector<16x128xf32>
    %c0_133 = arith.constant 0 : index
    %c0_134 = arith.constant 0 : index
    %405 = vector.load %arg12[%c0_133, %c0_134] : memref<1x128xf32, #tpu.memory_space<vmem>>, vector<1x128xf32>
    %c0_135 = arith.constant 0 : index
    %c0_136 = arith.constant 0 : index
    %406 = vector.load %arg13[%c0_135, %c0_136] : memref<1x128xf32, #tpu.memory_space<vmem>>, vector<1x128xf32>
    %cst_137 = arith.constant dense<0.000000e+00> : vector<16xf32>
    %407 = vector.multi_reduction <add>, %404, %cst_137 [1] : vector<16x128xf32> to vector<16xf32>
    %408 = vector.shape_cast %407 : vector<16xf32> to vector<16x1xf32>
    %cst_138 = arith.constant 1.280000e+02 : f32
    %409 = vector.broadcast %cst_138 : f32 to vector<16x1xf32>
    %410 = arith.divf %408, %409 : vector<16x1xf32>
    %411 = vector.broadcast %410 : vector<16x1xf32> to vector<16x128xf32>
    %412 = arith.subf %404, %411 : vector<16x128xf32>
    %413 = arith.mulf %412, %412 : vector<16x128xf32>
    %cst_139 = arith.constant dense<0.000000e+00> : vector<16xf32>
    %414 = vector.multi_reduction <add>, %413, %cst_139 [1] : vector<16x128xf32> to vector<16xf32>
    %415 = vector.shape_cast %414 : vector<16xf32> to vector<16x1xf32>
    %cst_140 = arith.constant 1.280000e+02 : f32
    %416 = vector.broadcast %cst_140 : f32 to vector<16x1xf32>
    %417 = arith.divf %415, %416 : vector<16x1xf32>
    %418 = vector.broadcast %410 : vector<16x1xf32> to vector<16x128xf32>
    %419 = arith.subf %404, %418 : vector<16x128xf32>
    %cst_141 = arith.constant 9.99999996E-13 : f32
    %420 = vector.broadcast %cst_141 : f32 to vector<16x1xf32>
    %421 = arith.addf %417, %420 : vector<16x1xf32>
    %422 = math.rsqrt %421 : vector<16x1xf32>
    %423 = vector.broadcast %422 : vector<16x1xf32> to vector<16x128xf32>
    %424 = arith.mulf %419, %423 : vector<16x128xf32>
    %425 = vector.broadcast %405 : vector<1x128xf32> to vector<16x128xf32>
    %426 = arith.mulf %424, %425 : vector<16x128xf32>
    %427 = vector.broadcast %406 : vector<1x128xf32> to vector<16x128xf32>
    %428 = arith.addf %426, %427 : vector<16x128xf32>
    %c0_142 = arith.constant 0 : index
    %c0_143 = arith.constant 0 : index
    %429 = vector.load %arg14[%c0_142, %c0_143] : memref<16x128xf32, #tpu.memory_space<vmem>>, vector<16x128xf32>
    tpu.vector_store %arg14[%c0_142, %c0_143], %428 {strides = array<i32>} : memref<16x128xf32, #tpu.memory_space<vmem>>, vector<16x128xf32>,
    return
  }
  func.func @transform_0(%arg0: i32) -> (i32, i32) {
    %c0_i32 = arith.constant 0 : i32
    %c0_i32_0 = arith.constant 0 : i32
    %c0_i32_1 = arith.constant 0 : i32
    return %c0_i32, %c0_i32_0 : i32, i32
  }
  func.func @transform_1(%arg0: i32) -> (i32, i32) {
    %c0_i32 = arith.constant 0 : i32
    %c0_i32_0 = arith.constant 0 : i32
    %c0_i32_1 = arith.constant 0 : i32
    return %c0_i32, %c0_i32_0 : i32, i32
  }
  func.func @transform_2(%arg0: i32) -> (i32, i32) {
    %c0_i32 = arith.constant 0 : i32
    %c0_i32_0 = arith.constant 0 : i32
    %c0_i32_1 = arith.constant 0 : i32
    return %c0_i32, %c0_i32_0 : i32, i32
  }
  func.func @transform_3(%arg0: i32) -> (i32, i32) {
    %c0_i32 = arith.constant 0 : i32
    %c0_i32_0 = arith.constant 0 : i32
    %c0_i32_1 = arith.constant 0 : i32
    return %c0_i32, %c0_i32_0 : i32, i32
  }
  func.func @transform_4(%arg0: i32) -> (i32, i32) {
    %c0_i32 = arith.constant 0 : i32
    %c0_i32_0 = arith.constant 0 : i32
    %c0_i32_1 = arith.constant 0 : i32
    return %c0_i32, %c0_i32_0 : i32, i32
  }
  func.func @transform_5(%arg0: i32) -> (i32, i32) {
    %c0_i32 = arith.constant 0 : i32
    %c0_i32_0 = arith.constant 0 : i32
    %c0_i32_1 = arith.constant 0 : i32
    return %c0_i32, %c0_i32_0 : i32, i32
  }
  func.func @transform_6(%arg0: i32) -> (i32, i32) {
    %c0_i32 = arith.constant 0 : i32
    %c0_i32_0 = arith.constant 0 : i32
    %c0_i32_1 = arith.constant 0 : i32
    return %c0_i32, %c0_i32_0 : i32, i32
  }
  func.func @transform_7(%arg0: i32) -> (i32, i32) {
    %c0_i32 = arith.constant 0 : i32
    %c0_i32_0 = arith.constant 0 : i32
    %c0_i32_1 = arith.constant 0 : i32
    return %c0_i32, %c0_i32_0 : i32, i32
  }
  func.func @transform_8(%arg0: i32) -> (i32, i32) {
    %c0_i32 = arith.constant 0 : i32
    %c0_i32_0 = arith.constant 0 : i32
    %c0_i32_1 = arith.constant 0 : i32
    return %c0_i32, %c0_i32_0 : i32, i32
  }
  func.func @transform_9(%arg0: i32) -> (i32, i32) {
    %c0_i32 = arith.constant 0 : i32
    %c0_i32_0 = arith.constant 0 : i32
    %c0_i32_1 = arith.constant 0 : i32
    return %c0_i32, %c0_i32_0 : i32, i32
  }
  func.func @transform_10(%arg0: i32) -> (i32, i32) {
    %c0_i32 = arith.constant 0 : i32
    %c0_i32_0 = arith.constant 0 : i32
    %c0_i32_1 = arith.constant 0 : i32
    return %c0_i32, %c0_i32_0 : i32, i32
  }
  func.func @transform_11(%arg0: i32) -> (i32, i32) {
    %c0_i32 = arith.constant 0 : i32
    %c0_i32_0 = arith.constant 0 : i32
    %c0_i32_1 = arith.constant 0 : i32
    return %c0_i32, %c0_i32_0 : i32, i32
  }
  func.func @transform_12(%arg0: i32) -> (i32, i32) {
    %c0_i32 = arith.constant 0 : i32
    %c0_i32_0 = arith.constant 0 : i32
    %c0_i32_1 = arith.constant 0 : i32
    return %c0_i32, %c0_i32_0 : i32, i32
  }
  func.func @transform_13(%arg0: i32) -> (i32, i32) {
    %c0_i32 = arith.constant 0 : i32
    %c0_i32_0 = arith.constant 0 : i32
    %c0_i32_1 = arith.constant 0 : i32
    return %c0_i32, %c0_i32_0 : i32, i32
  }
}

</mosaic_0001>

<bundles_post_ra>
// kernel: tpu_custom_call.1
= control target key start
LH: loop header
LB: loop body
LE: loop exit
PB: predicated region body
PF: predicated region fallthrough
CT: control target
= control target key end

     0   :  { %18 = vsyncpa [#allocation3], 0  ;;  %s4280_s0 = inlined_call_operand.hbm [shape: f32[16,128], index: 0, kind: input, shape index: {}]   ;;  %s4281_s1 = inlined_call_operand.hbm [shape: f32[128,384], index: 1, kind: input, shape index: {}]   ;;  %s4282_s2 = inlined_call_operand.hbm [shape: f32[1,384], index: 2, kind: input, shape index: {}]   ;;  %s4283_s3 = inlined_call_operand.hbm [shape: f32[128,128], index: 3, kind: input, shape index: {}]   ;;  %s4284_s4 = inlined_call_operand.vmem [shape: f32[1,128], index: 4, kind: input, shape index: {}]   ;;  %s4285_s5 = inlined_call_operand.vmem [shape: f32[1,128], index: 5, kind: input, shape index: {}]   ;;  %s4286_s6 = inlined_call_operand.vmem [shape: f32[1,128], index: 6, kind: input, shape index: {}]   ;;  %s4287_s7 = inlined_call_operand.hbm [shape: f32[128,256], index: 7, kind: input, shape index: {}]   ;;  %s4288_s8 = inlined_call_operand.vmem [shape: f32[1,256], index: 8, kind: input, shape index: {}]   ;;  %s4289_s9 = inlined_call_operand.hbm [shape: f32[256,128], index: 9, kind: input, shape index: {}]   ;;  %s4290_s10 = inlined_call_operand.vmem [shape: f32[1,128], index: 10, kind: input, shape index: {}]   ;;  %s4291_s11 = inlined_call_operand.vmem [shape: f32[1,128], index: 11, kind: input, shape index: {}]   ;;  %s4292_s12 = inlined_call_operand.vmem [shape: f32[1,128], index: 12, kind: input, shape index: {}]   ;;  %s4293_s13 = inlined_call_operand.hbm [shape: f32[16,128], index: 13, kind: output, shape index: {}]  }
   0x1   :  { %19 = vsyncpa [#allocation6], 0 }
   0x2   :  { %20 = vsyncpa [#allocation9], 0 }
   0x3   :  { %21 = vsyncpa [#allocation12], 0  ;;  %s40_s27 = sshll.u32 %s4281_s1, 4  ;;  %s41_s27 = int_to_ptr.hbm [resolvable:$true] %s40_s27 }
   0x4   :  { %22 = vsyncpa [#allocation4], 0  ;;  %s3177_s28 = smov [#allocation5]   ;;  %s3178_s30 = smov 384  }
   0x5   :  { %s42_s29 = sshll.u32 %s3177_s28, 4  ;;  %s3179_s14 = smov 24   ;;  %s43_s29 = int_to_ptr.vmem [resolvable:$true] %s42_s29 }
   0x6   :  { %48 = dma.hbm_to_vmem [thread:$0]  %s41_s27, 6144, %s43_s29, [#allocation6], %s3178_s30, %s3178_s30, %s3179_s14  }
   0x7   :  { %s64_s17 = sshll.u32 %s4283_s3, 4  ;;  %s3180_s18 = smov [#allocation8]   ;;  %s65_s17 = int_to_ptr.hbm [resolvable:$true] %s64_s17 }
   0x8   :  { %s66_s19 = sshll.u32 %s3180_s18, 4  ;;  %s27_s1 = sshll.u32 %s4280_s0, 4  ;;  %s67_s19 = int_to_ptr.vmem [resolvable:$true] %s66_s19  ;;  %s28_s1 = int_to_ptr.hbm [resolvable:$true] %s27_s1 }
   0x9   :  { %s3181_s22 = smov 128   ;;  %s3182_s23 = smov 8  }
   0xa   :  { %72 = dma.hbm_to_vmem [thread:$0]  %s65_s17, 2048, %s67_s19, [#allocation9], %s3181_s22, %s3181_s22, %s3182_s23  }
   0xb   :  { %s54_s26 = sshll.u32 %s4282_s2, 4  ;;  %s3183_s3 = smov [#allocation2]   ;;  %s55_s26 = int_to_ptr.hbm [resolvable:$true] %s54_s26 }
   0xc   :  { %s29_s27 = sshll.u32 %s3183_s3, 4  ;;  %s3184_s0 = smov [#allocation7]   ;;  %s30_s27 = int_to_ptr.vmem [resolvable:$true] %s29_s27 }
   0xd   :  { %35 = dma.hbm_to_vmem [thread:$0]  %s28_s1, 256, %s30_s27, [#allocation3], %s3181_s22, %s3181_s22, %s3182_s23  }
   0xe   :  { %s56_s28 = sshll.u32 %s3184_s0, 4  ;;  %s83_s15 = sshll.u32 %s4287_s7, 4  ;;  %s57_s28 = int_to_ptr.vmem [resolvable:$true] %s56_s28  ;;  %s84_s15 = int_to_ptr.hbm [resolvable:$true] %s83_s15 }
   0xf   :  { %59 = dma.hbm_to_vmem [thread:$0]  %s55_s26, 48, %s57_s28, [#allocation6]  }
  0x10   :  { %s3185_s16 = smov [#allocation10]   ;;  %s98_s19 = sshll.u32 %s4289_s9, 4  ;;  %s99_s19 = int_to_ptr.hbm [resolvable:$true] %s98_s19 }
  0x11   :  { %s85_s17 = sshll.u32 %s3185_s16, 4  ;;  %s3186_s20 = smov 256   ;;  %s86_s17 = int_to_ptr.vmem [resolvable:$true] %s85_s17 }
  0x12   :  { %s3187_s21 = smov 16   ;;  %s3188_s1 = smov [#allocation11]  }
  0x13   :  { %91 = dma.hbm_to_vmem [thread:$0]  %s84_s15, 4096, %s86_s17, [#allocation9], %s3186_s20, %s3186_s20, %s3187_s21  }
  0x14   :  { %s100_s24 = sshll.u32 %s3188_s1, 4  ;;  %s101_s24 = int_to_ptr.vmem [resolvable:$true] %s100_s24 }
  0x15   :  { %106 = dma.hbm_to_vmem [thread:$0]  %s99_s19, 4096, %s101_s24, [#allocation12], %s3181_s22, %s3181_s22, %s3182_s23  }
  0x16   :  { %3167 = dma.done.wait [#allocation3], 256  }
  0x17   :  { %3168 = vsyncadd [#allocation3], 4294967040 }
  0x18   :  { %3169 = dma.done.wait [#allocation6], 6192  }
  0x19   :  { %3170 = vsyncadd [#allocation6], 4294961104 }
  0x1a   :  { %3171 = dma.done.wait [#allocation9], 6144  }
  0x1b   :  { %3172 = vsyncadd [#allocation9], 4294961152 }
  0x1c   :  { %3173 = dma.done.wait [#allocation12], 4096  }
  0x1d   :  { %3174 = vsyncadd [#allocation12], 4294963200  ;;  %v184_v0 = vld [vmem:[#allocation5 + $0x168] sm:$0xff]  ;;  %v185_v1 = vld [vmem:[#allocation5 + $0x170] sm:$0xff]  ;;  %s3189_s7 = smov 120   ;;  %s3190_s9 = smov 104  }
  0x1e   :  { %v181_v2 = vld [vmem:[#allocation5 + $0x150] sm:$0xff]  ;;  %195 = vmatpush.msra.mxu0 %v184_v0  ;;  %218 = vmatpush.msra.mxu1 %v185_v1  ;;  %v182_v3 = vld [vmem:[#allocation5 + $0x158] sm:$0xff]  ;;  %v179_v5 = vld [vmem:[#allocation5 + $0x140] sm:$0xff]  ;;  %vm293_vm0 = vcmask 64512   ;;  %s3191_s25 = smov 112   ;;  %s3192_s26 = smov 88  }
  0x1f   :  { %v178_v4 = vld [vmem:[#allocation5 + $0x138] sm:$0xff]  ;;  %v175_v6 = vld [vmem:[#allocation5 + $0x120] sm:$0xff]  ;;  %v176_v7 = vld [vmem:[#allocation5 + $0x128] sm:$0xff]  ;;  %s3193_s3 = smov 96   ;;  %s3194_s27 = smov 72   ;;  %vm333_vm2 = vcmask 130048  }
  0x20   :  { %196 = vmatpush.msra.mxu0 %v181_v2  ;;  %219 = vmatpush.msra.mxu1 %v182_v3  ;;  %v172_v8 = vld [vmem:[#allocation5 + $0x108] sm:$0xff]  ;;  %v173_v9 = vld [vmem:[#allocation5 + $0x110] sm:$0xff]  ;;  %v170_v11 = vld [vmem:[#allocation5 + $0xf8] sm:$0xff]  ;;  %s3195_s0 = smov 80   ;;  %s3196_s28 = smov 64   ;;  %vm2011_vm6 = vcmask 195584  }
  0x21   :  { %v169_v10 = vld [vmem:[#allocation5 + $0xf0] sm:$0xff]  ;;  %v166_v12 = vld [vmem:[#allocation5 + $0xd8] sm:$0xff]  ;;  %v167_v13 = vld [vmem:[#allocation5 + $0xe0] sm:$0xff]  ;;  %s3197_s29 = smov 56   ;;  %s3198_s30 = smov 48   ;;  %vm2014_vm7 = vcmask 261120  }
  0x22   :  { %197 = vmatpush.msra.mxu0 %v178_v4  ;;  %220 = vmatpush.msra.mxu1 %v179_v5  ;;  %v186_v14 = vld [vmem:[#allocation5 + $0x178] sm:$0xff]  ;;  %v183_v15 = vld [vmem:[#allocation5 + $0x160] sm:$0xff]  ;;  %v164_v17 = vld [vmem:[#allocation5 + $0xc8] sm:$0xff]  ;;  %s3199_s15 = smov 40   ;;  %s3200_s16 = smov 32   ;;  %vm2017_vm8 = vcmask 326656  }
  0x23   :  { %v163_v16 = vld [vmem:[#allocation5 + $0xc0] sm:$0xff]  ;;  %241 = vmatpush.msra.mxu2 %v186_v14  ;;  %v180_v18 = vld [vmem:[#allocation5 + $0x148] sm:$0xff]  ;;  %v161_v20 = vld [vmem:[#allocation5 + $0xb0] sm:$0xff]  ;;  %vm2020_vm9 = vcmask 392192   ;;  %vm2023_vm10 = vcmask 457728   ;;  %vm2026_vm11 = vcmask 523264  }
  0x24   :  { %198 = vmatpush.msra.mxu0 %v175_v6  ;;  %221 = vmatpush.msra.mxu1 %v176_v7  ;;  %v160_v19 = vld [vmem:[#allocation5 + $0xa8] sm:$0xff]  ;;  %v157_v21 = vld [vmem:[#allocation5 + $0x90] sm:$0xff]  ;;  %v158_v23 = vld [vmem:[#allocation5 + $0x98] sm:$0xff]  ;;  %vm2029_vm12 = vcmask 588800   ;;  %vm2032_vm13 = vcmask 654336   ;;  %vm2035_vm14 = vcmask 719872  }
  0x25   :  { %242 = vmatpush.msra.mxu2 %v183_v15  ;;  %v177_v22 = vld [vmem:[#allocation5 + $0x130] sm:$0xff]  ;;  %v154_v24 = vld [vmem:[#allocation5 + $0x78] sm:$0xff]  ;;  %v155_v25 = vld [vmem:[#allocation5 + $0x80] sm:$0xff]  ;;  %v267_v15 = vlaneseq  ;;  %vm2038_vm15 = vcmask 785408  }
  0x26   :  { %199 = vmatpush.msra.mxu0 %v172_v8  ;;  %222 = vmatpush.msra.mxu1 %v173_v9  ;;  %v174_v26 = vld [vmem:[#allocation5 + $0x118] sm:$0xff]  ;;  %v171_v27 = vld [vmem:[#allocation5 + $0x100] sm:$0xff]  ;;  %v152_v29 = vld [vmem:[#allocation5 + $0x68] sm:$0xff] }
  0x27   :  { %243 = vmatpush.msra.mxu2 %v180_v18  ;;  %v151_v28 = vld [vmem:[#allocation5 + $0x60] sm:$0xff]  ;;  %v168_v30 = vld [vmem:[#allocation5 + $0xe8] sm:$0xff]  ;;  %v149_v32 = vld [vmem:[#allocation5 + $0x50] sm:$0xff] }
  0x28   :  { %200 = vmatpush.msra.mxu0 %v169_v10  ;;  %223 = vmatpush.msra.mxu1 %v170_v11  ;;  %v148_v31 = vld [vmem:[#allocation5 + $0x48] sm:$0xff]  ;;  %v165_v33 = vld [vmem:[#allocation5 + $0xd0] sm:$0xff]  ;;  %v146_v35 = vld [vmem:[#allocation5 + $0x38] sm:$0xff] }
  0x29   :  { %244 = vmatpush.msra.mxu2 %v177_v22  ;;  %v145_v34 = vld [vmem:[#allocation5 + $0x30] sm:$0xff]  ;;  %v162_v36 = vld [vmem:[#allocation5 + $0xb8] sm:$0xff]  ;;  %v143_v38 = vld [vmem:[#allocation5 + $0x20] sm:$0xff] }
  0x2a   :  { %201 = vmatpush.msra.mxu0 %v166_v12  ;;  %224 = vmatpush.msra.mxu1 %v167_v13  ;;  %v142_v37 = vld [vmem:[#allocation5 + $0x18] sm:$0xff]  ;;  %v159_v39 = vld [vmem:[#allocation5 + $0xa0] sm:$0xff]  ;;  %v140_v41 = vld [vmem:[#allocation5 + $0x8] sm:$0xff] }
  0x2b   :  { %245 = vmatpush.msra.mxu2 %v174_v26  ;;  %v139_v40 = vld [vmem:[#allocation5] sm:$0xff]  ;;  %v137_v42 = vld [vmem:[#allocation2] sm:$0xff]  ;;  %v156_v43 = vld [vmem:[#allocation5 + $0x88] sm:$0xff] }
  0x2c   :  { %202 = vmatpush.msra.mxu0 %v163_v16  ;;  %225 = vmatpush.msra.mxu1 %v164_v17  ;;  %v153_v44 = vld [vmem:[#allocation5 + $0x70] sm:$0xff]  ;;  %v150_v45 = vld [vmem:[#allocation5 + $0x58] sm:$0xff]  ;;  %v147_v46 = vld [vmem:[#allocation5 + $0x40] sm:$0xff]  ;;  %v3427_v17 = vand.u32 127, %v267_v15 }
  0x2d   :  { %246 = vmatpush.msra.mxu2 %v171_v27  ;;  %v138_v47 = vld [vmem:[#allocation2 + $0x8] sm:$0xff]  ;;  %v144_v48 = vld [vmem:[#allocation5 + $0x28] sm:$0xff]  ;;  %v141_v49 = vld [vmem:[#allocation5 + $0x10] sm:$0xff] }
  0x2e   :  { %203 = vmatpush.msra.mxu0 %v160_v19  ;;  %226 = vmatpush.msra.mxu1 %v161_v20  ;;  %v3303_v50 = vld [vmem:[#allocation7] sm:$0x7]  ;;  %vm276_vm1 = vcmp.lt.s32.totalorder %v3427_v17, 8  ;;  %vm286_vm3 = vcmp.ge.s32.totalorder %v3427_v17, 8  ;;  %vm287_vm4 = vcmp.lt.s32.totalorder %v3427_v17, 16 }
  0x2f   :  { %247 = vmatpush.msra.mxu2 %v168_v30  ;;  %v189_v51 = vperm.slane %v3303_v50, 0  ;;  %v190_v52 = vperm.slane %v3303_v50, 1  ;;  %v191_v63 = vperm.slane %v3303_v50, 2  ;;  %vm3447_vm5 = vmand %vm286_vm3, %vm287_vm4 }
  0x30   :  { %204 = vmatpush.msra.mxu0 %v157_v21  ;;  %227 = vmatpush.msra.mxu1 %v158_v23 }
  0x31   :  { %248 = vmatpush.msra.mxu2 %v165_v33 }
  0x32   :  { %205 = vmatpush.msra.mxu0 %v154_v24  ;;  %228 = vmatpush.msra.mxu1 %v155_v25 }
  0x33   :  { %249 = vmatpush.msra.mxu2 %v162_v36 }
  0x34   :  { %206 = vmatpush.msra.mxu0 %v151_v28  ;;  %229 = vmatpush.msra.mxu1 %v152_v29 }
  0x35   :  { %250 = vmatpush.msra.mxu2 %v159_v39 }
  0x36   :  { %207 = vmatpush.msra.mxu0 %v148_v31  ;;  %230 = vmatpush.msra.mxu1 %v149_v32 }
  0x37   :  { %251 = vmatpush.msra.mxu2 %v156_v43 }
  0x38   :  { %208 = vmatpush.msra.mxu0 %v145_v34  ;;  %231 = vmatpush.msra.mxu1 %v146_v35 }
  0x39   :  { %252 = vmatpush.msra.mxu2 %v153_v44 }
  0x3a   :  { %209 = vmatpush.msra.mxu0 %v142_v37  ;;  %232 = vmatpush.msra.mxu1 %v143_v38 }
  0x3b   :  { %253 = vmatpush.msra.mxu2 %v150_v45 }
  0x3c   :  { %210 = vmatpush.msra.mxu0 %v139_v40  ;;  %233 = vmatpush.msra.mxu1 %v140_v41 }
  0x3d   :  { %211 = vmatmul.f32.vlgmr.msra.gmra.mxu0 %v137_v42  ;;  %234 = vmatmul.f32.vlgmr.msra.gmra.mxu1 %v137_v42 }
  0x3e   :  { %254 = vmatpush.msra.mxu2 %v147_v46 }
  0x40   :  { %255 = vmatpush.msra.mxu2 %v144_v48 }
  0x42   :  { %256 = vmatpush.msra.mxu2 %v141_v49 }
  0x43   :  { %257 = vmatmul.f32.vlgmr.msra.gmra.mxu2 %v137_v42 }
  0x45   :  { %237 = vmatmul.f32.gmra.mxu1 %v138_v47  ;;  %214 = vmatmul.f32.gmra.mxu0 %v138_v47 }
  0x4b   :  { %260 = vmatmul.f32.gmra.mxu2 %v138_v47 }
  0xba   :  { %v212_v53 = vpop.f32.mrf.mxu0  ;;  %v235_v54 = vpop.f32.mrf.mxu1 }
  0xbb   :  { %v3307_v55 = vadd.f32 %v212_v53, %v189_v51  ;;  %v3309_v56 = vadd.f32 %v235_v54, %v190_v52 }
  0xbd   :  { %389 = vrot.lane.b32.xlu2 %v3309_v56, %s3189_s7  ;;  %587 = vrot.lane.b32.xlu1 %v3307_v55, %s3190_s9 }
  0xbe   :  { %385 = vrot.lane.b32.xlu0 %v3307_v55, %s3189_s7 }
  0xc2   :  { %v238_v57 = vpop.f32.mrf.mxu1  ;;  %v215_v59 = vpop.f32.mrf.mxu0 }
  0xc3   :  { %v3317_v58 = vadd.f32 %v238_v57, %v190_v52  ;;  %v3337_v60 = vadd.f32 %v215_v59, %v189_v51 }
  0xc5   :  { %2581 = vmatpush.xpose.msk.msra.mxu3 %vm293_vm0, %v3317_v58  ;;  %491 = vrot.lane.b32.xlu2 %v3309_v56, %s3191_s25 }
  0xc6   :  { %791 = vrot.lane.b32.xlu1 %v3309_v56, %s3192_s26  ;;  %687 = vrot.lane.b32.xlu0 %v3307_v55, %s3193_s3  ;;  %v258_v62 = vpop.f32.mrf.mxu2 }
  0xc7   :  { %v3386_v2 = vadd.f32 %v258_v62, %v191_v63 }
  0xc9   :  { %2582 = vmatpush.xpose.msk.msra.mxu3 %vm293_vm0, %v3309_v56 }
  0xcc   :  { %2583 = vmatmul.msk.f32.vlgmr.msra.gmra.mxu3 %vm293_vm0, %v3307_v55 }
  0xcd   :  { %487 = vrot.lane.b32.xlu2 %v3307_v55, %s3191_s25 }
  0xce   :  { %493 = vrot.lane.b32.xlu1 %v3317_v58, %s3191_s25  ;;  %593 = vrot.lane.b32.xlu0 %v3317_v58, %s3190_s9  ;;  %v261_v1 = vpop.f32.mrf.mxu2 }
  0xcf   :  { %v3388_v3 = vadd.f32 %v261_v1, %v191_v63 }
  0xd1   :  { %376 = vmatpush.msrb.mxu3 %v3388_v3 }
  0xd3   :  { %377 = vmatpush.msrb.mxu3 %v3386_v2 }
  0xd4   :  { %2584 = vmatmul.msk.f32.gmra.mxu3 %vm293_vm0, %v3337_v60 }
  0xd5   :  { %591 = vrot.lane.b32.xlu2 %v3309_v56, %s3190_s9 }
  0xd6   :  { %693 = vrot.lane.b32.xlu1 %v3317_v58, %s3193_s3  ;;  %489 = vrot.lane.b32.xlu0 %v3337_v60, %s3191_s25 }
  0xdd   :  { %691 = vrot.lane.b32.xlu2 %v3309_v56, %s3193_s3 }
  0xde   :  { %689 = vrot.lane.b32.xlu1 %v3337_v60, %s3193_s3  ;;  %793 = vrot.lane.b32.xlu0 %v3317_v58, %s3192_s26 }
  0xe5   :  { %787 = vrot.lane.b32.xlu2 %v3307_v55, %s3192_s26 }
  0xe6   :  { %993 = vrot.lane.b32.xlu1 %v3317_v58, %s3194_s27 }
  0xed   :  { %391 = vrot.lane.b32.xlu2 %v3317_v58, %s3189_s7 }
  0xee   :  { %887 = vrot.lane.b32.xlu1 %v3307_v55, %s3195_s0 }
  0xf5   :  { %387 = vrot.lane.b32.xlu2 %v3337_v60, %s3189_s7 }
  0xf6   :  { %989 = vrot.lane.b32.xlu1 %v3337_v60, %s3194_s27 }
  0xfd   :  { %589 = vrot.lane.b32.xlu2 %v3337_v60, %s3190_s9 }
  0xfe   :  { %1091 = vrot.lane.b32.xlu1 %v3309_v56, %s3196_s28 }
 0x105   :  { %893 = vrot.lane.b32.xlu2 %v3317_v58, %s3195_s0 }
 0x106   :  { %1187 = vrot.lane.b32.xlu1 %v3307_v55, %s3197_s29 }
 0x10d   :  { %991 = vrot.lane.b32.xlu2 %v3309_v56, %s3194_s27 }
 0x10e   :  { %1293 = vrot.lane.b32.xlu1 %v3317_v58, %s3198_s30 }
 0x115   :  { %889 = vrot.lane.b32.xlu2 %v3337_v60, %s3195_s0 }
 0x116   :  { %1391 = vrot.lane.b32.xlu1 %v3309_v56, %s3199_s15 }
 0x117   :  { %v390_v61 = vpop.permute.xlu2 %389 }
 0x11d   :  { %1193 = vrot.lane.b32.xlu2 %v3317_v58, %s3197_s29 }
 0x11e   :  { %1289 = vrot.lane.b32.xlu1 %v3337_v60, %s3198_s30 }
 0x11f   :  { %v492_v0 = vpop.permute.xlu2 %491 }
 0x125   :  { %1087 = vrot.lane.b32.xlu2 %v3307_v55, %s3196_s28 }
 0x126   :  { %1593 = vrot.lane.b32.xlu1 %v3317_v58, %s3179_s14 }
 0x127   :  { %v488_v4 = vpop.permute.xlu2 %487 }
 0x12d   :  { %1189 = vrot.lane.b32.xlu2 %v3337_v60, %s3197_s29 }
 0x12e   :  { %1487 = vrot.lane.b32.xlu1 %v3307_v55, %s3200_s16 }
 0x12f   :  { %v3400_v5 = vpop.permute.xlu1 %587  ;;  %v3402_v6 = vpop.permute.xlu2 %591 }
 0x130   :  { %v3404_v7 = vpop.permute.xlu0 %385 }
 0x135   :  { %1291 = vrot.lane.b32.xlu2 %v3309_v56, %s3198_s30 }
 0x136   :  { %1589 = vrot.lane.b32.xlu1 %v3337_v60, %s3179_s14 }
 0x137   :  { %v692_v8 = vpop.permute.xlu2 %691 }
 0x138   :  { %v3410_v9 = vpop.permute.xlu1 %791  ;;  %v688_v10 = vpop.permute.xlu0 %687 }
 0x13d   :  { %1387 = vrot.lane.b32.xlu2 %v3307_v55, %s3199_s15 }
 0x13e   :  { %1691 = vrot.lane.b32.xlu1 %v3309_v56, %s3187_s21 }
 0x13f   :  { %v3416_v11 = vpop.permute.xlu2 %787 }
 0x140   :  { %v494_v12 = vpop.permute.xlu1 %493  ;;  %v3419_v13 = vpop.permute.xlu0 %593 }
 0x141   :  { %2593 = vmatpush.xpose.msk.msrb.mxu2 %vm293_vm0, %v494_v12 }
 0x145   :  { %2594 = vmatpush.xpose.msk.msrb.mxu2 %vm293_vm0, %v492_v0  ;;  %1493 = vrot.lane.b32.xlu2 %v3317_v58, %s3200_s16 }
 0x147   :  { %v392_v14 = vpop.permute.xlu2 %391 }
 0x148   :  { %v694_v16 = vpop.permute.xlu1 %693  ;;  %2595 = vmatmul.msk.f32.vlgmr.msrb.gmra.mxu2 %vm293_vm0, %v488_v4  ;;  %2587 = vmatpush.xpose.msk.msra.mxu3 %vm293_vm0, %v392_v14  ;;  %v490_v18 = vpop.permute.xlu0 %489 }
 0x149   :  { %2605 = vmatpush.xpose.msk.msrb.mxu1 %vm293_vm0, %v694_v16 }
 0x14c   :  { %2588 = vmatpush.xpose.msk.msra.mxu3 %vm293_vm0, %v390_v61 }
 0x14d   :  { %2606 = vmatpush.xpose.msk.msrb.mxu1 %vm293_vm0, %v692_v8  ;;  %1591 = vrot.lane.b32.xlu2 %v3309_v56, %s3179_s14 }
 0x14f   :  { %v3433_v19 = vpop.permute.xlu2 %387  ;;  %v323_v20 = vpop.f32.mrf.mxu3 }
 0x150   :  { %2596 = vmatmul.msk.f32.gmra.mxu2 %vm293_vm0, %v490_v18  ;;  %2607 = vmatmul.msk.f32.vlgmr.msrb.gmra.mxu1 %vm293_vm0, %v688_v10  ;;  %v329_v21 = vmul.f32 0.35355338, %v323_v20  ;;  %v690_v24 = vpop.permute.xlu1 %689  ;;  %v3484_v33 = vpop.permute.xlu0 %793 }
 0x152   :  { %v331_v22 = vsel %vm276_vm1, %v329_v21, -1e+30 }
 0x153   :  { %v334_v23 = vsel %vm333_vm2, %v331_v22, -inf }
 0x154   :  { %335 = vmax.xlane.f32.xlu0 %v334_v23 }
 0x155   :  { %1489 = vrot.lane.b32.xlu2 %v3337_v60, %s3200_s16 }
 0x157   :  { %v3445_v25 = vpop.permute.xlu2 %589  ;;  %v326_v26 = vpop.f32.mrf.mxu3 }
 0x158   :  { %v330_v28 = vmul.f32 0.35355338, %v326_v26  ;;  %2608 = vmatmul.msk.f32.gmra.mxu1 %vm293_vm0, %v690_v24  ;;  %v3490_v40 = vpop.permute.xlu1 %993 }
 0x15a   :  { %v332_v29 = vsel %vm3447_vm5, %v330_v28, -1e+30 }
 0x15b   :  { %v337_v30 = vsel %vm333_vm2, %v332_v29, -inf }
 0x15c   :  { %338 = vmax.xlane.f32.xlu0 %v337_v30 }
 0x15d   :  { %1793 = vrot.lane.b32.xlu2 %v3317_v58, %s3182_s23 }
 0x15f   :  { %v894_v31 = vpop.permute.xlu2 %893 }
 0x160   :  { %2617 = vmatpush.xpose.msk.msra.mxu1 %vm293_vm0, %v894_v31  ;;  %v888_v52 = vpop.permute.xlu1 %887 }
 0x165   :  { %1687 = vrot.lane.b32.xlu2 %v3307_v55, %s3187_s21 }
 0x167   :  { %v3482_v32 = vpop.permute.xlu2 %991 }
 0x168   :  { %v3518_v59 = vpop.permute.xlu1 %989 }
 0x16d   :  { %1789 = vrot.lane.b32.xlu2 %v3337_v60, %s3182_s23 }
 0x16f   :  { %v890_v35 = vpop.permute.xlu2 %889 }
 0x170   :  { %789 = vrot.lane.b32.xlu0 %v3337_v60, %s3192_s26  ;;  %v1092_v63 = vpop.permute.xlu1 %1091 }
 0x177   :  { %v3502_v47 = vpop.permute.xlu2 %1193 }
 0x178   :  { %891 = vrot.lane.b32.xlu0 %v3309_v56, %s3195_s0  ;;  %v3528_v4 = vpop.permute.xlu1 %1187 }
 0x180   :  { %987 = vrot.lane.b32.xlu0 %v3307_v55, %s3194_s27  ;;  %v1294_v16 = vpop.permute.xlu1 %1293 }
 0x188   :  { %1093 = vrot.lane.b32.xlu0 %v3317_v58, %s3196_s28  ;;  %v3554_v23 = vpop.permute.xlu1 %1391 }
 0x190   :  { %1191 = vrot.lane.b32.xlu0 %v3309_v56, %s3197_s29  ;;  %v1290_v26 = vpop.permute.xlu1 %1289 }
 0x198   :  { %1089 = vrot.lane.b32.xlu0 %v3337_v60, %s3196_s28  ;;  %v3571_v30 = vpop.permute.xlu1 %1593 }
 0x1a0   :  { %1393 = vrot.lane.b32.xlu0 %v3317_v58, %s3199_s15 }
 0x1a8   :  { %1287 = vrot.lane.b32.xlu0 %v3307_v55, %s3198_s30 }
 0x1b0   :  { %1389 = vrot.lane.b32.xlu0 %v3337_v60, %s3199_s15 }
 0x1b8   :  { %1491 = vrot.lane.b32.xlu0 %v3309_v56, %s3200_s16 }
 0x1c0   :  { %1587 = vrot.lane.b32.xlu0 %v3307_v55, %s3179_s14 }
 0x1c7   :  { %v336_v34 = vpop.xlane.xlu0 %335 }
 0x1c8   :  { %v340_v36 = vsub.f32 %v331_v22, %v336_v34  ;;  %1693 = vrot.lane.b32.xlu0 %v3317_v58, %s3187_s21  ;;  %v1088_v58 = vpop.permute.xlu2 %1087  ;;  %v3551_v22 = vpack.i.bf16 %v3386_v2, %v3388_v3 }
 0x1ca   :  { %v342_v37 = vmul.f32 1.442695, %v340_v36 }
 0x1cb   :  { %v520_v38 = vpop.f32.mrf.mxu2 }
 0x1cc   :  { %2849 = vpow2.f32 %v342_v37  ;;  %v526_v39 = vmul.f32 0.35355338, %v520_v38 }
 0x1cd   :  { %v720_v41 = vpop.f32.mrf.mxu1 }
 0x1ce   :  { %v3494_v42 = vsel %vm276_vm1, %v526_v39, -1e+30  ;;  %v726_v28 = vmul.f32 0.35355338, %v720_v41 }
 0x1cf   :  { %v530_v43 = vsel %vm333_vm2, %v3494_v42, -inf  ;;  %v339_v44 = vpop.xlane.xlu0 %338 }
 0x1d0   :  { %531 = vmax.xlane.f32.xlu2 %v530_v43  ;;  %v341_v45 = vsub.f32 %v332_v29, %v339_v44  ;;  %1791 = vrot.lane.b32.xlu0 %v3309_v56, %s3182_s23  ;;  %v3565_v2 = vsel %vm276_vm1, %v726_v28, -1e+30 }
 0x1d1   :  { %v730_v3 = vsel %vm333_vm2, %v3565_v2, -inf }
 0x1d2   :  { %v3500_v46 = vpop.eup %2849  ;;  %v344_v48 = vmul.f32 1.442695, %v341_v45 }
 0x1d3   :  { %v346_v49 = vsel %vm333_vm2, %v3500_v46, 0.0  ;;  %v523_v8 = vpop.f32.mrf.mxu2 }
 0x1d4   :  { %2851 = vpow2.f32 %v344_v48  ;;  %347 = vadd.xlane.f32.xlu1 %v346_v49  ;;  %v527_v12 = vmul.f32 0.35355338, %v523_v8 }
 0x1d5   :  { %v723_v50 = vpop.f32.mrf.mxu1 }
 0x1d6   :  { %v727_v51 = vmul.f32 0.35355338, %v723_v50  ;;  %v3538_v15 = vsel %vm3447_vm5, %v527_v12, -1e+30 }
 0x1d8   :  { %1689 = vrot.lane.b32.xlu0 %v3337_v60, %s3187_s21  ;;  %v3510_v53 = vsel %vm3447_vm5, %v727_v51, -1e+30  ;;  %v3522_v60 = vpop.permute.xlu2 %1189 }
 0x1d9   :  { %v733_v54 = vsel %vm333_vm2, %v3510_v53, -inf }
 0x1da   :  { %v3514_v56 = vpop.eup %2851  ;;  %734 = vmax.xlane.f32.xlu2 %v733_v54 }
 0x1db   :  { %v349_v57 = vsel %vm333_vm2, %v3514_v56, 0.0 }
 0x1dc   :  { %350 = vadd.xlane.f32.xlu1 %v349_v57 }
 0x1e0   :  { %v1292_v0 = vpop.permute.xlu2 %1291 }
 0x1e2   :  { %v3520_v61 = vpop.permute.xlu0 %789 }
 0x1e8   :  { %v3533_v10 = vpop.permute.xlu2 %1387 }
 0x1ea   :  { %v892_v62 = vpop.permute.xlu0 %891 }
 0x1eb   :  { %2618 = vmatpush.xpose.msk.msra.mxu1 %vm293_vm0, %v892_v62 }
 0x1ee   :  { %2619 = vmatmul.msk.f32.vlgmr.msra.gmra.mxu1 %vm293_vm0, %v888_v52 }
 0x1f0   :  { %v1494_v20 = vpop.permute.xlu2 %1493 }
 0x1f2   :  { %v3526_v1 = vpop.permute.xlu0 %987  ;;  %2714 = vrot.lane.b32.xlu2 %v3551_v22, %s3191_s25 }
 0x1f5   :  { %1787 = vrot.lane.b32.xlu1 %v3307_v55, %s3182_s23  ;;  %v533_v55 = vsel %vm333_vm2, %v3538_v15, -inf }
 0x1f6   :  { %2620 = vmatmul.msk.f32.gmra.mxu1 %vm293_vm0, %v890_v35  ;;  %v1488_v35 = vpop.permute.xlu1 %1487 }
 0x1f8   :  { %v3575_v34 = vpop.permute.xlu2 %1591 }
 0x1fa   :  { %v1094_v14 = vpop.permute.xlu0 %1093  ;;  %2719 = vrot.lane.b32.xlu2 %v3551_v22, %s3190_s9 }
 0x1fb   :  { %2629 = vmatpush.xpose.msk.msrb.mxu1 %vm293_vm0, %v1094_v14 }
 0x1fe   :  { %v3582_v39 = vpop.permute.xlu1 %1589 }
 0x1ff   :  { %2630 = vmatpush.xpose.msk.msrb.mxu1 %vm293_vm0, %v1092_v63 }
 0x200   :  { %v1490_v37 = vpop.permute.xlu2 %1489 }
 0x202   :  { %534 = vmax.xlane.f32.xlu0 %v533_v55  ;;  %2631 = vmatmul.msk.f32.vlgmr.msrb.gmra.mxu1 %vm293_vm0, %v1088_v58  ;;  %v3545_v18 = vpop.permute.xlu0 %1191 }
 0x203   :  { %2641 = vmatpush.xpose.msk.msra.mxu1 %vm293_vm0, %v1294_v16  ;;  %2729 = vrot.lane.b32.xlu2 %v3551_v22, %s3192_s26 }
 0x206   :  { %v1692_v44 = vpop.permute.xlu1 %1691 }
 0x207   :  { %2642 = vmatpush.xpose.msk.msra.mxu1 %vm293_vm0, %v1292_v0 }
 0x208   :  { %v3585_v41 = vpop.permute.xlu2 %1793 }
 0x20a   :  { %v1090_v21 = vpop.permute.xlu0 %1089 }
 0x20b   :  { %2653 = vmatpush.xpose.msk.msrb.mxu1 %vm293_vm0, %v1494_v20 }
 0x20c   :  { %2632 = vmatmul.msk.f32.gmra.mxu1 %vm293_vm0, %v1090_v21 }
 0x210   :  { %v1688_v45 = vpop.permute.xlu2 %1687 }
 0x212   :  { %v3558_v24 = vpop.permute.xlu0 %1393 }
 0x218   :  { %v3593_v51 = vpop.permute.xlu2 %1789 }
 0x21a   :  { %v1288_v29 = vpop.permute.xlu0 %1287 }
 0x21b   :  { %2643 = vmatmul.msk.f32.vlgmr.msra.gmra.mxu1 %vm293_vm0, %v1288_v29 }
 0x21f   :  { %731 = vmax.xlane.f32.xlu1 %v730_v3 }
 0x222   :  { %v3573_v31 = vpop.permute.xlu0 %1389 }
 0x223   :  { %2644 = vmatmul.msk.f32.gmra.mxu1 %vm293_vm0, %v1290_v26 }
 0x22a   :  { %v1492_v36 = vpop.permute.xlu0 %1491 }
 0x22b   :  { %2654 = vmatpush.xpose.msk.msrb.mxu1 %vm293_vm0, %v1492_v36 }
 0x22e   :  { %2655 = vmatmul.msk.f32.vlgmr.msrb.gmra.mxu1 %vm293_vm0, %v1488_v35 }
 0x232   :  { %v3580_v38 = vpop.permute.xlu0 %1587 }
 0x236   :  { %2656 = vmatmul.msk.f32.gmra.mxu1 %vm293_vm0, %v1490_v37 }
 0x23a   :  { %v1694_v43 = vpop.permute.xlu0 %1693 }
 0x23b   :  { %2665 = vmatpush.xpose.msk.msra.mxu1 %vm293_vm0, %v1694_v43 }
 0x23f   :  { %2666 = vmatpush.xpose.msk.msra.mxu1 %vm293_vm0, %v1692_v44 }
 0x242   :  { %2667 = vmatmul.msk.f32.vlgmr.msra.gmra.mxu1 %vm293_vm0, %v1688_v45  ;;  %v3590_v48 = vpop.permute.xlu0 %1791 }
 0x243   :  { %v3599_v62 = vpop.xlane.xlu2 %531 }
 0x244   :  { %v536_v28 = vsub.f32 %v3494_v42, %v3599_v62 }
 0x246   :  { %v538_v29 = vmul.f32 1.442695, %v536_v28 }
 0x247   :  { %v348_v49 = vpop.xlane.xlu1 %347 }
 0x248   :  { %2853 = vrcp.f32 %v348_v49 }
 0x24a   :  { %v1690_v50 = vpop.permute.xlu0 %1689 }
 0x24b   :  { %2668 = vmatmul.msk.f32.gmra.mxu1 %vm293_vm0, %v1690_v50 }
 0x24d   :  { %v3605_v0 = vpop.xlane.xlu2 %734 }
 0x24e   :  { %v2854_v52 = vpop.eup %2853  ;;  %v737_v35 = vsub.f32 %v3510_v53, %v3605_v0 }
 0x24f   :  { %v351_v54 = vpop.xlane.xlu1 %350  ;;  %v354_v57 = vmul.f32 %v2854_v52, %v3500_v46 }
 0x250   :  { %2855 = vrcp.f32 %v351_v54 }
 0x251   :  { %2585 = vmatmul.msk.f32.vlgmr.msrb.gmra.mxu3 %vm333_vm2, %v354_v57  ;;  %2857 = vpow2.f32 %v538_v29 }
 0x252   :  { %2599 = vmatpush.xpose.msk.msrb.mxu3 %vm293_vm0, %v3419_v13 }
 0x255   :  { %v2715_v46 = vpop.permute.xlu2 %2714 }
 0x256   :  { %v2856_v58 = vpop.eup %2855  ;;  %2600 = vmatpush.xpose.msk.msrb.mxu3 %vm293_vm0, %v3402_v6  ;;  %v2717_v13 = vunpack.i.h.bf16 %v2715_v46  ;;  %v2716_v8 = vunpack.i.l.bf16 %v2715_v46 }
 0x257   :  { %v355_v63 = vmul.f32 %v2856_v58, %v3514_v56  ;;  %v3702_v44 = vpop.eup %2857 }
 0x258   :  { %578 = vmatpush.msra.mxu2 %v2716_v8 }
 0x259   :  { %2586 = vmatmul.msk.f32.gmra.mxu3 %vm333_vm2, %v355_v63 }
 0x25a   :  { %579 = vmatpush.msra.mxu2 %v2717_v13 }
 0x261   :  { %2589 = vmatmul.msk.f32.vlgmr.msra.gmra.mxu3 %vm293_vm0, %v3404_v7 }
 0x262   :  { %2611 = vmatpush.xpose.msk.msra.mxu3 %vm293_vm0, %v3484_v33 }
 0x266   :  { %2612 = vmatpush.xpose.msk.msra.mxu3 %vm293_vm0, %v3410_v9 }
 0x269   :  { %2590 = vmatmul.msk.f32.gmra.mxu3 %vm293_vm0, %v3433_v19 }
 0x26b   :  { %v920_v6 = vpop.f32.mrf.mxu1 }
 0x26c   :  { %v926_v56 = vmul.f32 0.35355338, %v920_v6 }
 0x26e   :  { %v3617_v12 = vsel %vm276_vm1, %v926_v56, -1e+30 }
 0x26f   :  { %v930_v7 = vsel %vm333_vm2, %v3617_v12, -inf }
 0x270   :  { %931 = vmax.xlane.f32.xlu0 %v930_v7 }
 0x271   :  { %2601 = vmatmul.msk.f32.vlgmr.msrb.gmra.mxu3 %vm293_vm0, %v3400_v5 }
 0x272   :  { %2623 = vmatpush.xpose.msk.msrb.mxu3 %vm293_vm0, %v3490_v40 }
 0x273   :  { %v923_v9 = vpop.f32.mrf.mxu1 }
 0x274   :  { %v927_v33 = vmul.f32 0.35355338, %v923_v9 }
 0x276   :  { %v3627_v19 = vsel %vm3447_vm5, %v927_v33, -1e+30  ;;  %2624 = vmatpush.xpose.msk.msrb.mxu3 %vm293_vm0, %v3482_v32 }
 0x277   :  { %v933_v14 = vsel %vm333_vm2, %v3627_v19, -inf }
 0x278   :  { %934 = vmax.xlane.f32.xlu1 %v933_v14 }
 0x279   :  { %2602 = vmatmul.msk.f32.gmra.mxu3 %vm293_vm0, %v3445_v25 }
 0x27f   :  { %v1120_v5 = vpop.f32.mrf.mxu1 }
 0x280   :  { %v1126_v16 = vmul.f32 0.35355338, %v1120_v5 }
 0x281   :  { %2613 = vmatmul.msk.f32.vlgmr.msra.gmra.mxu3 %vm293_vm0, %v3416_v11 }
 0x282   :  { %v3639_v40 = vsel %vm276_vm1, %v1126_v16, -1e+30  ;;  %2635 = vmatpush.xpose.msk.msra.mxu3 %vm293_vm0, %v3502_v47 }
 0x283   :  { %v1130_v32 = vsel %vm333_vm2, %v3639_v40, -inf }
 0x284   :  { %2709 = vrot.lane.b32.xlu0 %v3551_v22, %s3189_s7  ;;  %1131 = vmax.xlane.f32.xlu1 %v1130_v32 }
 0x286   :  { %2636 = vmatpush.xpose.msk.msra.mxu3 %vm293_vm0, %v3545_v18 }
 0x289   :  { %v1123_v25 = vpop.f32.mrf.mxu1  ;;  %2614 = vmatmul.msk.f32.gmra.mxu3 %vm293_vm0, %v3520_v61 }
 0x28a   :  { %v1127_v55 = vmul.f32 0.35355338, %v1123_v25 }
 0x28c   :  { %v3653_v11 = vsel %vm3447_vm5, %v1127_v55, -1e+30  ;;  %2724 = vrot.lane.b32.xlu0 %v3551_v22, %s3193_s3 }
 0x28d   :  { %v1133_v47 = vsel %vm333_vm2, %v3653_v11, -inf }
 0x28e   :  { %1134 = vmax.xlane.f32.xlu1 %v1133_v47 }
 0x291   :  { %2625 = vmatmul.msk.f32.vlgmr.msrb.gmra.mxu3 %vm293_vm0, %v3526_v1 }
 0x292   :  { %2647 = vmatpush.xpose.msk.msrb.mxu3 %vm293_vm0, %v3558_v24  ;;  %v1788_v24 = vpop.permute.xlu1 %1787 }
 0x296   :  { %2648 = vmatpush.xpose.msk.msrb.mxu3 %vm293_vm0, %v3554_v23 }
 0x298   :  { %v1320_v61 = vpop.f32.mrf.mxu1 }
 0x299   :  { %v1326_v18 = vmul.f32 0.35355338, %v1320_v61  ;;  %2626 = vmatmul.msk.f32.gmra.mxu3 %vm293_vm0, %v3518_v59  ;;  %v2720_v61 = vpop.permute.xlu2 %2719 }
 0x29b   :  { %v3669_v20 = vsel %vm276_vm1, %v1326_v18, -1e+30 }
 0x29c   :  { %v1330_v21 = vsel %vm333_vm2, %v3669_v20, -inf }
 0x29d   :  { %1331 = vmax.xlane.f32.xlu1 %v1330_v21  ;;  %v2721_v21 = vunpack.i.l.bf16 %v2720_v61 }
 0x2a0   :  { %v1323_v1 = vpop.f32.mrf.mxu1 }
 0x2a1   :  { %v1327_v26 = vmul.f32 0.35355338, %v1323_v1  ;;  %2637 = vmatmul.msk.f32.vlgmr.msra.gmra.mxu3 %vm293_vm0, %v3528_v4  ;;  %v732_v4 = vpop.xlane.xlu1 %731  ;;  %v2722_v1 = vunpack.i.h.bf16 %v2720_v61 }
 0x2a2   :  { %2659 = vmatpush.xpose.msk.msra.mxu3 %vm293_vm0, %v3571_v30  ;;  %v736_v36 = vsub.f32 %v3565_v2, %v732_v4 }
 0x2a3   :  { %v3679_v59 = vsel %vm3447_vm5, %v1327_v26, -1e+30 }
 0x2a4   :  { %v1333_v23 = vsel %vm333_vm2, %v3679_v59, -inf  ;;  %v738_v43 = vmul.f32 1.442695, %v736_v36 }
 0x2a5   :  { %1334 = vmax.xlane.f32.xlu1 %v1333_v23 }
 0x2a6   :  { %2660 = vmatpush.xpose.msk.msra.mxu3 %vm293_vm0, %v3575_v34  ;;  %v740_v34 = vmul.f32 1.442695, %v737_v35 }
 0x2a8   :  { %2859 = vpow2.f32 %v740_v34 }
 0x2a9   :  { %2638 = vmatmul.msk.f32.gmra.mxu3 %vm293_vm0, %v3522_v60  ;;  %v535_v60 = vpop.xlane.xlu0 %534  ;;  %2861 = vpow2.f32 %v738_v43 }
 0x2aa   :  { %v537_v45 = vsub.f32 %v3538_v15, %v535_v60 }
 0x2ab   :  { %v1520_v3 = vpop.f32.mrf.mxu1 }
 0x2ac   :  { %v1526_v30 = vmul.f32 0.35355338, %v1520_v3  ;;  %v540_v50 = vmul.f32 1.442695, %v537_v45 }
 0x2ae   :  { %v3694_v37 = vsel %vm276_vm1, %v1526_v30, -1e+30  ;;  %v3717_v15 = vpop.eup %2859  ;;  %2863 = vpow2.f32 %v540_v50 }
 0x2af   :  { %v1530_v42 = vsel %vm333_vm2, %v3694_v37, -inf  ;;  %v3719_v52 = vpop.eup %2861 }
 0x2b0   :  { %1531 = vmax.xlane.f32.xlu1 %v1530_v42  ;;  %v742_v54 = vsel %vm333_vm2, %v3719_v52, 0.0 }
 0x2b1   :  { %2649 = vmatmul.msk.f32.vlgmr.msrb.gmra.mxu3 %vm293_vm0, %v3533_v10  ;;  %v542_v10 = vsel %vm333_vm2, %v3702_v44, 0.0 }
 0x2b2   :  { %2671 = vmatpush.xpose.msk.msrb.mxu3 %vm293_vm0, %v3585_v41 }
 0x2b3   :  { %v1523_v53 = vpop.f32.mrf.mxu1 }
 0x2b4   :  { %v1527_v2 = vmul.f32 0.35355338, %v1523_v53  ;;  %v3727_v57 = vpop.eup %2863 }
 0x2b6   :  { %v3707_v49 = vsel %vm3447_vm5, %v1527_v2, -1e+30  ;;  %2672 = vmatpush.xpose.msk.msrb.mxu3 %vm293_vm0, %v3590_v48  ;;  %v745_v48 = vsel %vm333_vm2, %v3717_v15, 0.0 }
 0x2b7   :  { %v1533_v41 = vsel %vm333_vm2, %v3707_v49, -inf }
 0x2b8   :  { %543 = vadd.xlane.f32.xlu1 %v542_v10  ;;  %1534 = vmax.xlane.f32.xlu2 %v1533_v41 }
 0x2b9   :  { %2650 = vmatmul.msk.f32.gmra.mxu3 %vm293_vm0, %v3573_v31  ;;  %v545_v31 = vsel %vm333_vm2, %v3727_v57, 0.0 }
 0x2c0   :  { %746 = vadd.xlane.f32.xlu1 %v745_v48  ;;  %743 = vadd.xlane.f32.xlu2 %v742_v54 }
 0x2c1   :  { %2661 = vmatmul.msk.f32.vlgmr.msra.gmra.mxu3 %vm293_vm0, %v3580_v38 }
 0x2c8   :  { %546 = vadd.xlane.f32.xlu1 %v545_v31 }
 0x2c9   :  { %2662 = vmatmul.msk.f32.gmra.mxu3 %vm293_vm0, %v3582_v39 }
 0x2d1   :  { %2673 = vmatmul.msk.f32.vlgmr.msrb.gmra.mxu3 %vm293_vm0, %v1788_v24 }
 0x2d4   :  { %v3734_v58 = vpop.f32.mrf.mxu3 }
 0x2d9   :  { %2674 = vmatmul.msk.f32.gmra.mxu3 %vm293_vm0, %v3593_v51 }
 0x2dc   :  { %v3738_v62 = vpop.f32.mrf.mxu3 }
 0x2e3   :  { %v932_v63 = vpop.xlane.xlu0 %931 }
 0x2e4   :  { %v936_v38 = vsub.f32 %v3617_v12, %v932_v63  ;;  %v418_v0 = vpop.f32.mrf.mxu3 }
 0x2e5   :  { %v424_v51 = vmul.f32 0.35355338, %v418_v0 }
 0x2e6   :  { %v938_v46 = vmul.f32 1.442695, %v936_v38 }
 0x2e8   :  { %2865 = vpow2.f32 %v938_v46 }
 0x2eb   :  { %v935_v13 = vpop.xlane.xlu1 %934 }
 0x2ec   :  { %v937_v8 = vsub.f32 %v3627_v19, %v935_v13  ;;  %v421_v6 = vpop.f32.mrf.mxu3  ;;  %v3754_v19 = vsel %vm276_vm1, %v424_v51, -1e+30 }
 0x2ed   :  { %v425_v7 = vmul.f32 0.35355338, %v421_v6  ;;  %v428_v32 = vsel %vm333_vm2, %v3754_v19, -inf }
 0x2ee   :  { %v3742_v39 = vpop.eup %2865  ;;  %v940_v56 = vmul.f32 1.442695, %v937_v8 }
 0x2ef   :  { %v942_v9 = vsel %vm333_vm2, %v3742_v39, 0.0  ;;  %v3748_v12 = vsel %vm3447_vm5, %v425_v7, -1e+30 }
 0x2f0   :  { %2867 = vpow2.f32 %v940_v56  ;;  %943 = vadd.xlane.f32.xlu1 %v942_v9  ;;  %v431_v33 = vsel %vm333_vm2, %v3748_v12, -inf  ;;  %v3810_v9 = vpop.permute.xlu2 %2729 }
 0x2f1   :  { %432 = vmax.xlane.f32.xlu0 %v431_v33 }
 0x2f4   :  { %v620_v14 = vpop.f32.mrf.mxu3 }
 0x2f5   :  { %v626_v47 = vmul.f32 0.35355338, %v620_v14 }
 0x2f6   :  { %v3756_v5 = vpop.eup %2867  ;;  %v2710_v16 = vpop.permute.xlu0 %2709 }
 0x2f7   :  { %v945_v25 = vsel %vm333_vm2, %v3756_v5, 0.0  ;;  %v2711_v55 = vunpack.i.l.bf16 %v2710_v16  ;;  %v2712_v18 = vunpack.i.h.bf16 %v2710_v16  ;;  %v3764_v26 = vsel %vm276_vm1, %v626_v47, -1e+30  ;;  %v3766_v29 = vpop.xlane.xlu1 %1131 }
 0x2f8   :  { %429 = vmax.xlane.f32.xlu1 %v428_v32  ;;  %v630_v3 = vsel %vm333_vm2, %v3764_v26, -inf }
 0x2f9   :  { %478 = vmatpush.msrb.mxu0 %v2711_v55  ;;  %946 = vadd.xlane.f32.xlu0 %v945_v25 }
 0x2fb   :  { %479 = vmatpush.msrb.mxu0 %v2712_v18 }
 0x2fc   :  { %v623_v24 = vpop.f32.mrf.mxu3 }
 0x2fd   :  { %678 = vmatpush.msra.mxu0 %v2721_v21  ;;  %v627_v23 = vmul.f32 0.35355338, %v623_v24  ;;  %v1720_v24 = vpop.f32.mrf.mxu1 }
 0x2fe   :  { %v2725_v28 = vpop.permute.xlu0 %2724 }
 0x2ff   :  { %679 = vmatpush.msra.mxu0 %v2722_v1  ;;  %v2726_v4 = vunpack.i.l.bf16 %v2725_v28  ;;  %v3772_v30 = vsel %vm3447_vm5, %v627_v23, -1e+30  ;;  %v2727_v35 = vunpack.i.h.bf16 %v2725_v28 }
 0x300   :  { %631 = vmax.xlane.f32.xlu1 %v630_v3  ;;  %v633_v36 = vsel %vm333_vm2, %v3772_v30, -inf  ;;  %v1726_v3 = vmul.f32 0.35355338, %v1720_v24 }
 0x301   :  { %778 = vmatpush.msrb.mxu2 %v2726_v4  ;;  %634 = vmax.xlane.f32.xlu2 %v633_v36  ;;  %v3780_v60 = vpop.xlane.xlu1 %1134 }
 0x303   :  { %779 = vmatpush.msrb.mxu2 %v2727_v35 }
 0x304   :  { %v820_v42 = vpop.f32.mrf.mxu3 }
 0x305   :  { %v826_v34 = vmul.f32 0.35355338, %v820_v42  ;;  %v3832_v42 = vsel %vm276_vm1, %v1726_v3, -1e+30 }
 0x307   :  { %v3778_v43 = vsel %vm276_vm1, %v826_v34, -1e+30 }
 0x308   :  { %v830_v53 = vsel %vm333_vm2, %v3778_v43, -inf }
 0x309   :  { %831 = vmax.xlane.f32.xlu0 %v830_v53  ;;  %v1730_v53 = vsel %vm333_vm2, %v3832_v42, -inf }
 0x30c   :  { %v823_v2 = vpop.f32.mrf.mxu3 }
 0x30d   :  { %v827_v55 = vmul.f32 0.35355338, %v823_v2 }
 0x30f   :  { %v3818_v1 = vsel %vm3447_vm5, %v827_v55, -1e+30  ;;  %v1136_v55 = vsub.f32 %v3639_v40, %v3766_v29 }
 0x310   :  { %v3784_v45 = vpop.xlane.xlu1 %1331  ;;  %v833_v4 = vsel %vm333_vm2, %v3818_v1, -inf }
 0x314   :  { %v1020_v10 = vpop.f32.mrf.mxu3 }
 0x315   :  { %v1026_v41 = vmul.f32 0.35355338, %v1020_v10 }
 0x317   :  { %v3788_v50 = vsel %vm276_vm1, %v1026_v41, -1e+30 }
 0x318   :  { %v1030_v48 = vsel %vm333_vm2, %v3788_v50, -inf  ;;  %v3794_v54 = vpop.xlane.xlu1 %1334 }
 0x319   :  { %2734 = vrot.lane.b32.xlu1 %v3551_v22, %s3195_s0  ;;  %1031 = vmax.xlane.f32.xlu2 %v1030_v48  ;;  %v1337_v27 = vsub.f32 %v3679_v59, %v3794_v54 }
 0x31b   :  { %v1340_v17 = vmul.f32 1.442695, %v1337_v27 }
 0x31c   :  { %v1023_v31 = vpop.f32.mrf.mxu3 }
 0x31d   :  { %v1027_v63 = vmul.f32 0.35355338, %v1023_v31 }
 0x31f   :  { %v3798_v38 = vsel %vm3447_vm5, %v1027_v63, -1e+30 }
 0x320   :  { %v1033_v0 = vsel %vm333_vm2, %v3798_v38, -inf }
 0x321   :  { %1034 = vmax.xlane.f32.xlu2 %v1033_v0 }
 0x323   :  { %v3802_v46 = vpop.xlane.xlu1 %1531 }
 0x324   :  { %v1220_v13 = vpop.f32.mrf.mxu3 }
 0x325   :  { %v1226_v8 = vmul.f32 0.35355338, %v1220_v13 }
 0x327   :  { %v3806_v6 = vsel %vm276_vm1, %v1226_v8, -1e+30 }
 0x328   :  { %v1230_v56 = vsel %vm333_vm2, %v3806_v6, -inf }
 0x329   :  { %1231 = vmax.xlane.f32.xlu2 %v1230_v56 }
 0x32b   :  { %v544_v7 = vpop.xlane.xlu1 %543  ;;  %v3813_v32 = vpop.xlane.xlu2 %1534 }
 0x32c   :  { %2869 = vrcp.f32 %v544_v7  ;;  %v1223_v51 = vpop.f32.mrf.mxu3 }
 0x32d   :  { %v1227_v2 = vmul.f32 0.35355338, %v1223_v51 }
 0x32f   :  { %v3840_v48 = vsel %vm3447_vm5, %v1227_v2, -1e+30 }
 0x332   :  { %v2870_v33 = vpop.eup %2869 }
 0x333   :  { %v550_v14 = vmul.f32 %v2870_v33, %v3702_v44  ;;  %v747_v16 = vpop.xlane.xlu1 %746  ;;  %v744_v21 = vpop.xlane.xlu2 %743 }
 0x334   :  { %v1420_v25 = vpop.f32.mrf.mxu3 }
 0x335   :  { %2597 = vmatmul.msk.f32.vlgmr.msra.gmra.mxu2 %vm333_vm2, %v550_v14  ;;  %v1426_v13 = vmul.f32 0.35355338, %v1420_v25 }
 0x337   :  { %v3854_v56 = vsel %vm276_vm1, %v1426_v13, -1e+30 }
 0x338   :  { %v1430_v7 = vsel %vm333_vm2, %v3854_v56, -inf }
 0x33b   :  { %v547_v47 = vpop.xlane.xlu1 %546 }
 0x33c   :  { %2871 = vrcp.f32 %v547_v47  ;;  %v1423_v61 = vpop.f32.mrf.mxu3 }
 0x33d   :  { %v1427_v18 = vmul.f32 0.35355338, %v1423_v61  ;;  %2873 = vrcp.f32 %v744_v21  ;;  %v1138_v61 = vmul.f32 1.442695, %v1136_v55 }
 0x33e   :  { %2875 = vrcp.f32 %v747_v16 }
 0x33f   :  { %v3822_v44 = vsel %vm3447_vm5, %v1427_v18, -1e+30 }
 0x340   :  { %v1433_v23 = vsel %vm333_vm2, %v3822_v44, -inf }
 0x341   :  { %1434 = vmax.xlane.f32.xlu0 %v1433_v23 }
 0x342   :  { %v2872_v28 = vpop.eup %2871 }
 0x343   :  { %834 = vmax.xlane.f32.xlu1 %v833_v4  ;;  %v551_v35 = vmul.f32 %v2872_v28, %v3727_v57  ;;  %v2874_v34 = vpop.eup %2873 }
 0x344   :  { %v1620_v36 = vpop.f32.mrf.mxu3  ;;  %v750_v10 = vmul.f32 %v2874_v34, %v3719_v52  ;;  %v2876_v31 = vpop.eup %2875  ;;  %v1233_v52 = vsel %vm333_vm2, %v3840_v48, -inf }
 0x345   :  { %2598 = vmatmul.msk.f32.gmra.mxu2 %vm333_vm2, %v551_v35  ;;  %v751_v8 = vmul.f32 %v2876_v31, %v3717_v15  ;;  %v1626_v51 = vmul.f32 0.35355338, %v1620_v36  ;;  %v1723_v34 = vpop.f32.mrf.mxu1 }
 0x347   :  { %v3860_v33 = vsel %vm276_vm1, %v1626_v51, -1e+30 }
 0x348   :  { %v1630_v14 = vsel %vm333_vm2, %v3860_v33, -inf }
 0x34b   :  { %1731 = vmax.xlane.f32.xlu1 %v1730_v53 }
 0x34c   :  { %v1623_v41 = vpop.f32.mrf.mxu3 }
 0x34d   :  { %2609 = vmatmul.msk.f32.vlgmr.msrb.gmra.mxu2 %vm333_vm2, %v750_v10  ;;  %v1627_v57 = vmul.f32 0.35355338, %v1623_v41 }
 0x34f   :  { %v3844_v63 = vsel %vm3447_vm5, %v1627_v57, -1e+30 }
 0x350   :  { %v1633_v0 = vsel %vm333_vm2, %v3844_v63, -inf }
 0x351   :  { %1634 = vmax.xlane.f32.xlu0 %v1633_v0 }
 0x353   :  { %1234 = vmax.xlane.f32.xlu1 %v1233_v52 }
 0x355   :  { %2610 = vmatmul.msk.f32.gmra.mxu2 %vm333_vm2, %v751_v8 }
 0x35b   :  { %1431 = vmax.xlane.f32.xlu1 %v1430_v7 }
 0x363   :  { %1631 = vmax.xlane.f32.xlu1 %v1630_v14  ;;  %v944_v15 = vpop.xlane.xlu1 %943 }
 0x364   :  { %v433_v16 = vpop.xlane.xlu0 %432 }
 0x365   :  { %v435_v25 = vsub.f32 %v3748_v12, %v433_v16 }
 0x367   :  { %v438_v47 = vmul.f32 1.442695, %v435_v25 }
 0x369   :  { %2877 = vpow2.f32 %v438_v47 }
 0x36a   :  { %2879 = vpow2.f32 %v1138_v61 }
 0x36b   :  { %v430_v18 = vpop.xlane.xlu1 %429 }
 0x36c   :  { %v434_v21 = vsub.f32 %v3754_v19, %v430_v18  ;;  %v947_v40 = vpop.xlane.xlu0 %946 }
 0x36e   :  { %v436_v24 = vmul.f32 1.442695, %v434_v21 }
 0x36f   :  { %v3868_v23 = vpop.eup %2877 }
 0x370   :  { %2881 = vpow2.f32 %v436_v24  ;;  %v443_v28 = vsel %vm333_vm2, %v3868_v23, 0.0  ;;  %v3873_v3 = vpop.eup %2879 }
 0x371   :  { %444 = vadd.xlane.f32.xlu2 %v443_v28  ;;  %v1142_v10 = vsel %vm333_vm2, %v3873_v3, 0.0 }
 0x373   :  { %v632_v4 = vpop.xlane.xlu1 %631 }
 0x374   :  { %v636_v12 = vsub.f32 %v3764_v26, %v632_v4  ;;  %v635_v29 = vpop.xlane.xlu2 %634  ;;  %v1727_v26 = vmul.f32 0.35355338, %v1723_v34 }
 0x375   :  { %v637_v19 = vsub.f32 %v3772_v30, %v635_v29 }
 0x376   :  { %v3875_v35 = vpop.eup %2881  ;;  %v638_v36 = vmul.f32 1.442695, %v636_v12  ;;  %v3887_v30 = vsel %vm3447_vm5, %v1727_v26, -1e+30 }
 0x377   :  { %v440_v53 = vsel %vm333_vm2, %v3875_v35, 0.0  ;;  %v640_v2 = vmul.f32 1.442695, %v637_v19  ;;  %v1733_v7 = vsel %vm333_vm2, %v3887_v30, -inf }
 0x378   :  { %2883 = vpow2.f32 %v638_v36  ;;  %441 = vadd.xlane.f32.xlu0 %v440_v53  ;;  %v1820_v36 = vpop.f32.mrf.mxu3 }
 0x379   :  { %2885 = vpow2.f32 %v640_v2  ;;  %1143 = vadd.xlane.f32.xlu2 %v1142_v10 }
 0x37c   :  { %v832_v41 = vpop.xlane.xlu0 %831 }
 0x37d   :  { %v836_v31 = vsub.f32 %v3778_v43, %v832_v41 }
 0x37e   :  { %v3882_v57 = vpop.eup %2883 }
 0x37f   :  { %v642_v0 = vsel %vm333_vm2, %v3882_v57, 0.0  ;;  %v3891_v52 = vpop.eup %2885  ;;  %v838_v13 = vmul.f32 1.442695, %v836_v31 }
 0x380   :  { %643 = vadd.xlane.f32.xlu0 %v642_v0  ;;  %v645_v8 = vsel %vm333_vm2, %v3891_v52, 0.0 }
 0x381   :  { %2887 = vpow2.f32 %v838_v13  ;;  %646 = vadd.xlane.f32.xlu1 %v645_v8  ;;  %1734 = vmax.xlane.f32.xlu2 %v1733_v7  ;;  %v1336_v8 = vsub.f32 %v3669_v20, %v3784_v45 }
 0x382   :  { %2889 = vrcp.f32 %v944_v15 }
 0x383   :  { %2891 = vrcp.f32 %v947_v40 }
 0x387   :  { %v3897_v43 = vpop.eup %2887 }
 0x388   :  { %v842_v51 = vsel %vm333_vm2, %v3897_v43, 0.0  ;;  %v2890_v16 = vpop.eup %2889 }
 0x389   :  { %843 = vadd.xlane.f32.xlu1 %v842_v51  ;;  %v950_v18 = vmul.f32 %v2890_v16, %v3742_v39  ;;  %v2892_v15 = vpop.eup %2891  ;;  %v1826_v51 = vmul.f32 0.35355338, %v1820_v36 }
 0x38a   :  { %v951_v24 = vmul.f32 %v2892_v15, %v3756_v5  ;;  %v1536_v15 = vsub.f32 %v3694_v37, %v3802_v46  ;;  %v1537_v37 = vsub.f32 %v3707_v49, %v3813_v32 }
 0x38b   :  { %v2735_v14 = vpop.permute.xlu1 %2734  ;;  %v3946_v16 = vsel %vm276_vm1, %v1826_v51, -1e+30  ;;  %vm2044_vm1 = vcmask 916480  }
 0x38c   :  { %v2736_v25 = vunpack.i.l.bf16 %v2735_v14  ;;  %v1032_v55 = vpop.xlane.xlu2 %1031  ;;  %v2737_v47 = vunpack.i.h.bf16 %v2735_v14 }
 0x38d   :  { %v1036_v61 = vsub.f32 %v3788_v50, %v1032_v55  ;;  %v1137_v50 = vsub.f32 %v3653_v11, %v3780_v60 }
 0x38e   :  { %978 = vmatpush.msra.mxu2 %v2736_v25 }
 0x38f   :  { %v1038_v21 = vmul.f32 1.442695, %v1036_v61  ;;  %v1140_v29 = vmul.f32 1.442695, %v1137_v50 }
 0x390   :  { %979 = vmatpush.msra.mxu2 %v2737_v47 }
 0x391   :  { %2621 = vmatmul.msk.f32.vlgmr.msra.gmra.mxu2 %vm333_vm2, %v950_v18  ;;  %2893 = vpow2.f32 %v1038_v21 }
 0x394   :  { %v1035_v40 = vpop.xlane.xlu2 %1034 }
 0x395   :  { %v1037_v11 = vsub.f32 %v3798_v38, %v1035_v40 }
 0x397   :  { %v3905_v28 = vpop.eup %2893  ;;  %v1040_v31 = vmul.f32 1.442695, %v1037_v11 }
 0x398   :  { %v1042_v4 = vsel %vm333_vm2, %v3905_v28, 0.0 }
 0x399   :  { %2622 = vmatmul.msk.f32.gmra.mxu2 %vm333_vm2, %v951_v24  ;;  %1043 = vadd.xlane.f32.xlu0 %v1042_v4 }
 0x39a   :  { %2744 = vrot.lane.b32.xlu2 %v3551_v22, %s3196_s28 }
 0x39c   :  { %v1232_v2 = vpop.xlane.xlu2 %1231 }
 0x39d   :  { %v1236_v60 = vsub.f32 %v3806_v6, %v1232_v2  ;;  %v1338_v6 = vmul.f32 1.442695, %v1336_v8  ;;  %v1540_v2 = vmul.f32 1.442695, %v1537_v37 }
 0x39f   :  { %v1238_v13 = vmul.f32 1.442695, %v1236_v60 }
 0x3a2   :  { %2749 = vrot.lane.b32.xlu2 %v3551_v22, %s3197_s29 }
 0x3aa   :  { %2754 = vrot.lane.b32.xlu2 %v3551_v22, %s3198_s30 }
 0x3ad   :  { %2739 = vrot.lane.b32.xlu0 %v3551_v22, %s3194_s27 }
 0x3b2   :  { %2759 = vrot.lane.b32.xlu2 %v3551_v22, %s3199_s15 }
 0x3b4   :  { %v1435_v21 = vpop.xlane.xlu0 %1434 }
 0x3b5   :  { %v1437_v4 = vsub.f32 %v3822_v44, %v1435_v21 }
 0x3b6   :  { %v835_v39 = vpop.xlane.xlu1 %834 }
 0x3b7   :  { %v837_v5 = vsub.f32 %v3818_v1, %v835_v39  ;;  %v1823_v1 = vpop.f32.mrf.mxu3  ;;  %v1538_v39 = vmul.f32 1.442695, %v1536_v15  ;;  %v1440_v40 = vmul.f32 1.442695, %v1437_v4 }
 0x3b8   :  { %v1827_v41 = vmul.f32 0.35355338, %v1823_v1 }
 0x3b9   :  { %v840_v12 = vmul.f32 1.442695, %v837_v5 }
 0x3ba   :  { %v3939_v7 = vsel %vm3447_vm5, %v1827_v41, -1e+30 }
 0x3bb   :  { %2895 = vpow2.f32 %v840_v12  ;;  %v1833_v14 = vsel %vm333_vm2, %v3939_v7, -inf }
 0x3bc   :  { %2897 = vpow2.f32 %v1140_v29 }
 0x3bd   :  { %2899 = vpow2.f32 %v1040_v31  ;;  %v3991_v31 = vpop.f32.mrf.mxu2 }
 0x3be   :  { %v3925_v34 = vpop.xlane.xlu1 %1731  ;;  %2901 = vpow2.f32 %v1238_v13 }
 0x3bf   :  { %2903 = vpow2.f32 %v1338_v6 }
 0x3c1   :  { %v3923_v19 = vpop.eup %2895 }
 0x3c2   :  { %v845_v53 = vsel %vm333_vm2, %v3923_v19, 0.0  ;;  %v3929_v10 = vpop.eup %2897 }
 0x3c3   :  { %846 = vadd.xlane.f32.xlu1 %v845_v53  ;;  %v1145_v26 = vsel %vm333_vm2, %v3929_v10, 0.0  ;;  %v3948_v20 = vpop.eup %2899 }
 0x3c4   :  { %v3952_v55 = vpop.eup %2901  ;;  %v1045_v61 = vsel %vm333_vm2, %v3948_v20, 0.0  ;;  %v1635_v50 = vpop.xlane.xlu0 %1634 }
 0x3c5   :  { %v1242_v18 = vsel %vm333_vm2, %v3952_v55, 0.0  ;;  %v3961_v59 = vpop.eup %2903 }
 0x3c6   :  { %v1235_v0 = vpop.xlane.xlu1 %1234 }
 0x3c7   :  { %v1237_v38 = vsub.f32 %v3840_v48, %v1235_v0  ;;  %v1830_v48 = vsel %vm333_vm2, %v3946_v16, -inf  ;;  %v1637_v0 = vsub.f32 %v3844_v63, %v1635_v50  ;;  %v2732_v63 = vunpack.i.h.bf16 %v3810_v9 }
 0x3c9   :  { %v1240_v25 = vmul.f32 1.442695, %v1237_v38  ;;  %v2731_v38 = vunpack.i.l.bf16 %v3810_v9  ;;  %v1640_v6 = vmul.f32 1.442695, %v1637_v0 }
 0x3cb   :  { %1146 = vadd.xlane.f32.xlu1 %v1145_v26  ;;  %2905 = vpow2.f32 %v1240_v25  ;;  %v1736_v26 = vsub.f32 %v3832_v42, %v3925_v34 }
 0x3cc   :  { %2907 = vpow2.f32 %v1340_v17 }
 0x3cd   :  { %v1738_v8 = vmul.f32 1.442695, %v1736_v26 }
 0x3ce   :  { %v1432_v45 = vpop.xlane.xlu1 %1431 }
 0x3cf   :  { %v1436_v47 = vsub.f32 %v3854_v56, %v1432_v45  ;;  %v1342_v56 = vsel %vm333_vm2, %v3961_v59, 0.0 }
 0x3d1   :  { %v1438_v54 = vmul.f32 1.442695, %v1436_v47  ;;  %v3965_v24 = vpop.eup %2905  ;;  %v584_v47 = vpop.f32.mrf.mxu2 }
 0x3d2   :  { %v1245_v5 = vsel %vm333_vm2, %v3965_v24, 0.0  ;;  %v3972_v12 = vpop.eup %2907  ;;  %v2783_v26 = vpack.i.bf16 %v584_v47, %v3991_v31 }
 0x3d3   :  { %1834 = vmax.xlane.f32.xlu1 %v1833_v14  ;;  %2909 = vpow2.f32 %v1438_v54  ;;  %v1345_v44 = vsel %vm333_vm2, %v3972_v12, 0.0 }
 0x3d4   :  { %2911 = vpow2.f32 %v1538_v39 }
 0x3d5   :  { %2913 = vpow2.f32 %v1440_v40 }
 0x3d6   :  { %v1632_v46 = vpop.xlane.xlu1 %1631 }
 0x3d7   :  { %1831 = vmax.xlane.f32.xlu0 %v1830_v48  ;;  %v1636_v53 = vsub.f32 %v3860_v33, %v1632_v46 }
 0x3d9   :  { %v3976_v36 = vpop.eup %2909  ;;  %v1638_v49 = vmul.f32 1.442695, %v1636_v53  ;;  %v781_v50 = vpop.f32.mrf.mxu2 }
 0x3da   :  { %v1442_v1 = vsel %vm333_vm2, %v3976_v36, 0.0  ;;  %v3983_v60 = vpop.eup %2911 }
 0x3db   :  { %1046 = vadd.xlane.f32.xlu2 %v1045_v61  ;;  %1243 = vadd.xlane.f32.xlu1 %v1242_v18  ;;  %v3987_v41 = vpop.eup %2913  ;;  %v1542_v33 = vsel %vm333_vm2, %v3983_v60, 0.0 }
 0x3dc   :  { %v1445_v51 = vsel %vm333_vm2, %v3987_v41, 0.0 }
 0x3df   :  { %1343 = vadd.xlane.f32.xlu0 %v1342_v56 }
 0x3e3   :  { %1246 = vadd.xlane.f32.xlu1 %v1245_v5 }
 0x3e4   :  { %v445_v29 = vpop.xlane.xlu2 %444 }
 0x3e7   :  { %1346 = vadd.xlane.f32.xlu0 %v1345_v44 }
 0x3eb   :  { %1443 = vadd.xlane.f32.xlu1 %v1442_v1  ;;  %v442_v11 = vpop.xlane.xlu0 %441 }
 0x3ec   :  { %2915 = vrcp.f32 %v442_v11  ;;  %v1144_v32 = vpop.xlane.xlu2 %1143 }
 0x3ed   :  { %2917 = vpow2.f32 %v1540_v2  ;;  %v784_v2 = vpop.f32.mrf.mxu2 }
 0x3ee   :  { %2919 = vpow2.f32 %v1638_v49 }
 0x3ef   :  { %1543 = vadd.xlane.f32.xlu0 %v1542_v33  ;;  %2921 = vrcp.f32 %v445_v29 }
 0x3f0   :  { %2923 = vpow2.f32 %v1738_v8 }
 0x3f1   :  { %2925 = vrcp.f32 %v1144_v32 }
 0x3f2   :  { %v2916_v13 = vpop.eup %2915  ;;  %2927 = vpow2.f32 %v1640_v6 }
 0x3f3   :  { %2764 = vrot.lane.b32.xlu2 %v3551_v22, %s3200_s16  ;;  %1446 = vadd.xlane.f32.xlu1 %v1445_v51  ;;  %v448_v42 = vmul.f32 %v2916_v13, %v3875_v35  ;;  %v3999_v34 = vpop.eup %2917  ;;  %v644_v45 = vpop.xlane.xlu0 %643 }
 0x3f4   :  { %v1735_v14 = vpop.xlane.xlu2 %1734  ;;  %v4005_v27 = vpop.eup %2919  ;;  %v1545_v35 = vsel %vm333_vm2, %v3999_v34, 0.0  ;;  %2929 = vrcp.f32 %v644_v45 }
 0x3f5   :  { %2591 = vmatmul.msk.f32.vlgmr.msrb.gmra.mxu0 %vm333_vm2, %v448_v42  ;;  %v1737_v25 = vsub.f32 %v3887_v30, %v1735_v14  ;;  %v2922_v48 = vpop.eup %2921  ;;  %v1642_v9 = vsel %vm333_vm2, %v4005_v27, 0.0  ;;  %v647_v18 = vpop.xlane.xlu1 %646 }
 0x3f6   :  { %878 = vmatpush.msrb.mxu0 %v2731_v38  ;;  %v449_v30 = vmul.f32 %v2922_v48, %v3868_v23  ;;  %v4014_v61 = vpop.eup %2923 }
 0x3f7   :  { %1546 = vadd.xlane.f32.xlu0 %v1545_v35  ;;  %v1740_v17 = vmul.f32 1.442695, %v1737_v25  ;;  %v2926_v54 = vpop.eup %2925  ;;  %v1742_v4 = vsel %vm333_vm2, %v4014_v61, 0.0 }
 0x3f8   :  { %879 = vmatpush.msrb.mxu0 %v2732_v63  ;;  %v4017_v56 = vpop.eup %2927  ;;  %v1150_v23 = vmul.f32 %v2926_v54, %v3873_v3 }
 0x3f9   :  { %2931 = vpow2.f32 %v1740_v17  ;;  %v1645_v29 = vsel %vm333_vm2, %v4017_v56, 0.0 }
 0x3fa   :  { %v2930_v39 = vpop.eup %2929  ;;  %2933 = vrcp.f32 %v647_v18 }
 0x3fb   :  { %2769 = vrot.lane.b32.xlu2 %v3551_v22, %s3179_s14  ;;  %1643 = vadd.xlane.f32.xlu1 %v1642_v9  ;;  %v650_v40 = vmul.f32 %v2930_v39, %v3882_v57 }
 0x3fc   :  { %v2745_v21 = vpop.permute.xlu2 %2744 }
 0x3fd   :  { %2592 = vmatmul.msk.f32.gmra.mxu0 %vm333_vm2, %v449_v30  ;;  %v2746_v15 = vunpack.i.l.bf16 %v2745_v21  ;;  %v2747_v5 = vunpack.i.h.bf16 %v2745_v21  ;;  %v844_v3 = vpop.xlane.xlu1 %843 }
 0x3fe   :  { %2935 = vrcp.f32 %v844_v3 }
 0x3ff   :  { %1743 = vadd.xlane.f32.xlu0 %v1742_v4  ;;  %1178 = vmatpush.msrb.mxu2 %v2746_v15  ;;  %v4028_v37 = vpop.eup %2931 }
 0x400   :  { %v1745_v44 = vsel %vm333_vm2, %v4028_v37, 0.0  ;;  %v2934_v53 = vpop.eup %2933 }
 0x401   :  { %1179 = vmatpush.msrb.mxu2 %v2747_v5  ;;  %v651_v57 = vmul.f32 %v2934_v53, %v3891_v52  ;;  %v2788_v52 = vpack.i.bf16 %v784_v2, %v781_v50 }
 0x402   :  { %2633 = vmatmul.msk.f32.vlgmr.msrb.gmra.mxu2 %vm333_vm2, %v1150_v23 }
 0x403   :  { %2774 = vrot.lane.b32.xlu2 %v3551_v22, %s3187_s21  ;;  %1646 = vadd.xlane.f32.xlu1 %v1645_v29 }
 0x404   :  { %v2750_v46 = vpop.permute.xlu2 %2749  ;;  %v2936_v49 = vpop.eup %2935 }
 0x405   :  { %2603 = vmatmul.msk.f32.vlgmr.msra.gmra.mxu0 %vm333_vm2, %v650_v40  ;;  %v850_v33 = vmul.f32 %v2936_v49, %v3897_v43  ;;  %v2751_v31 = vunpack.i.l.bf16 %v2750_v46  ;;  %v2752_v43 = vunpack.i.h.bf16 %v2750_v46 }
 0x407   :  { %1746 = vadd.xlane.f32.xlu0 %v1745_v44 }
 0x40b   :  { %2779 = vrot.lane.b32.xlu2 %v3551_v22, %s3182_s23 }
 0x40c   :  { %v2755_v1 = vpop.permute.xlu2 %2754  ;;  %v1044_v22 = vpop.xlane.xlu0 %1043 }
 0x40d   :  { %2604 = vmatmul.msk.f32.gmra.mxu0 %vm333_vm2, %v651_v57  ;;  %v2756_v11 = vunpack.i.l.bf16 %v2755_v1  ;;  %v2757_v32 = vunpack.i.h.bf16 %v2755_v1 }
 0x40f   :  { %1378 = vmatpush.msra.mxu2 %v2756_v11 }
 0x411   :  { %1379 = vmatpush.msra.mxu2 %v2757_v32 }
 0x413   :  { %2784 = vrot.lane.b32.xlu2 %v2783_v26, %s3187_s21 }
 0x414   :  { %v981_v0 = vpop.f32.mrf.mxu2  ;;  %v2760_v35 = vpop.permute.xlu2 %2759 }
 0x415   :  { %2615 = vmatmul.msk.f32.vlgmr.msrb.gmra.mxu0 %vm333_vm2, %v850_v33  ;;  %v2761_v30 = vunpack.i.l.bf16 %v2760_v35  ;;  %v2762_v18 = vunpack.i.h.bf16 %v2760_v35 }
 0x41b   :  { %2789 = vrot.lane.b32.xlu2 %v2788_v52, %s3200_s16 }
 0x41c   :  { %v984_v13 = vpop.f32.mrf.mxu2 }
 0x41d   :  { %v2793_v8 = vpack.i.bf16 %v984_v13, %v981_v0 }
 0x41f   :  { %2794 = vrot.lane.b32.xlu0 %v2793_v8, %s3198_s30  ;;  %v2740_v51 = vpop.permute.xlu0 %2739 }
 0x420   :  { %v2741_v42 = vunpack.i.l.bf16 %v2740_v51  ;;  %v2742_v38 = vunpack.i.h.bf16 %v2740_v51 }
 0x422   :  { %1078 = vmatpush.msra.mxu0 %v2741_v42 }
 0x424   :  { %1079 = vmatpush.msra.mxu0 %v2742_v38 }
 0x426   :  { %1278 = vmatpush.msrb.mxu0 %v2751_v31 }
 0x428   :  { %1279 = vmatpush.msrb.mxu0 %v2752_v43 }
 0x436   :  { %v847_v6 = vpop.xlane.xlu1 %846 }
 0x437   :  { %2937 = vrcp.f32 %v847_v6 }
 0x438   :  { %2939 = vrcp.f32 %v1044_v22 }
 0x43d   :  { %v2938_v14 = vpop.eup %2937 }
 0x43e   :  { %v1147_v63 = vpop.xlane.xlu1 %1146  ;;  %v851_v25 = vmul.f32 %v2938_v14, %v3923_v19  ;;  %v2940_v45 = vpop.eup %2939 }
 0x43f   :  { %2941 = vrcp.f32 %v1147_v63  ;;  %v1050_v47 = vmul.f32 %v2940_v45, %v3905_v28 }
 0x440   :  { %2616 = vmatmul.msk.f32.gmra.mxu0 %vm333_vm2, %v851_v25 }
 0x445   :  { %v2942_v48 = vpop.eup %2941 }
 0x446   :  { %v1835_v17 = vpop.xlane.xlu1 %1834  ;;  %v1151_v9 = vmul.f32 %v2942_v48, %v3929_v10 }
 0x447   :  { %v1837_v54 = vsub.f32 %v3939_v7, %v1835_v17 }
 0x448   :  { %2627 = vmatmul.msk.f32.vlgmr.msra.gmra.mxu0 %vm333_vm2, %v1050_v47  ;;  %2634 = vmatmul.msk.f32.gmra.mxu2 %vm333_vm2, %v1151_v9 }
 0x449   :  { %1478 = vmatpush.msra.mxu0 %v2761_v30  ;;  %v1840_v28 = vmul.f32 1.442695, %v1837_v54 }
 0x44a   :  { %v1832_v21 = vpop.xlane.xlu0 %1831 }
 0x44b   :  { %1479 = vmatpush.msra.mxu0 %v2762_v18  ;;  %v1836_v19 = vsub.f32 %v3946_v16, %v1832_v21 }
 0x44d   :  { %v1838_v15 = vmul.f32 1.442695, %v1836_v19 }
 0x44e   :  { %v1047_v4 = vpop.xlane.xlu2 %1046  ;;  %v1244_v39 = vpop.xlane.xlu1 %1243 }
 0x44f   :  { %2943 = vrcp.f32 %v1047_v4 }
 0x450   :  { %2945 = vpow2.f32 %v1838_v15 }
 0x452   :  { %v1344_v10 = vpop.xlane.xlu0 %1343 }
 0x453   :  { %2947 = vrcp.f32 %v1344_v10 }
 0x454   :  { %2949 = vrcp.f32 %v1244_v39 }
 0x455   :  { %v2944_v5 = vpop.eup %2943  ;;  %2951 = vpow2.f32 %v1840_v28 }
 0x456   :  { %v4051_v23 = vpop.eup %2945  ;;  %v2765_v50 = vpop.permute.xlu2 %2764  ;;  %v1051_v29 = vmul.f32 %v2944_v5, %v3948_v20 }
 0x457   :  { %v1247_v40 = vpop.xlane.xlu1 %1246  ;;  %v2766_v16 = vunpack.i.l.bf16 %v2765_v50  ;;  %v1842_v7 = vsel %vm333_vm2, %v4051_v23, 0.0  ;;  %v2767_v46 = vunpack.i.h.bf16 %v2765_v50 }
 0x458   :  { %1843 = vadd.xlane.f32.xlu1 %v1842_v7  ;;  %2628 = vmatmul.msk.f32.gmra.mxu0 %vm333_vm2, %v1051_v29 }
 0x459   :  { %1578 = vmatpush.msrb.mxu2 %v2766_v16  ;;  %v2948_v3 = vpop.eup %2947 }
 0x45a   :  { %v2950_v44 = vpop.eup %2949  ;;  %v1350_v53 = vmul.f32 %v2948_v3, %v3961_v59  ;;  %v1347_v57 = vpop.xlane.xlu0 %1346 }
 0x45b   :  { %1579 = vmatpush.msrb.mxu2 %v2767_v46  ;;  %v4058_v2 = vpop.eup %2951  ;;  %2953 = vrcp.f32 %v1347_v57  ;;  %v1250_v20 = vmul.f32 %v2950_v44, %v3952_v55 }
 0x45c   :  { %2955 = vrcp.f32 %v1247_v40  ;;  %2645 = vmatmul.msk.f32.vlgmr.msra.gmra.mxu2 %vm333_vm2, %v1350_v53  ;;  %v1845_v32 = vsel %vm333_vm2, %v4058_v2, 0.0 }
 0x45e   :  { %v2770_v1 = vpop.permute.xlu2 %2769 }
 0x45f   :  { %v1444_v11 = vpop.xlane.xlu1 %1443  ;;  %v2771_v49 = vunpack.i.l.bf16 %v2770_v1  ;;  %v2772_v59 = vunpack.i.h.bf16 %v2770_v1 }
 0x460   :  { %1846 = vadd.xlane.f32.xlu1 %v1845_v32  ;;  %2639 = vmatmul.msk.f32.vlgmr.msrb.gmra.mxu0 %vm333_vm2, %v1250_v20 }
 0x461   :  { %1678 = vmatpush.msrb.mxu0 %v2771_v49  ;;  %v2954_v26 = vpop.eup %2953 }
 0x462   :  { %v2956_v33 = vpop.eup %2955  ;;  %v1544_v0 = vpop.xlane.xlu0 %1543  ;;  %v1351_v22 = vmul.f32 %v2954_v26, %v3972_v12 }
 0x463   :  { %1679 = vmatpush.msrb.mxu0 %v2772_v59  ;;  %2957 = vrcp.f32 %v1544_v0  ;;  %v1251_v13 = vmul.f32 %v2956_v33, %v3965_v24 }
 0x464   :  { %2959 = vrcp.f32 %v1444_v11  ;;  %2646 = vmatmul.msk.f32.gmra.mxu2 %vm333_vm2, %v1351_v22 }
 0x466   :  { %v2775_v55 = vpop.permute.xlu2 %2774 }
 0x467   :  { %v1447_v52 = vpop.xlane.xlu1 %1446  ;;  %v2776_v8 = vunpack.i.l.bf16 %v2775_v55  ;;  %v2777_v51 = vunpack.i.h.bf16 %v2775_v55 }
 0x468   :  { %2640 = vmatmul.msk.f32.gmra.mxu0 %vm333_vm2, %v1251_v13 }
 0x469   :  { %1778 = vmatpush.msra.mxu2 %v2776_v8  ;;  %v2958_v42 = vpop.eup %2957 }
 0x46a   :  { %v2960_v38 = vpop.eup %2959  ;;  %v1550_v31 = vmul.f32 %v2958_v42, %v3983_v60  ;;  %v1547_v43 = vpop.xlane.xlu0 %1546 }
 0x46b   :  { %1779 = vmatpush.msra.mxu2 %v2777_v51  ;;  %2961 = vrcp.f32 %v1547_v43  ;;  %v1450_v12 = vmul.f32 %v2960_v38, %v3976_v36  ;;  %v2065_v38 = vld [vmem:[#allocation8 + $0x78] sm:$0xff]  ;;  %v2063_v43 = vld [vmem:[#allocation8 + $0x68] sm:$0xff] }
 0x46c   :  { %2963 = vrcp.f32 %v1447_v52  ;;  %2657 = vmatmul.msk.f32.vlgmr.msrb.gmra.mxu2 %vm333_vm2, %v1550_v31  ;;  %v2064_v31 = vld [vmem:[#allocation8 + $0x70] sm:$0xff]  ;;  %2070 = vmatpush.msrb.mxu1 %v2065_v38 }
 0x46e   :  { %v2780_v6 = vpop.permute.xlu2 %2779  ;;  %2071 = vmatpush.msrb.mxu1 %v2064_v31 }
 0x46f   :  { %v2781_v14 = vunpack.i.l.bf16 %v2780_v6  ;;  %v1644_v24 = vpop.xlane.xlu1 %1643  ;;  %v2782_v63 = vunpack.i.h.bf16 %v2780_v6  ;;  %v2061_v6 = vld [vmem:[#allocation8 + $0x58] sm:$0xff] }
 0x470   :  { %2651 = vmatmul.msk.f32.vlgmr.msra.gmra.mxu0 %vm333_vm2, %v1450_v12  ;;  %v2062_v12 = vld [vmem:[#allocation8 + $0x60] sm:$0xff]  ;;  %2072 = vmatpush.msrb.mxu1 %v2063_v43 }
 0x471   :  { %1878 = vmatpush.msra.mxu0 %v2781_v14  ;;  %v2962_v25 = vpop.eup %2961  ;;  %v2060_v14 = vld [vmem:[#allocation8 + $0x50] sm:$0xff] }
 0x472   :  { %v481_v45 = vpop.f32.mrf.mxu0  ;;  %v2964_v35 = vpop.eup %2963  ;;  %v1551_v60 = vmul.f32 %v2962_v25, %v3999_v34  ;;  %2073 = vmatpush.msrb.mxu1 %v2062_v12  ;;  %v2057_v25 = vld [vmem:[#allocation8 + $0x38] sm:$0xff] }
 0x473   :  { %v1744_v48 = vpop.xlane.xlu0 %1743  ;;  %1879 = vmatpush.msra.mxu0 %v2782_v63  ;;  %v1451_v36 = vmul.f32 %v2964_v35, %v3987_v41  ;;  %v2058_v63 = vld [vmem:[#allocation8 + $0x40] sm:$0xff]  ;;  %v2055_v35 = vld [vmem:[#allocation8 + $0x28] sm:$0xff] }
 0x474   :  { %2965 = vrcp.f32 %v1744_v48  ;;  %2658 = vmatmul.msk.f32.gmra.mxu2 %vm333_vm2, %v1551_v60  ;;  %2074 = vmatpush.msrb.mxu1 %v2061_v6  ;;  %v2054_v48 = vld [vmem:[#allocation8 + $0x20] sm:$0xff]  ;;  %v2053_v60 = vld [vmem:[#allocation8 + $0x18] sm:$0xff] }
 0x475   :  { %2967 = vrcp.f32 %v1644_v24  ;;  %v2059_v24 = vld [vmem:[#allocation8 + $0x48] sm:$0xff] }
 0x476   :  { %2075 = vmatpush.msrb.mxu1 %v2060_v14 }
 0x477   :  { %v1647_v17 = vpop.xlane.xlu1 %1646 }
 0x478   :  { %2652 = vmatmul.msk.f32.gmra.mxu0 %vm333_vm2, %v1451_v36  ;;  %2076 = vmatpush.msrb.mxu1 %v2059_v24  ;;  %v2052_v36 = vld [vmem:[#allocation8 + $0x10] sm:$0xff] }
 0x47a   :  { %v2966_v47 = vpop.eup %2965  ;;  %v484_v9 = vpop.f32.mrf.mxu0  ;;  %2077 = vmatpush.msrb.mxu1 %v2058_v63 }
 0x47b   :  { %v2968_v30 = vpop.eup %2967  ;;  %v1750_v18 = vmul.f32 %v2966_v47, %v4014_v61  ;;  %v1747_v21 = vpop.xlane.xlu0 %1746  ;;  %v2813_v46 = vpack.i.bf16 %v484_v9, %v481_v45  ;;  %v2056_v45 = vld [vmem:[#allocation8 + $0x30] sm:$0xff]  ;;  %v2051_v47 = vld [vmem:[#allocation8 + $0x8] sm:$0xff] }
 0x47c   :  { %2969 = vrcp.f32 %v1747_v21  ;;  %v1650_v34 = vmul.f32 %v2968_v30, %v4005_v27  ;;  %2078 = vmatpush.msrb.mxu1 %v2057_v25 }
 0x47d   :  { %2971 = vrcp.f32 %v1647_v17  ;;  %2669 = vmatmul.msk.f32.vlgmr.msra.gmra.mxu2 %vm333_vm2, %v1750_v18  ;;  %v2785_v17 = vpop.permute.xlu2 %2784 }
 0x47e   :  { %2079 = vmatpush.msrb.mxu1 %v2056_v45 }
 0x480   :  { %2663 = vmatmul.msk.f32.vlgmr.msrb.gmra.mxu0 %vm333_vm2, %v1650_v34  ;;  %2080 = vmatpush.msrb.mxu1 %v2055_v35 }
 0x482   :  { %v2970_v19 = vpop.eup %2969  ;;  %v681_v54 = vpop.f32.mrf.mxu0  ;;  %2081 = vmatpush.msrb.mxu1 %v2054_v48 }
 0x483   :  { %v2972_v41 = vpop.eup %2971  ;;  %v1751_v15 = vmul.f32 %v2970_v19, %v4028_v37 }
 0x484   :  { %v1651_v4 = vmul.f32 %v2972_v41, %v4017_v56  ;;  %2082 = vmatpush.msrb.mxu1 %v2053_v60 }
 0x485   :  { %2670 = vmatmul.msk.f32.gmra.mxu2 %vm333_vm2, %v1751_v15  ;;  %v1181_v10 = vpop.f32.mrf.mxu2  ;;  %v2790_v30 = vpop.permute.xlu2 %2789 }
 0x486   :  { %2083 = vmatpush.msrb.mxu1 %v2052_v36 }
 0x488   :  { %2664 = vmatmul.msk.f32.gmra.mxu0 %vm333_vm2, %v1651_v4  ;;  %2084 = vmatpush.msrb.mxu1 %v2051_v47 }
 0x48a   :  { %v684_v61 = vpop.f32.mrf.mxu0 }
 0x48b   :  { %v2818_v39 = vpack.i.bf16 %v684_v61, %v681_v54  ;;  %v2786_v61 = vunpack.i.l.bf16 %v2785_v17 }
 0x491   :  { %v2795_v9 = vpop.permute.xlu0 %2794 }
 0x492   :  { %v881_v28 = vpop.f32.mrf.mxu0 }
 0x4bd   :  { %v884_v5 = vpop.f32.mrf.mxu0 }
 0x4be   :  { %v2823_v32 = vpack.i.bf16 %v884_v5, %v881_v28 }
 0x4c5   :  { %v1081_v29 = vpop.f32.mrf.mxu0 }
 0x4cb   :  { %v1844_v50 = vpop.xlane.xlu1 %1843  ;;  %v1184_v27 = vpop.f32.mrf.mxu2 }
 0x4cc   :  { %2973 = vrcp.f32 %v1844_v50  ;;  %v2798_v40 = vpack.i.bf16 %v1184_v27, %v1181_v10  ;;  %v2050_v50 = vld [vmem:[#allocation8] sm:$0xff]  ;;  %v2791_v27 = vunpack.i.l.bf16 %v2790_v30 }
 0x4cd   :  { %2085 = vmatpush.msrb.mxu1 %v2050_v50  ;;  %v2998_v50 = vld [vmem:[#allocation2 + $0x8] sm:$0xff] }
 0x4ce   :  { %2799 = vrot.lane.b32.xlu0 %v2798_v40, %s3196_s28 }
 0x4d2   :  { %v2974_v16 = vpop.eup %2973 }
 0x4d3   :  { %v1850_v37 = vmul.f32 %v2974_v16, %v4051_v23  ;;  %v1847_v7 = vpop.xlane.xlu1 %1846 }
 0x4d4   :  { %2975 = vrcp.f32 %v1847_v7 }
 0x4d5   :  { %v1084_v56 = vpop.f32.mrf.mxu0  ;;  %2675 = vmatmul.msk.f32.vlgmr.msra.gmra.mxu0 %vm333_vm2, %v1850_v37  ;;  %v2787_v37 = vunpack.i.h.bf16 %v2785_v17 }
 0x4d6   :  { %2814 = vrot.lane.b32.xlu0 %v2813_v46, %s3182_s23  ;;  %v2796_v46 = vunpack.i.l.bf16 %v2795_v9 }
 0x4da   :  { %v2976_v3 = vpop.eup %2975 }
 0x4db   :  { %v1851_v44 = vmul.f32 %v2976_v3, %v4058_v2  ;;  %v2828_v2 = vpack.i.bf16 %v1084_v56, %v1081_v29 }
 0x4dd   :  { %v1281_v53 = vpop.f32.mrf.mxu0  ;;  %2676 = vmatmul.msk.f32.gmra.mxu0 %vm333_vm2, %v1851_v44 }
 0x4df   :  { %v1381_v57 = vpop.f32.mrf.mxu2 }
 0x4e5   :  { %v1284_v20 = vpop.f32.mrf.mxu0 }
 0x4e6   :  { %v2833_v13 = vpack.i.bf16 %v1284_v20, %v1281_v53  ;;  %v2792_v53 = vunpack.i.h.bf16 %v2790_v30 }
 0x4e7   :  { %v1384_v1 = vpop.f32.mrf.mxu2 }
 0x4e8   :  { %v2803_v11 = vpack.i.bf16 %v1384_v1, %v1381_v57 }
 0x4ea   :  { %2804 = vrot.lane.b32.xlu2 %v2803_v11, %s3195_s0 }
 0x4ed   :  { %v1481_v23 = vpop.f32.mrf.mxu0 }
 0x4ef   :  { %v1581_v49 = vpop.f32.mrf.mxu2 }
 0x4f2   :  { %2824 = vrot.lane.b32.xlu2 %v2823_v32, %s3199_s15 }
 0x4f5   :  { %v1484_v59 = vpop.f32.mrf.mxu0 }
 0x4f6   :  { %v2838_v26 = vpack.i.bf16 %v1484_v59, %v1481_v23 }
 0x4f7   :  { %v1584_v33 = vpop.f32.mrf.mxu2 }
 0x4f8   :  { %2839 = vrot.lane.b32.xlu0 %v2838_v26, %s3192_s26  ;;  %v2808_v0 = vpack.i.bf16 %v1584_v33, %v1581_v49  ;;  %v2797_v26 = vunpack.i.h.bf16 %v2795_v9 }
 0x4fa   :  { %2809 = vrot.lane.b32.xlu1 %v2808_v0, %s3193_s3  ;;  %2829 = vrot.lane.b32.xlu2 %v2828_v2, %s3197_s29 }
 0x4fd   :  { %v1681_v22 = vpop.f32.mrf.mxu0 }
 0x500   :  { %v1781_v55 = vpop.f32.mrf.mxu2 }
 0x501   :  { %1993 = vrot.lane.b32.xlu0 %v1781_v55, %s3191_s25 }
 0x502   :  { %2819 = vrot.lane.b32.xlu1 %v2818_v39, %s3179_s14  ;;  %1985 = vrot.lane.b32.xlu2 %v1681_v22, %s3190_s9 }
 0x505   :  { %v1684_v8 = vpop.f32.mrf.mxu0 }
 0x508   :  { %v1784_v52 = vpop.f32.mrf.mxu2 }
 0x509   :  { %1995 = vrot.lane.b32.xlu0 %v1784_v52, %s3191_s25 }
 0x50a   :  { %2834 = vrot.lane.b32.xlu1 %v2833_v13, %s3194_s27  ;;  %1987 = vrot.lane.b32.xlu2 %v1684_v8, %s3190_s9 }
 0x540   :  { %v2800_v18 = vpop.permute.xlu0 %2799 }
 0x541   :  { %v2801_v32 = vunpack.i.l.bf16 %v2800_v18  ;;  %v2802_v38 = vunpack.i.h.bf16 %v2800_v18 }
 0x544   :  { %v4106_v34 = vpop.permute.xlu2 %2804 }
 0x545   :  { %v2806_v0 = vunpack.i.l.bf16 %v4106_v34  ;;  %v2807_v14 = vunpack.i.h.bf16 %v4106_v34 }
 0x548   :  { %v2815_v19 = vpop.permute.xlu0 %2814 }
 0x549   :  { %v2816_v54 = vunpack.i.l.bf16 %v2815_v19  ;;  %v2817_v10 = vunpack.i.h.bf16 %v2815_v19 }
 0x54b   :  { %v2007_v15 = vsel %vm293_vm0, %v3734_v58, %v2816_v54  ;;  %v2008_v29 = vsel %vm293_vm0, %v3738_v62, %v2817_v10  ;;  %vm2041_vm0 = vcmask 850944  }
 0x54c   :  { %v2825_v39 = vpop.permute.xlu2 %2824  ;;  %v2009_v28 = vsel %vm333_vm2, %v2007_v15, %v2786_v61  ;;  %v2010_v3 = vsel %vm333_vm2, %v2008_v29, %v2787_v37  ;;  %vm2047_vm2 = vcmask 982016   ;;  %v2185_v37 = vld [vmem:[#allocation10 + $0xf8] sm:$0xff] }
 0x54d   :  { %v2826_v58 = vunpack.i.l.bf16 %v2825_v39  ;;  %v2827_v11 = vunpack.i.h.bf16 %v2825_v39  ;;  %2215 = vmatpush.msra.mxu3 %v2185_v37 }
 0x552   :  { %v1881_v51 = vpop.f32.mrf.mxu0 }
 0x553   :  { %2001 = vrot.lane.b32.xlu1 %v1881_v51, %s3189_s7 }
 0x554   :  { %v2830_v56 = vpop.permute.xlu2 %2829 }
 0x555   :  { %v2831_v1 = vunpack.i.l.bf16 %v2830_v56  ;;  %v2832_v52 = vunpack.i.h.bf16 %v2830_v56 }
 0x55a   :  { %v1884_v42 = vpop.f32.mrf.mxu0 }
 0x55b   :  { %2003 = vrot.lane.b32.xlu1 %v1884_v42, %s3189_s7 }
 0x55c   :  { %v1986_v24 = vpop.permute.xlu2 %1985 }
 0x564   :  { %v1988_v18 = vpop.permute.xlu2 %1987 }
 0x56a   :  { %v2840_v22 = vpop.permute.xlu0 %2839 }
 0x56b   :  { %v2841_v8 = vunpack.i.l.bf16 %v2840_v22  ;;  %v2842_v45 = vunpack.i.h.bf16 %v2840_v22  ;;  %v2177_v22 = vld [vmem:[#allocation10 + $0xb8] sm:$0xff] }
 0x56c   :  { %v4104_v21 = vpop.permute.xlu1 %2809 }
 0x56d   :  { %v2811_v43 = vunpack.i.l.bf16 %v4104_v21  ;;  %v2812_v36 = vunpack.i.h.bf16 %v4104_v21  ;;  %v2997_v21 = vld [vmem:[#allocation2] sm:$0xff] }
 0x573   :  { %v1994_v35 = vpop.permute.xlu0 %1993 }
 0x574   :  { %v2820_v41 = vpop.permute.xlu1 %2819 }
 0x575   :  { %v2821_v4 = vunpack.i.l.bf16 %v2820_v41  ;;  %v2822_v16 = vunpack.i.h.bf16 %v2820_v41 }
 0x577   :  { %v2012_v5 = vsel %vm2011_vm6, %v2009_v28, %v2821_v4  ;;  %v2013_v44 = vsel %vm2011_vm6, %v2010_v3, %v2822_v16  ;;  %v2843_v4 = vld [vmem:[%s4284_s4] ss:$0 sm:$0xff]  ;;  %v2184_v16 = vld [vmem:[#allocation10 + $0xf0] sm:$0xff] }
 0x578   :  { %v2015_v40 = vsel %vm2014_vm7, %v2012_v5, %v2791_v27  ;;  %v2016_v62 = vsel %vm2014_vm7, %v2013_v44, %v2792_v53  ;;  %2192 = vmatpush.msrb.mxu2 %v2184_v16 }
 0x579   :  { %v2018_v7 = vsel %vm2017_vm8, %v2015_v40, %v2826_v58  ;;  %v2019_v59 = vsel %vm2017_vm8, %v2016_v62, %v2827_v11  ;;  %v3201_v40 = vmov 128.0  }
 0x57a   :  { %v2021_v57 = vsel %vm2020_vm9, %v2018_v7, %v2796_v46  ;;  %v2022_v55 = vsel %vm2020_vm9, %v2019_v59, %v2797_v26  ;;  %2977 = vrcp.f32 %v3201_v40  ;;  %v2182_v7 = vld [vmem:[#allocation10 + $0xe0] sm:$0xff]  ;;  %v2183_v46 = vld [vmem:[#allocation10 + $0xe8] sm:$0xff]  ;;  %v2180_v59 = vld [vmem:[#allocation10 + $0xd0] sm:$0xff] }
 0x57b   :  { %v2024_v23 = vsel %vm2023_vm10, %v2021_v57, %v2831_v1  ;;  %v2025_v51 = vsel %vm2023_vm10, %v2022_v55, %v2832_v52  ;;  %v1996_v19 = vpop.permute.xlu0 %1995  ;;  %2193 = vmatpush.msrb.mxu2 %v2182_v7  ;;  %2216 = vmatpush.msra.mxu3 %v2183_v46  ;;  %v2181_v26 = vld [vmem:[#allocation10 + $0xd8] sm:$0xff]  ;;  %v2174_v55 = vld [vmem:[#allocation10 + $0xa0] sm:$0xff]  ;;  %v2175_v52 = vld [vmem:[#allocation10 + $0xa8] sm:$0xff] }
 0x57c   :  { %v2835_v20 = vpop.permute.xlu1 %2834  ;;  %v2027_v33 = vsel %vm2026_vm11, %v2024_v23, %v2801_v32  ;;  %v2028_v12 = vsel %vm2026_vm11, %v2025_v51, %v2802_v38  ;;  %v2170_v51 = vld [vmem:[#allocation10 + $0x80] sm:$0xff]  ;;  %v2168_v38 = vld [vmem:[#allocation10 + $0x70] sm:$0xff] }
 0x57d   :  { %v2836_v49 = vunpack.i.l.bf16 %v2835_v20  ;;  %v2837_v42 = vunpack.i.h.bf16 %v2835_v20  ;;  %2194 = vmatpush.msrb.mxu2 %v2180_v59  ;;  %2217 = vmatpush.msra.mxu3 %v2181_v26  ;;  %v2452_v59 = vld [vmem:[#allocation11 + $0xf8] sm:$0xff]  ;;  %v2186_v26 = vld [vmem:[%s4288_s8] sm:$0x3] }
 0x57e   :  { %2480 = vmatpush.msra.mxu1 %v2452_v59 }
 0x57f   :  { %v2030_v2 = vsel %vm2029_vm12, %v2027_v33, %v2836_v49  ;;  %v2031_v6 = vsel %vm2029_vm12, %v2028_v12, %v2837_v42  ;;  %v2178_v33 = vld [vmem:[#allocation10 + $0xc0] sm:$0xff]  ;;  %v2171_v42 = vld [vmem:[#allocation10 + $0x88] sm:$0xff] }
 0x580   :  { %v2033_v13 = vsel %vm2032_vm13, %v2030_v2, %v2806_v0  ;;  %v2034_v25 = vsel %vm2032_vm13, %v2031_v6, %v2807_v14  ;;  %v2978_v29 = vpop.eup %2977  ;;  %v2179_v2 = vld [vmem:[#allocation10 + $0xc8] sm:$0xff]  ;;  %2195 = vmatpush.msrb.mxu2 %v2178_v33  ;;  %v2176_v0 = vld [vmem:[#allocation10 + $0xb0] sm:$0xff]  ;;  %v2165_v14 = vld [vmem:[#allocation10 + $0x58] sm:$0xff] }
 0x581   :  { %v2036_v31 = vsel %vm2035_vm14, %v2033_v13, %v2841_v8  ;;  %v2037_v60 = vsel %vm2035_vm14, %v2034_v25, %v2842_v45  ;;  %v2102_v58 = vmul.f32 128.0, %v2978_v29  ;;  %vm2106_vm3 = vweird.f32 %v2978_v29  ;;  %2218 = vmatpush.msra.mxu3 %v2179_v2  ;;  %v2172_v13 = vld [vmem:[#allocation10 + $0x90] sm:$0xff]  ;;  %v2173_v8 = vld [vmem:[#allocation10 + $0x98] sm:$0xff]  ;;  %v2167_v12 = vld [vmem:[#allocation10 + $0x68] sm:$0xff] }
 0x582   :  { %v2039_v63 = vsel %vm2038_vm15, %v2036_v31, %v2811_v43  ;;  %v2040_v30 = vsel %vm2038_vm15, %v2037_v60, %v2812_v36  ;;  %2196 = vmatpush.msrb.mxu2 %v2176_v0  ;;  %v2169_v31 = vld [vmem:[#allocation10 + $0x78] sm:$0xff]  ;;  %v2166_v43 = vld [vmem:[#allocation10 + $0x60] sm:$0xff]  ;;  %v2164_v6 = vld [vmem:[#allocation10 + $0x50] sm:$0xff]  ;;  %v2188_v0 = vperm.slane %v2186_v26, 0 }
 0x583   :  { %v2042_v48 = vsel %vm2041_vm0, %v2039_v63, %v1986_v24  ;;  %v2043_v34 = vsel %vm2041_vm0, %v2040_v30, %v1988_v18  ;;  %v2103_v56 = vsub.f32 1.0, %v2102_v58  ;;  %2219 = vmatpush.msra.mxu3 %v2177_v22  ;;  %v2162_v24 = vld [vmem:[#allocation10 + $0x40] sm:$0xff]  ;;  %v2163_v63 = vld [vmem:[#allocation10 + $0x48] sm:$0xff]  ;;  %v2160_v25 = vld [vmem:[#allocation10 + $0x30] sm:$0xff]  ;;  %v2189_v22 = vperm.slane %v2186_v26, 1 }
 0x584   :  { %v2045_v47 = vsel %vm2044_vm1, %v2042_v48, %v1994_v35  ;;  %v2046_v41 = vsel %vm2044_vm1, %v2043_v34, %v1996_v19  ;;  %2197 = vmatpush.msrb.mxu2 %v2174_v55  ;;  %v2161_v45 = vld [vmem:[#allocation10 + $0x38] sm:$0xff]  ;;  %v2158_v35 = vld [vmem:[#allocation10 + $0x20] sm:$0xff]  ;;  %v2159_v48 = vld [vmem:[#allocation10 + $0x28] sm:$0xff] }
 0x585   :  { %v2104_v3 = vmul.f32 %v2978_v29, %v2103_v56  ;;  %2220 = vmatpush.msra.mxu3 %v2175_v52  ;;  %v2156_v60 = vld [vmem:[#allocation10 + $0x10] sm:$0xff]  ;;  %v2157_v36 = vld [vmem:[#allocation10 + $0x18] sm:$0xff]  ;;  %v2434_v55 = vld [vmem:[#allocation11 + $0x68] sm:$0xff] }
 0x586   :  { %2198 = vmatpush.msrb.mxu2 %v2172_v13  ;;  %v2451_v33 = vld [vmem:[#allocation11 + $0xf0] sm:$0xff]  ;;  %v2450_v52 = vld [vmem:[#allocation11 + $0xe8] sm:$0xff]  ;;  %v2433_v13 = vld [vmem:[#allocation11 + $0x60] sm:$0xff] }
 0x587   :  { %v2105_v44 = vadd.f32 %v2978_v29, %v2104_v3  ;;  %2221 = vmatpush.msra.mxu3 %v2173_v8  ;;  %2481 = vmatpush.msra.mxu1 %v2451_v33  ;;  %v2449_v8 = vld [vmem:[#allocation11 + $0xe0] sm:$0xff] }
 0x588   :  { %2199 = vmatpush.msrb.mxu2 %v2170_v51  ;;  %v2425_v26 = vld [vmem:[#allocation11 + $0x20] sm:$0xff] }
 0x589   :  { %v4141_v53 = vsel %vm2106_vm3, %v2978_v29, %v2105_v44  ;;  %2222 = vmatpush.msra.mxu3 %v2171_v42  ;;  %v2845_v29 = vld [vmem:[%s4286_s6] ss:$0 sm:$0xff]  ;;  %2482 = vmatpush.msra.mxu1 %v2450_v52 }
 0x58a   :  { %2200 = vmatpush.msrb.mxu2 %v2168_v38 }
 0x58b   :  { %2223 = vmatpush.msra.mxu3 %v2169_v31  ;;  %2483 = vmatpush.msra.mxu1 %v2449_v8 }
 0x58c   :  { %2201 = vmatpush.msrb.mxu2 %v2166_v43 }
 0x58d   :  { %2224 = vmatpush.msra.mxu3 %v2167_v12  ;;  %v2432_v12 = vld [vmem:[#allocation11 + $0x58] sm:$0xff] }
 0x58e   :  { %2202 = vmatpush.msrb.mxu2 %v2164_v6  ;;  %v2448_v6 = vld [vmem:[#allocation11 + $0xd8] sm:$0xff] }
 0x58f   :  { %2225 = vmatpush.msra.mxu3 %v2165_v14  ;;  %2484 = vmatpush.msra.mxu1 %v2448_v6 }
 0x590   :  { %2203 = vmatpush.msrb.mxu2 %v2162_v24 }
 0x591   :  { %2226 = vmatpush.msra.mxu3 %v2163_v63  ;;  %v2431_v63 = vld [vmem:[#allocation11 + $0x50] sm:$0xff] }
 0x592   :  { %2204 = vmatpush.msrb.mxu2 %v2160_v25  ;;  %v2447_v25 = vld [vmem:[#allocation11 + $0xd0] sm:$0xff] }
 0x593   :  { %2227 = vmatpush.msra.mxu3 %v2161_v45  ;;  %2485 = vmatpush.msra.mxu1 %v2447_v25 }
 0x594   :  { %2205 = vmatpush.msrb.mxu2 %v2158_v35 }
 0x595   :  { %2228 = vmatpush.msra.mxu3 %v2159_v48  ;;  %v2430_v48 = vld [vmem:[#allocation11 + $0x48] sm:$0xff] }
 0x596   :  { %2206 = vmatpush.msrb.mxu2 %v2156_v60  ;;  %v2446_v60 = vld [vmem:[#allocation11 + $0xc8] sm:$0xff] }
 0x597   :  { %2229 = vmatpush.msra.mxu3 %v2157_v36  ;;  %2486 = vmatpush.msra.mxu1 %v2446_v60  ;;  %v2439_v60 = vld [vmem:[#allocation11 + $0x90] sm:$0xff] }
 0x5c5   :  { %v2002_v17 = vpop.permute.xlu1 %2001 }
 0x5c6   :  { %v2048_v9 = vsel %vm2047_vm2, %v2045_v47, %v2002_v17  ;;  %v2154_v47 = vld [vmem:[#allocation10] sm:$0xff]  ;;  %v2155_v17 = vld [vmem:[#allocation10 + $0x8] sm:$0xff] }
 0x5c7   :  { %2086 = vmatmul.f32.vlgmr.msrb.gmra.mxu1 %v2048_v9  ;;  %2207 = vmatpush.msrb.mxu2 %v2154_v47 }
 0x5c8   :  { %2230 = vmatpush.msra.mxu3 %v2155_v17  ;;  %v2429_v17 = vld [vmem:[#allocation11 + $0x40] sm:$0xff] }
 0x5cd   :  { %v2004_v54 = vpop.permute.xlu1 %2003 }
 0x5ce   :  { %v2049_v15 = vsel %vm2047_vm2, %v2046_v41, %v2004_v54 }
 0x5cf   :  { %2089 = vmatmul.f32.gmra.mxu1 %v2049_v15 }
 0x644   :  { %v2087_v61 = vpop.f32.mrf.mxu1 }
 0x645   :  { %v2088_v39 = vadd.f32 %v2843_v4, %v2087_v61 }
 0x647   :  { %v2093_v28 = vadd.f32 %v2997_v21, %v2088_v39 }
 0x649   :  { %2097 = vadd.xlane.f32.xlu2 %v2093_v28 }
 0x64c   :  { %v2090_v10 = vpop.f32.mrf.mxu1 }
 0x64d   :  { %v2091_v5 = vadd.f32 %v2843_v4, %v2090_v10 }
 0x64f   :  { %v2094_v27 = vadd.f32 %v2998_v50, %v2091_v5  ;;  %v2844_v5 = vld [vmem:[%s4285_s5] ss:$0 sm:$0xff] }
 0x651   :  { %2099 = vadd.xlane.f32.xlu0 %v2094_v27 }
 0x6bc   :  { %v2098_v57 = vpop.xlane.xlu2 %2097 }
 0x6bd   :  { %v2108_v20 = vmul.f32 %v4141_v53, %v2098_v57 }
 0x6bf   :  { %v4144_v1 = vsub.f32 %v2093_v28, %v2108_v20  ;;  %v3202_v20 = vmov 1.4142135  }
 0x6c1   :  { %v2112_v62 = vmul.f32 %v4144_v1, %v4144_v1 }
 0x6c3   :  { %2114 = vadd.xlane.f32.xlu1 %v2112_v62 }
 0x6c4   :  { %v2100_v11 = vpop.xlane.xlu0 %2099 }
 0x6c5   :  { %v2109_v23 = vmul.f32 %v4141_v53, %v2100_v11 }
 0x6c7   :  { %v4149_v49 = vsub.f32 %v2094_v27, %v2109_v23 }
 0x6c9   :  { %v2113_v32 = vmul.f32 %v4149_v49, %v4149_v49 }
 0x6cb   :  { %2116 = vadd.xlane.f32.xlu2 %v2113_v32  ;;  %v2436_v32 = vld [vmem:[#allocation11 + $0x78] sm:$0xff] }
 0x6cc   :  { %2457 = vmatpush.msrb.mxu0 %v2436_v32 }
 0x736   :  { %v2115_v9 = vpop.xlane.xlu1 %2114 }
 0x737   :  { %v2118_v30 = vmul.f32 %v2115_v9, %v4141_v53  ;;  %v2445_v9 = vld [vmem:[#allocation11 + $0xc0] sm:$0xff] }
 0x738   :  { %2487 = vmatpush.msra.mxu1 %v2445_v9 }
 0x739   :  { %v2120_v18 = vadd.f32 1e-12, %v2118_v30 }
 0x73b   :  { %2979 = vrsqrt.f32 %v2120_v18  ;;  %vm2128_vm5 = vweird.f32 %v2120_v18 }
 0x73e   :  { %v2117_v34 = vpop.xlane.xlu2 %2116 }
 0x73f   :  { %v2119_v19 = vmul.f32 %v2117_v34, %v4141_v53 }
 0x741   :  { %v2980_v54 = vpop.eup %2979  ;;  %v2121_v41 = vadd.f32 1e-12, %v2119_v19 }
 0x742   :  { %v2123_v15 = vmul.f32 %v2980_v54, %v2120_v18  ;;  %vm2129_vm4 = vweird.f32 %v2980_v54 }
 0x743   :  { %2981 = vrsqrt.f32 %v2121_v41  ;;  %vm2130_vm6 = vmor %vm2128_vm5, %vm2129_vm4  ;;  %vm2138_vm8 = vweird.f32 %v2121_v41 }
 0x744   :  { %v2124_v4 = vmul.f32 %v2980_v54, %v2123_v15  ;;  %2983 = vrcp.f32 %v3202_v20 }
 0x746   :  { %v2125_v61 = vmul.f32 0.5, %v2124_v4 }
 0x748   :  { %v2126_v39 = vsub.f32 1.5, %v2125_v61  ;;  %v2428_v61 = vld [vmem:[#allocation11 + $0x38] sm:$0xff] }
 0x749   :  { %v2982_v21 = vpop.eup %2981 }
 0x74a   :  { %v2127_v28 = vmul.f32 %v2980_v54, %v2126_v39  ;;  %v2133_v10 = vmul.f32 %v2982_v21, %v2121_v41  ;;  %vm2139_vm7 = vweird.f32 %v2982_v21  ;;  %v2444_v39 = vld [vmem:[#allocation11 + $0xb8] sm:$0xff] }
 0x74b   :  { %vm2140_vm9 = vmor %vm2138_vm8, %vm2139_vm7  ;;  %2488 = vmatpush.msra.mxu1 %v2444_v39 }
 0x74c   :  { %v2131_v50 = vsel %vm2130_vm6, %v2980_v54, %v2127_v28  ;;  %v2134_v27 = vmul.f32 %v2982_v21, %v2133_v10 }
 0x74d   :  { %v2142_v40 = vmul.f32 %v2131_v50, %v4144_v1  ;;  %v2984_v1 = vpop.eup %2983 }
 0x74e   :  { %v2135_v58 = vmul.f32 0.5, %v2134_v27  ;;  %v2243_v62 = vmul.f32 1.4142135, %v2984_v1  ;;  %vm2247_vm10 = vweird.f32 %v2984_v1 }
 0x74f   :  { %v2147_v16 = vmul.f32 %v2844_v5, %v2142_v40  ;;  %v2427_v40 = vld [vmem:[#allocation11 + $0x30] sm:$0xff] }
 0x750   :  { %v2136_v37 = vsub.f32 1.5, %v2135_v58  ;;  %v2244_v11 = vsub.f32 1.0, %v2243_v62 }
 0x751   :  { %v4162_v7 = vadd.f32 %v2845_v29, %v2147_v16 }
 0x752   :  { %v2137_v46 = vmul.f32 %v2982_v21, %v2136_v37  ;;  %v2245_v23 = vmul.f32 %v2984_v1, %v2244_v11 }
 0x753   :  { %2208 = vmatmul.f32.vlgmr.msrb.gmra.mxu2 %v4162_v7  ;;  %2231 = vmatmul.f32.vlgmr.msra.gmra.mxu3 %v4162_v7 }
 0x754   :  { %v2141_v56 = vsel %vm2140_vm9, %v2982_v21, %v2137_v46  ;;  %v2246_v2 = vadd.f32 %v2984_v1, %v2245_v23 }
 0x755   :  { %v2143_v3 = vmul.f32 %v2141_v56, %v4149_v49  ;;  %v2435_v49 = vld [vmem:[#allocation11 + $0x70] sm:$0xff]  ;;  %v2426_v56 = vld [vmem:[#allocation11 + $0x28] sm:$0xff] }
 0x756   :  { %2458 = vmatpush.msrb.mxu0 %v2435_v49  ;;  %v2248_v42 = vsel %vm2247_vm10, %v2984_v1, %v2246_v2  ;;  %v2441_v49 = vld [vmem:[#allocation11 + $0xa0] sm:$0xff] }
 0x757   :  { %v2148_v44 = vmul.f32 %v2844_v5, %v2143_v3  ;;  %v2442_v3 = vld [vmem:[#allocation11 + $0xa8] sm:$0xff] }
 0x758   :  { %2459 = vmatpush.msrb.mxu0 %v2434_v55  ;;  %v2440_v55 = vld [vmem:[#allocation11 + $0x98] sm:$0xff] }
 0x759   :  { %v4167_v57 = vadd.f32 %v2845_v29, %v2148_v44  ;;  %v2443_v29 = vld [vmem:[#allocation11 + $0xb0] sm:$0xff] }
 0x75a   :  { %2460 = vmatpush.msrb.mxu0 %v2433_v13  ;;  %2489 = vmatpush.msra.mxu1 %v2443_v29 }
 0x75b   :  { %2211 = vmatmul.f32.gmra.mxu2 %v4167_v57  ;;  %2234 = vmatmul.f32.gmra.mxu3 %v4167_v57 }
 0x75c   :  { %2461 = vmatpush.msrb.mxu0 %v2432_v12  ;;  %2490 = vmatpush.msra.mxu1 %v2442_v3 }
 0x75e   :  { %2462 = vmatpush.msrb.mxu0 %v2431_v63  ;;  %2491 = vmatpush.msra.mxu1 %v2441_v49 }
 0x760   :  { %2463 = vmatpush.msrb.mxu0 %v2430_v48  ;;  %2492 = vmatpush.msra.mxu1 %v2440_v55  ;;  %v2423_v48 = vld [vmem:[#allocation11 + $0x10] sm:$0xff] }
 0x762   :  { %2464 = vmatpush.msrb.mxu0 %v2429_v17  ;;  %v2422_v17 = vld [vmem:[#allocation11 + $0x8] sm:$0xff]  ;;  %2493 = vmatpush.msra.mxu1 %v2439_v60 }
 0x764   :  { %2465 = vmatpush.msrb.mxu0 %v2428_v61  ;;  %v2437_v61 = vld [vmem:[#allocation11 + $0x80] sm:$0xff] }
 0x766   :  { %2466 = vmatpush.msrb.mxu0 %v2427_v40 }
 0x768   :  { %2467 = vmatpush.msrb.mxu0 %v2426_v56 }
 0x76a   :  { %2468 = vmatpush.msrb.mxu0 %v2425_v26 }
 0x7d6   :  { %v2209_v51 = vpop.f32.mrf.mxu2  ;;  %v2232_v38 = vpop.f32.mrf.mxu3 }
 0x7d7   :  { %v4174_v31 = vadd.f32 %v2209_v51, %v2188_v0  ;;  %v4176_v43 = vadd.f32 %v2232_v38, %v2189_v22 }
 0x7d9   :  { %v4179_v14 = vmul.f32 %v2248_v42, %v4174_v31  ;;  %v4182_v24 = vmul.f32 %v2248_v42, %v4176_v43 }
 0x7db   :  { %v2253_v45 = vmul.f32 %v4179_v14, %v4179_v14  ;;  %v2293_v35 = vmul.f32 %v4182_v24, %v4182_v24 }
 0x7dd   :  { %v4188_v36 = vmin.f32 %v2253_v45, 16.0  ;;  %v4190_v47 = vmin.f32 %v2293_v35, 16.0 }
 0x7de   :  { %v2212_v30 = vpop.f32.mrf.mxu2  ;;  %v2235_v18 = vpop.f32.mrf.mxu3 }
 0x7df   :  { %v2255_v34 = vmul.f32 2.1237322e-06, %v4188_v36  ;;  %v2266_v19 = vmul.f32 3.8918573e-05, %v4188_v36  ;;  %v2295_v54 = vmul.f32 2.1237322e-06, %v4190_v47  ;;  %v4195_v41 = vadd.f32 %v2212_v30, %v2188_v0 }
 0x7e0   :  { %v2306_v15 = vmul.f32 3.8918573e-05, %v4190_v47  ;;  %v4198_v4 = vadd.f32 %v2235_v18, %v2189_v22  ;;  %v2424_v22 = vld [vmem:[#allocation11 + $0x18] sm:$0xff]  ;;  %v2438_v18 = vld [vmem:[#allocation11 + $0x88] sm:$0xff] }
 0x7e1   :  { %v2256_v21 = vadd.f32 0.00028619796, %v2255_v34  ;;  %v2267_v28 = vadd.f32 0.001143296, %v2266_v19  ;;  %v2296_v10 = vadd.f32 0.00028619796, %v2295_v54  ;;  %v4201_v5 = vmul.f32 %v2248_v42, %v4195_v41  ;;  %2469 = vmatpush.msrb.mxu0 %v2424_v22  ;;  %2494 = vmatpush.msra.mxu1 %v2438_v18 }
 0x7e2   :  { %v2307_v50 = vadd.f32 0.001143296, %v2306_v15  ;;  %v4204_v27 = vmul.f32 %v2248_v42, %v4198_v4  ;;  %v2421_v15 = vld [vmem:[#allocation11] sm:$0xff] }
 0x7e3   :  { %v2257_v58 = vmul.f32 %v2256_v21, %v4188_v36  ;;  %v2268_v16 = vmul.f32 %v2267_v28, %v4188_v36  ;;  %v2297_v37 = vmul.f32 %v2296_v10, %v4190_v47  ;;  %v2333_v46 = vmul.f32 %v4201_v5, %v4201_v5  ;;  %2470 = vmatpush.msrb.mxu0 %v2423_v48 }
 0x7e4   :  { %v2308_v44 = vmul.f32 %v2307_v50, %v4190_v47  ;;  %v2373_v20 = vmul.f32 %v4204_v27, %v4204_v27  ;;  %2495 = vmatpush.msra.mxu1 %v2437_v61 }
 0x7e5   :  { %v2258_v1 = vadd.f32 0.0036580483, %v2257_v58  ;;  %v2269_v62 = vadd.f32 0.014752088, %v2268_v16  ;;  %v2298_v11 = vadd.f32 0.0036580483, %v2297_v37  ;;  %2471 = vmatpush.msrb.mxu0 %v2422_v17 }
 0x7e6   :  { %v2309_v23 = vadd.f32 0.014752088, %v2308_v44  ;;  %v4214_v32 = vmin.f32 %v2333_v46, 16.0  ;;  %v4216_v59 = vmin.f32 %v2373_v20, 16.0 }
 0x7e7   :  { %v2259_v33 = vmul.f32 %v2258_v1, %v4188_v36  ;;  %v2270_v2 = vmul.f32 %v2269_v62, %v4188_v36  ;;  %v2299_v0 = vmul.f32 %v2298_v11, %v4190_v47  ;;  %2472 = vmatpush.msrb.mxu0 %v2421_v15 }
 0x7e8   :  { %v2310_v52 = vmul.f32 %v2309_v23, %v4190_v47  ;;  %v2335_v13 = vmul.f32 2.1237322e-06, %v4214_v32  ;;  %v2375_v8 = vmul.f32 2.1237322e-06, %v4216_v59  ;;  %v2346_v51 = vmul.f32 3.8918573e-05, %v4214_v32 }
 0x7e9   :  { %v2260_v42 = vadd.f32 0.05243302, %v2259_v33  ;;  %v2271_v38 = vadd.f32 0.112945676, %v2270_v2  ;;  %v2300_v12 = vadd.f32 0.05243302, %v2299_v0 }
 0x7ea   :  { %v2311_v6 = vadd.f32 0.112945676, %v2310_v52  ;;  %v2336_v63 = vadd.f32 0.00028619796, %v2335_v13  ;;  %v2376_v25 = vadd.f32 0.00028619796, %v2375_v8 }
 0x7eb   :  { %v2261_v45 = vmul.f32 %v2260_v42, %v4188_v36  ;;  %v2272_v35 = vmul.f32 %v2271_v38, %v4188_v36  ;;  %v2347_v9 = vadd.f32 0.001143296, %v2346_v51  ;;  %v2386_v34 = vmul.f32 3.8918573e-05, %v4216_v59 }
 0x7ec   :  { %v2312_v30 = vmul.f32 %v2311_v6, %v4190_v47  ;;  %v2301_v54 = vmul.f32 %v2300_v12, %v4190_v47  ;;  %v2337_v28 = vmul.f32 %v2336_v63, %v4214_v32  ;;  %v2377_v40 = vmul.f32 %v2376_v25, %v4216_v59 }
 0x7ed   :  { %v2273_v19 = vadd.f32 0.4994258, %v2272_v35  ;;  %v2348_v39 = vmul.f32 %v2347_v9, %v4214_v32  ;;  %v2262_v10 = vadd.f32 0.18741608, %v2261_v45  ;;  %v2387_v16 = vadd.f32 0.001143296, %v2386_v34 }
 0x7ee   :  { %v2313_v21 = vadd.f32 0.4994258, %v2312_v30  ;;  %v2302_v46 = vadd.f32 0.18741608, %v2301_v54  ;;  %v2338_v3 = vadd.f32 0.0036580483, %v2337_v28 }
 0x7ef   :  { %v2274_v50 = vmul.f32 %v2273_v19, %v4188_v36  ;;  %v2349_v29 = vadd.f32 0.014752088, %v2348_v39  ;;  %v2388_v20 = vmul.f32 %v2387_v16, %v4216_v59  ;;  %v2263_v1 = vmul.f32 %v2262_v10, %v4188_v36 }
 0x7f0   :  { %v2314_v58 = vmul.f32 %v2313_v21, %v4190_v47  ;;  %v2378_v62 = vadd.f32 0.0036580483, %v2377_v40  ;;  %v2303_v11 = vmul.f32 %v2302_v46, %v4190_v47  ;;  %v2339_v23 = vmul.f32 %v2338_v3, %v4214_v32 }
 0x7f1   :  { %v2275_v37 = vadd.f32 1.0, %v2274_v50  ;;  %v2350_v44 = vmul.f32 %v2349_v29, %v4214_v32  ;;  %v2389_v49 = vadd.f32 0.014752088, %v2388_v20  ;;  %v2264_v33 = vadd.f32 1.1283791, %v2263_v1 }
 0x7f2   :  { %v2315_v56 = vadd.f32 1.0, %v2314_v58  ;;  %v2379_v2 = vmul.f32 %v2378_v62, %v4216_v59  ;;  %v2304_v36 = vadd.f32 1.1283791, %v2303_v11  ;;  %v2340_v8 = vadd.f32 0.05243302, %v2339_v23 }
 0x7f3   :  { %2985 = vrcp.f32 %v2275_v37  ;;  %v2351_v26 = vadd.f32 0.112945676, %v2350_v44  ;;  %v2390_v22 = vmul.f32 %v2389_v49, %v4216_v59  ;;  %v2265_v42 = vmul.f32 %v2264_v33, %v4179_v14 }
 0x7f4   :  { %2987 = vrcp.f32 %v2315_v56  ;;  %v2380_v38 = vadd.f32 0.05243302, %v2379_v2  ;;  %vm2281_vm11 = vweird.f32 %v2275_v37  ;;  %v2285_v63 = vand.u32 2147483647, %v2275_v37 }
 0x7f5   :  { %v2352_v0 = vmul.f32 %v2351_v26, %v4214_v32  ;;  %v2391_v12 = vadd.f32 0.112945676, %v2390_v22  ;;  %v2287_v45 = vand.u32 2147483648, %v2275_v37  ;;  %v2327_v48 = vand.u32 2147483648, %v2315_v56 }
 0x7f6   :  { %v2341_v9 = vmul.f32 %v2340_v8, %v4214_v32  ;;  %v2325_v14 = vand.u32 2147483647, %v2315_v56  ;;  %v2305_v54 = vmul.f32 %v2304_v36, %v4182_v24  ;;  %vm2321_vm14 = vweird.f32 %v2315_v56 }
 0x7f7   :  { %v2353_v51 = vadd.f32 0.4994258, %v2352_v0  ;;  %v2392_v60 = vmul.f32 %v2391_v12, %v4216_v59  ;;  %vm2286_vm0 = vcmp.eq.f32.partialorder %v2285_v63, 8.507059e+37  ;;  %v2288_v15 = vor.u32 1.1754944e-38, %v2287_v45 }
 0x7f8   :  { %v2328_v28 = vor.u32 1.1754944e-38, %v2327_v48  ;;  %v2342_v10 = vadd.f32 0.18741608, %v2341_v9  ;;  %v2381_v50 = vmul.f32 %v2380_v38, %v4216_v59  ;;  %vm2326_vm2 = vcmp.eq.f32.partialorder %v2325_v14, 8.507059e+37 }
 0x7f9   :  { %v2986_v55 = vpop.eup %2985  ;;  %v2354_v25 = vmul.f32 %v2353_v51, %v4214_v32  ;;  %v2393_v34 = vadd.f32 0.4994258, %v2392_v60  ;;  %v2238_v62 = vmul.f32 0.5, %v4174_v31  ;;  %v2239_v23 = vmul.f32 0.5, %v4176_v43 }
 0x7fa   :  { %v2988_v52 = vpop.eup %2987  ;;  %v2277_v13 = vmul.f32 %v2986_v55, %v2275_v37  ;;  %vm2282_vm12 = vweird.f32 %v2986_v55  ;;  %v2343_v3 = vmul.f32 %v2342_v10, %v4214_v32  ;;  %v2382_v44 = vadd.f32 0.18741608, %v2381_v50 }
 0x7fb   :  { %v2317_v47 = vmul.f32 %v2988_v52, %v2315_v56  ;;  %v2355_v30 = vadd.f32 1.0, %v2354_v25  ;;  %vm2322_vm13 = vweird.f32 %v2988_v52  ;;  %vm2283_vm15 = vmor %vm2281_vm11, %vm2282_vm12  ;;  %v2394_v39 = vmul.f32 %v2393_v34, %v4216_v59 }
 0x7fc   :  { %v2278_v6 = vsub.f32 1.0, %v2277_v13  ;;  %vm2323_vm1 = vmor %vm2321_vm14, %vm2322_vm13  ;;  %v2344_v2 = vadd.f32 1.1283791, %v2343_v3  ;;  %v2383_v0 = vmul.f32 %v2382_v44, %v4216_v59  ;;  %v2241_v34 = vmul.f32 0.5, %v4198_v4 }
 0x7fd   :  { %v2318_v35 = vsub.f32 1.0, %v2317_v47  ;;  %2989 = vrcp.f32 %v2355_v30  ;;  %v2395_v58 = vadd.f32 1.0, %v2394_v39  ;;  %v2367_v22 = vand.u32 2147483648, %v2355_v30 }
 0x7fe   :  { %v2279_v17 = vmul.f32 %v2986_v55, %v2278_v6  ;;  %v2365_v32 = vand.u32 2147483647, %v2355_v30  ;;  %vm2361_vm4 = vweird.f32 %v2355_v30  ;;  %v2384_v31 = vadd.f32 1.1283791, %v2383_v0  ;;  %v2847_v0 = vld [vmem:[%s4291_s11] ss:$0 sm:$0xff] }
 0x7ff   :  { %v2319_v18 = vmul.f32 %v2988_v52, %v2318_v35  ;;  %2991 = vrcp.f32 %v2395_v58  ;;  %v2368_v43 = vor.u32 1.1754944e-38, %v2367_v22  ;;  %v2407_v59 = vand.u32 2147483648, %v2395_v58  ;;  %s3203_s11 = smov [#allocation13]  }
 0x800   :  { %v2280_v19 = vadd.f32 %v2986_v55, %v2279_v17  ;;  %vm2366_vm6 = vcmp.eq.f32.partialorder %v2365_v32, 8.507059e+37  ;;  %v2405_v6 = vand.u32 2147483647, %v2395_v58  ;;  %vm2401_vm8 = vweird.f32 %v2395_v58  ;;  %s2563_s7 = sshll.u32 %s3203_s11, 4  ;;  %s2564_s7 = int_to_ptr.vmem [resolvable:$true] %s2563_s7 }
 0x801   :  { %v2320_v61 = vadd.f32 %v2988_v52, %v2319_v18  ;;  %v2408_v35 = vor.u32 1.1754944e-38, %v2407_v59  ;;  %v2385_v48 = vmul.f32 %v2384_v31, %v4204_v27  ;;  %v2240_v17 = vmul.f32 0.5, %v4195_v41 }
 0x802   :  { %v2284_v21 = vsel %vm2283_vm15, %v2986_v55, %v2280_v19  ;;  %vm2406_vm10 = vcmp.eq.f32.partialorder %v2405_v6, 8.507059e+37 }
 0x803   :  { %v2289_v40 = vsel %vm2286_vm0, %v2288_v15, %v2284_v21  ;;  %v2324_v29 = vsel %vm2323_vm1, %v2988_v52, %v2320_v61  ;;  %v2990_v37 = vpop.eup %2989  ;;  %v2846_v15 = vld [vmem:[%s4290_s10] ss:$0 sm:$0xff] }
 0x804   :  { %v2290_v24 = vmul.f32 %v2289_v40, %v2265_v42  ;;  %v2329_v16 = vsel %vm2326_vm2, %v2328_v28, %v2324_v29  ;;  %v2357_v1 = vmul.f32 %v2990_v37, %v2355_v30  ;;  %vm2362_vm3 = vweird.f32 %v2990_v37 }
 0x805   :  { %v2330_v46 = vmul.f32 %v2329_v16, %v2305_v54  ;;  %v2992_v55 = vpop.eup %2991  ;;  %vm2363_vm5 = vmor %vm2361_vm4, %vm2362_vm3  ;;  %v2345_v42 = vmul.f32 %v2344_v2, %v4201_v5 }
 0x806   :  { %v2677_v56 = vclamps-f32 %v2290_v24, 1.0  ;;  %v2358_v49 = vsub.f32 1.0, %v2357_v1  ;;  %v2397_v36 = vmul.f32 %v2992_v55, %v2395_v58  ;;  %vm2402_vm7 = vweird.f32 %v2992_v55 }
 0x807   :  { %v2678_v20 = vclamps-f32 %v2330_v46, 1.0  ;;  %vm2403_vm9 = vmor %vm2401_vm8, %vm2402_vm7 }
 0x808   :  { %v2413_v11 = vadd.f32 1.0, %v2677_v56  ;;  %v2359_v13 = vmul.f32 %v2990_v37, %v2358_v49  ;;  %v2398_v51 = vsub.f32 1.0, %v2397_v36 }
 0x809   :  { %v2414_v26 = vadd.f32 1.0, %v2678_v20 }
 0x80a   :  { %v2417_v33 = vmul.f32 %v2413_v11, %v2238_v62  ;;  %v2360_v8 = vadd.f32 %v2990_v37, %v2359_v13  ;;  %v2399_v12 = vmul.f32 %v2992_v55, %v2398_v51 }
 0x80b   :  { %v2418_v52 = vmul.f32 %v2414_v26, %v2239_v23 }
 0x80c   :  { %2473 = vmatmul.f32.vlgmr.msrb.gmra.mxu0 %v2417_v33  ;;  %v2364_v47 = vsel %vm2363_vm5, %v2990_v37, %v2360_v8  ;;  %v2400_v25 = vadd.f32 %v2992_v55, %v2399_v12 }
 0x80d   :  { %2496 = vmatmul.f32.vlgmr.msra.gmra.mxu1 %v2418_v52  ;;  %v2369_v38 = vsel %vm2366_vm6, %v2368_v43, %v2364_v47  ;;  %v2848_v52 = vld [vmem:[%s4292_s12] ss:$0 sm:$0xff]  ;;  %s2565_s12 = sshll.u32 %s4293_s13, 4  ;;  %s2566_s12 = int_to_ptr.hbm [resolvable:$true] %s2565_s12 }
 0x80e   :  { %v2370_v63 = vmul.f32 %v2369_v38, %v2345_v42  ;;  %v2404_v60 = vsel %vm2403_vm9, %v2992_v55, %v2400_v25 }
 0x80f   :  { %v2409_v9 = vsel %vm2406_vm10, %v2408_v35, %v2404_v60 }
 0x810   :  { %v2679_v45 = vclamps-f32 %v2370_v63, 1.0  ;;  %v2410_v30 = vmul.f32 %v2409_v9, %v2385_v48 }
 0x812   :  { %v2415_v5 = vadd.f32 1.0, %v2679_v45  ;;  %v2680_v14 = vclamps-f32 %v2410_v30, 1.0 }
 0x814   :  { %v2419_v18 = vmul.f32 %v2415_v5, %v2240_v17  ;;  %v2416_v19 = vadd.f32 1.0, %v2680_v14 }
 0x816   :  { %2476 = vmatmul.f32.gmra.mxu0 %v2419_v18  ;;  %v2420_v54 = vmul.f32 %v2416_v19, %v2241_v34 }
 0x818   :  { %2499 = vmatmul.f32.gmra.mxu1 %v2420_v54 }
 0x889   :  { %v2474_v27 = vpop.f32.mrf.mxu0 }
 0x88a   :  { %v2475_v61 = vadd.f32 %v2846_v15, %v2474_v27  ;;  %v2497_v39 = vpop.f32.mrf.mxu1 }
 0x88c   :  { %v2498_v21 = vadd.f32 %v2497_v39, %v2475_v61 }
 0x88e   :  { %v2503_v41 = vadd.f32 %v2498_v21, %v4162_v7 }
 0x890   :  { %2507 = vadd.xlane.f32.xlu0 %v2503_v41 }
 0x893   :  { %v2477_v28 = vpop.f32.mrf.mxu0 }
 0x894   :  { %v2478_v10 = vadd.f32 %v2846_v15, %v2477_v28 }
 0x895   :  { %v2500_v50 = vpop.f32.mrf.mxu1 }
 0x896   :  { %v2501_v40 = vadd.f32 %v2500_v50, %v2478_v10 }
 0x898   :  { %v2504_v4 = vadd.f32 %v2501_v40, %v4167_v57 }
 0x89a   :  { %2509 = vadd.xlane.f32.xlu1 %v2504_v4 }
 0x903   :  { %v2508_v29 = vpop.xlane.xlu0 %2507 }
 0x904   :  { %v2511_v58 = vmul.f32 %v2508_v29, %v4141_v53 }
 0x906   :  { %v2513_v24 = vsub.f32 %v2503_v41, %v2511_v58 }
 0x908   :  { %v2515_v16 = vmul.f32 %v2513_v24, %v2513_v24 }
 0x90a   :  { %2517 = vadd.xlane.f32.xlu2 %v2515_v16 }
 0x90d   :  { %v2510_v46 = vpop.xlane.xlu1 %2509 }
 0x90e   :  { %v2512_v37 = vmul.f32 %v2510_v46, %v4141_v53 }
 0x910   :  { %v2514_v56 = vsub.f32 %v2504_v4, %v2512_v37 }
 0x912   :  { %v2516_v3 = vmul.f32 %v2514_v56, %v2514_v56 }
 0x914   :  { %2519 = vadd.xlane.f32.xlu0 %v2516_v3 }
 0x97d   :  { %v2518_v7 = vpop.xlane.xlu2 %2517 }
 0x97e   :  { %v2521_v44 = vmul.f32 %v2518_v7, %v4141_v53 }
 0x980   :  { %v2523_v20 = vadd.f32 1e-12, %v2521_v44 }
 0x982   :  { %2993 = vrsqrt.f32 %v2523_v20  ;;  %vm2531_vm12 = vweird.f32 %v2523_v20 }
 0x987   :  { %v2520_v23 = vpop.xlane.xlu0 %2519 }
 0x988   :  { %v2994_v1 = vpop.eup %2993  ;;  %v2522_v26 = vmul.f32 %v2520_v23, %v4141_v53 }
 0x989   :  { %v2526_v57 = vmul.f32 %v2994_v1, %v2523_v20  ;;  %vm2532_vm11 = vweird.f32 %v2994_v1 }
 0x98a   :  { %v2524_v33 = vadd.f32 1e-12, %v2522_v26  ;;  %vm2533_vm13 = vmor %vm2531_vm12, %vm2532_vm11 }
 0x98b   :  { %v2527_v62 = vmul.f32 %v2994_v1, %v2526_v57 }
 0x98c   :  { %2995 = vrsqrt.f32 %v2524_v33  ;;  %vm2541_vm15 = vweird.f32 %v2524_v33 }
 0x98d   :  { %v2528_v11 = vmul.f32 0.5, %v2527_v62 }
 0x98f   :  { %v2529_v49 = vsub.f32 1.5, %v2528_v11 }
 0x991   :  { %v2530_v2 = vmul.f32 %v2994_v1, %v2529_v49 }
 0x992   :  { %v2996_v32 = vpop.eup %2995 }
 0x993   :  { %v2534_v22 = vsel %vm2533_vm13, %v2994_v1, %v2530_v2  ;;  %v2536_v36 = vmul.f32 %v2996_v32, %v2524_v33  ;;  %vm2542_vm14 = vweird.f32 %v2996_v32 }
 0x994   :  { %v2545_v55 = vmul.f32 %v2534_v22, %v2513_v24  ;;  %vm2543_vm0 = vmor %vm2541_vm15, %vm2542_vm14 }
 0x995   :  { %v2537_v8 = vmul.f32 %v2996_v32, %v2536_v36 }
 0x996   :  { %v2550_v13 = vmul.f32 %v2847_v0, %v2545_v55 }
 0x997   :  { %v2538_v31 = vmul.f32 0.5, %v2537_v8 }
 0x998   :  { %v2555_v53 = vadd.f32 %v2848_v52, %v2550_v13 }
 0x999   :  { %v2539_v43 = vsub.f32 1.5, %v2538_v31 }
 0x99a   :  { %2557 = vst [vmem:[#allocation13] sm:$0xff] %v2555_v53 }
 0x99b   :  { %v2540_v51 = vmul.f32 %v2996_v32, %v2539_v43 }
 0x99d   :  { %v2544_v42 = vsel %vm2543_vm0, %v2996_v32, %v2540_v51 }
 0x99e   :  { %v2546_v47 = vmul.f32 %v2544_v42, %v2514_v56 }
 0x9a0   :  { %v2551_v59 = vmul.f32 %v2847_v0, %v2546_v47 }
 0x9a2   :  { %v2556_v38 = vadd.f32 %v2848_v52, %v2551_v59 }
 0x9a4   :  { %2558 = vst [vmem:[#allocation13 + $0x8] sm:$0xff] %v2556_v38 }
 0x9a5   :  { %2571 = dma.vmem_to_hbm [thread:$0]  %s2564_s7, 256, %s2566_s12, [#allocation4], %s3181_s22, %s3181_s22, %s3182_s23  }
 0x9a6   :  { %3175 = dma.done.wait [#allocation4], 256  }
 0x9a7   :  { %3176 = vsyncadd [#allocation4], 4294967040 }
 0x9a8   :  { %2576 = vsyncpa [#allocation3], 1 }
 0x9a9   :  { %2577 = vsyncpa [#allocation6], 1 }
 0x9aa   :  { %2578 = vsyncpa [#allocation9], 1 }
 0x9ab   :  { %2579 = vsyncpa [#allocation12], 1 }
 0x9ac   :  { %2580 = vsyncpa [#allocation4], 1 }

</bundles_post_ra>
